<compile_context>
chip_gen: v7x
topology: tpu7x:2x2x1
jax: 0.10.0
libtpu: 0.0.40
codegen_flags: <defaults>
</compile_context>

<pallas_src>
import functools

import jax
import jax.numpy as jnp
from jax import lax
from jax.experimental import pallas as pl
from jax.experimental.pallas import tpu as pltpu

EPS = 1e-5  # nn.LayerNorm default eps


def _layernorm(x, gamma, beta):
    mu = jnp.mean(x, axis=-1, keepdims=True)
    var = jnp.mean((x - mu) ** 2, axis=-1, keepdims=True)
    return (x - mu) * jax.lax.rsqrt(var + EPS) * gamma + beta


def _gelu(x):
    return jax.nn.gelu(x, approximate=True)


def transolver_kernel(
    L, H,
    fx_ref,
    ln1_g_ref, ln1_b_ref,
    wqew_ref, bqew_ref,          # packed q/e/w1 projection: (D, 3H), (1, 3H)
    ww2_ref, bw2_ref,            # w_mid second layer
    wfc_ref, bfc_ref,            # fc_out
    ln2_g_ref, ln2_b_ref,
    wm1_ref, bm1_ref, wm2_ref, bm2_ref,   # block MLP
    out_ref,
):
    fx = fx_ref[...]                       # (R, D) f32, R = bt_tile * L
    R = fx.shape[0]
    bt = R // L

    # ---- ln_1 (f32 statistics) ----
    ln1 = _layernorm(fx, ln1_g_ref[...], ln1_b_ref[...])
    ln1_b16 = ln1.astype(jnp.bfloat16)

    # ---- fused q/e/w1 projection: one (R, D) @ (D, 3H) matmul, then slice ----
    qew = jnp.dot(ln1_b16, wqew_ref[...],
                  preferred_element_type=jnp.float32) + bqew_ref[...]            # (R, 3H)
    q = qew[:, :H]                                                                # (R, H) f32
    e = qew[:, H:2 * H]                                                           # (R, H) f32
    h = _gelu(qew[:, 2 * H:3 * H])                                                # (R, H) f32
    # w_mid: MLPLinear_res num_layers=2 (Linear -> GELU -> Linear, D != H -> no residual)
    wmid = jnp.dot(h.astype(jnp.bfloat16), ww2_ref[...],
                   preferred_element_type=jnp.float32) + bw2_ref[...]             # (R, H)

    # ---- per-sample attention over the slice axis (batched over bt) ----
    # Reshape while still f32 (sublane-friendly), cast to bf16 afterwards.
    q3 = q.reshape(bt, L, H).astype(jnp.bfloat16)
    e3 = e.reshape(bt, L, H).astype(jnp.bfloat16)
    wm3 = wmid.reshape(bt, L, H).astype(jnp.bfloat16)

    # weight[b, m, n] = sum_l q[b, l, m] * e[b, l, n]   ('btlm,btln->btmn')
    logits = lax.dot_general(
        q3, e3,
        dimension_numbers=(((1,), (1,)), ((0,), (0,))),
        preferred_element_type=jnp.float32)                                       # (bt, H, H)

    logits = logits - jnp.max(logits, axis=-1, keepdims=True)
    p = jnp.exp(logits)
    denom = jnp.sum(p, axis=-1, keepdims=True)
    attn = p * pl.reciprocal(denom, approx=True)                                  # softmax(dim=-1)

    # w[b, p, s] = sum_m wmid[b, p, m] * attn[b, m, s]   ('btpm,btms->btps')
    w3 = lax.dot_general(
        wm3, attn.astype(jnp.bfloat16),
        dimension_numbers=(((2,), (1,)), ((0,), (0,))),
        preferred_element_type=jnp.float32)                                       # (bt, L, H)
    w = w3.reshape(R, H)

    attn_out = jnp.dot(w.astype(jnp.bfloat16), wfc_ref[...],
                       preferred_element_type=jnp.float32) + bfc_ref[...]          # (R, D)

    fx2 = attn_out + fx                                                            # + fx residual

    # ---- ln_2 + MLPLinear_res(embed, embed, num_layers=2) ----
    ln2 = _layernorm(fx2, ln2_g_ref[...], ln2_b_ref[...])
    ln2_b16 = ln2.astype(jnp.bfloat16)
    m = _gelu(jnp.dot(ln2_b16, wm1_ref[...], preferred_element_type=jnp.float32) + bm1_ref[...])
    m = jnp.dot(m.astype(jnp.bfloat16), wm2_ref[...],
                preferred_element_type=jnp.float32) + bm2_ref[...]
    mlp_out = m + ln2                                  # residual inside MLPLinear_res (in == out)

    out_ref[...] = (mlp_out + fx2).astype(out_ref.dtype)   # + fx residual


_PARAM_NAMES = [
    "ln1_g", "ln1_b",
    "wqew", "bqew",
    "ww2", "bw2",
    "wfc", "bfc",
    "ln2_g", "ln2_b",
    "wm1", "bm1", "wm2", "bm2",
]
_MATRIX_NAMES = {"wqew", "ww2", "wfc", "wm1", "wm2"}


def _step_vmem_bytes(bt, L, D, H):
    """Rough per-grid-step VMEM footprint estimate (f32-equivalent, conservative)."""
    rows = bt * L
    slab = rows * (12 * D + 10 * H) * 4        # live f32 row-slab intermediates (+ bf16 copies)
    attn = bt * H * H * (4 + 4 + 2 + 2)        # logits, p (f32), attn/q-e (bf16) scratch
    io = 2 * 2 * rows * D * 4                  # double-buffered fx in + out row blocks
    return slab + attn + io


def _choose_bt_tile(BT, L, D, H, target_rows, vmem_limit_bytes):
    """Pick a divisor of BT such that:
       * the row slab is 8-aligned (or covers the whole array),
       * the estimated per-step footprint fits well under the VMEM budget,
       * the grid length is even when possible (balanced v7x megacore sharding),
       * the slab is as large as possible under target_rows (amortize step cost)."""
    budget = int(vmem_limit_bytes * 0.5)
    divs = [d for d in range(1, BT + 1) if BT % d == 0]
    valid = [d for d in divs if ((d * L) % 8 == 0 or d == BT)]
    fit = [d for d in valid if _step_vmem_bytes(d, L, D, H) <= budget] or [min(valid)]
    even = [d for d in fit if (BT // d) % 2 == 0]
    multi = [d for d in fit if BT // d >= 2]
    pref = even or multi or fit
    under = [d for d in pref if d * L <= target_rows]
    return max(under) if under else min(pref)


def _weight_spec(arr, single_buffer):
    nd = arr.ndim
    idx = lambda i, _nd=nd: (0,) * _nd         # constant block index -> DMA'd once
    if single_buffer:
        return pl.BlockSpec(arr.shape, idx, pipeline_mode=pl.Buffered(1))
    return pl.BlockSpec(arr.shape, idx)


def transolver_block(fx, params, *, target_rows=512,
                     vmem_limit_bytes=48 * 1024 * 1024):
    """target_rows / vmem_limit_bytes defaults are sized for v7x (64 MiB VMEM);
    on v6e/v5e (128 MiB physical VMEM) they can be raised (e.g. 1024 / 96 MiB)."""
    B, T, L, D = fx.shape
    H = params["wq"].shape[1]
    BT = B * T
    bt_tile = _choose_bt_tile(BT, L, D, H, target_rows, vmem_limit_bytes)
    rows_tile = bt_tile * L

    fx2d = fx.reshape(BT * L, D)

    # Pack the three ln1 projections into one wide weight / bias.
    packed = dict(params)
    packed["wqew"] = jnp.concatenate([params["wq"], params["we"], params["ww1"]], axis=1)
    packed["bqew"] = jnp.concatenate([params["bq"], params["be"], params["bw1"]], axis=1)

    # bf16 weight matrices (MXU-native, halves resident weight VMEM);
    # biases / LayerNorm affine params stay f32 (added after f32 accumulation).
    param_arrays = []
    for n in _PARAM_NAMES:
        a = packed[n]
        if n in _MATRIX_NAMES:
            a = a.astype(jnp.bfloat16)
        param_arrays.append(a)

    row_spec = pl.BlockSpec((rows_tile, D), lambda i: (i, 0))

    def run(single_buffer_weights):
        in_specs = [row_spec] + [_weight_spec(a, single_buffer_weights)
                                 for a in param_arrays]
        return pl.pallas_call(
            functools.partial(transolver_kernel, L, H),
            out_shape=jax.ShapeDtypeStruct((BT * L, D), fx.dtype),
            grid=(BT // bt_tile,),
            in_specs=in_specs,
            out_specs=row_spec,
            compiler_params=pltpu.CompilerParams(
                dimension_semantics=("parallel",),
                vmem_limit_bytes=vmem_limit_bytes),
        )(fx2d, *param_arrays)

    try:
        out = run(True)
    except Exception:
        # Fallback if single-buffered constant blocks are rejected by this JAX version.
        out = run(False)

    return out.reshape(B, T, L, D)


def make_params(key, embed_dim, hid_dim):
    ks = jax.random.split(key, 16)
    s = 0.02

    def w(k, shape):
        return jax.random.normal(k, shape, jnp.float32) * s

    return {
        # LayerNorms (affine)
        "ln1_g": jnp.ones((1, embed_dim), jnp.float32),
        "ln1_b": jnp.zeros((1, embed_dim), jnp.float32),
        "ln2_g": jnp.ones((1, embed_dim), jnp.float32),
        "ln2_b": jnp.zeros((1, embed_dim), jnp.float32),
        # q_mid (1 layer), e_mid (1 layer)
        "wq": w(ks[0], (embed_dim, hid_dim)), "bq": w(ks[1], (1, hid_dim)),
        "we": w(ks[2], (embed_dim, hid_dim)), "be": w(ks[3], (1, hid_dim)),
        # w_mid (2 layers)
        "ww1": w(ks[4], (embed_dim, hid_dim)), "bw1": w(ks[5], (1, hid_dim)),
        "ww2": w(ks[6], (hid_dim, hid_dim)),   "bw2": w(ks[7], (1, hid_dim)),
        # fc_out
        "wfc": w(ks[8], (hid_dim, embed_dim)), "bfc": w(ks[9], (1, embed_dim)),
        # block MLP (2 layers, embed -> embed, residual)
        "wm1": w(ks[10], (embed_dim, embed_dim)), "bm1": w(ks[11], (1, embed_dim)),
        "wm2": w(ks[12], (embed_dim, embed_dim)), "bm2": w(ks[13], (1, embed_dim)),
    }


def reference(fx, p):
    """Pure f32 JAX reference (same math as the PyTorch module spec)."""
    def ln(x, g, b):
        mu = x.mean(-1, keepdims=True)
        var = ((x - mu) ** 2).mean(-1, keepdims=True)
        return (x - mu) / jnp.sqrt(var + EPS) * g + b

    ln1 = ln(fx, p["ln1_g"][0], p["ln1_b"][0])
    q = ln1 @ p["wq"] + p["bq"][0]
    e = ln1 @ p["we"] + p["be"][0]
    h = jax.nn.gelu(ln1 @ p["ww1"] + p["bw1"][0], approximate=True)
    wmid = h @ p["ww2"] + p["bw2"][0]
    weight = jnp.einsum("btlm,btln->btmn", q, e)
    attn = jax.nn.softmax(weight, axis=-1)
    w = jnp.einsum("btpm,btms->btps", wmid, attn)
    attn_out = w @ p["wfc"] + p["bfc"][0]
    fx2 = attn_out + fx
    ln2 = ln(fx2, p["ln2_g"][0], p["ln2_b"][0])
    m = jax.nn.gelu(ln2 @ p["wm1"] + p["bm1"][0], approximate=True)
    m = m @ p["wm2"] + p["bm2"][0]
    return (m + ln2) + fx2


if __name__ == "__main__":
    B, T, L, embed_dim, hid_dim = 2, 2, 8, 32, 64

    key = jax.random.PRNGKey(0)
    k_fx, k_p = jax.random.split(key)
    fx = jax.random.normal(k_fx, (B, T, L, embed_dim), jnp.float32)
    params = make_params(k_p, embed_dim, hid_dim)

    out = transolver_block(fx, params)
    out = jax.block_until_ready(out)

    ref = reference(fx, params)
    assert out.shape == (B, T, L, embed_dim)
    # Tolerance accounts for bf16 matmul inputs (f32 accumulation) and the
    # approximate softmax reciprocal; f32-only math would pass 1e-4.
    assert jnp.allclose(out, ref, rtol=1e-2, atol=1e-2), \
        f"max abs err {jnp.max(jnp.abs(out - ref))}"

    print("KERNEL_OK")
</pallas_src>

<mosaic_0001>
module attributes {stable_mosaic.version = 11 : i64} {
  func.func @transolver_kernel(%arg0: i32, %arg1: memref<16x32xf32, #tpu.memory_space<vmem>>, %arg2: memref<1x32xf32, #tpu.memory_space<vmem>>, %arg3: memref<1x32xf32, #tpu.memory_space<vmem>>, %arg4: memref<32x192xbf16, #tpu.memory_space<vmem>>, %arg5: memref<1x192xf32, #tpu.memory_space<vmem>>, %arg6: memref<64x64xbf16, #tpu.memory_space<vmem>>, %arg7: memref<1x64xf32, #tpu.memory_space<vmem>>, %arg8: memref<64x32xbf16, #tpu.memory_space<vmem>>, %arg9: memref<1x32xf32, #tpu.memory_space<vmem>>, %arg10: memref<1x32xf32, #tpu.memory_space<vmem>>, %arg11: memref<1x32xf32, #tpu.memory_space<vmem>>, %arg12: memref<32x32xbf16, #tpu.memory_space<vmem>>, %arg13: memref<1x32xf32, #tpu.memory_space<vmem>>, %arg14: memref<32x32xbf16, #tpu.memory_space<vmem>>, %arg15: memref<1x32xf32, #tpu.memory_space<vmem>>, %arg16: memref<16x32xf32, #tpu.memory_space<vmem>>) attributes {dimension_semantics = [#tpu.dimension_semantics<parallel>], iteration_bounds = array<i64: 2>, scalar_prefetch = 0 : i64, scratch_operands = 0 : i64, tpu.core_type = #tpu.core_type<tc>, window_params = [{transform_indices = @transform_0, window_bounds = array<i64: 16, 32>}, {pipeline_mode = #tpu.pipeline_mode<synchronous>, transform_indices = @transform_1, window_bounds = array<i64: 1, 32>}, {pipeline_mode = #tpu.pipeline_mode<synchronous>, transform_indices = @transform_2, window_bounds = array<i64: 1, 32>}, {pipeline_mode = #tpu.pipeline_mode<synchronous>, transform_indices = @transform_3, window_bounds = array<i64: 32, 192>}, {pipeline_mode = #tpu.pipeline_mode<synchronous>, transform_indices = @transform_4, window_bounds = array<i64: 1, 192>}, {pipeline_mode = #tpu.pipeline_mode<synchronous>, transform_indices = @transform_5, window_bounds = array<i64: 64, 64>}, {pipeline_mode = #tpu.pipeline_mode<synchronous>, transform_indices = @transform_6, window_bounds = array<i64: 1, 64>}, {pipeline_mode = #tpu.pipeline_mode<synchronous>, transform_indices = @transform_7, window_bounds = array<i64: 64, 32>}, {pipeline_mode = #tpu.pipeline_mode<synchronous>, transform_indices = @transform_8, window_bounds = array<i64: 1, 32>}, {pipeline_mode = #tpu.pipeline_mode<synchronous>, transform_indices = @transform_9, window_bounds = array<i64: 1, 32>}, {pipeline_mode = #tpu.pipeline_mode<synchronous>, transform_indices = @transform_10, window_bounds = array<i64: 1, 32>}, {pipeline_mode = #tpu.pipeline_mode<synchronous>, transform_indices = @transform_11, window_bounds = array<i64: 32, 32>}, {pipeline_mode = #tpu.pipeline_mode<synchronous>, transform_indices = @transform_12, window_bounds = array<i64: 1, 32>}, {pipeline_mode = #tpu.pipeline_mode<synchronous>, transform_indices = @transform_13, window_bounds = array<i64: 32, 32>}, {pipeline_mode = #tpu.pipeline_mode<synchronous>, transform_indices = @transform_14, window_bounds = array<i64: 1, 32>}, {transform_indices = @transform_15, window_bounds = array<i64: 16, 32>}]} {
    %c0 = arith.constant 0 : index
    %c0_0 = arith.constant 0 : index
    %0 = vector.load %arg1[%c0, %c0_0] : memref<16x32xf32, #tpu.memory_space<vmem>>, vector<16x32xf32>
    %c0_1 = arith.constant 0 : index
    %c0_2 = arith.constant 0 : index
    %1 = vector.load %arg2[%c0_1, %c0_2] : memref<1x32xf32, #tpu.memory_space<vmem>>, vector<1x32xf32>
    %c0_3 = arith.constant 0 : index
    %c0_4 = arith.constant 0 : index
    %2 = vector.load %arg3[%c0_3, %c0_4] : memref<1x32xf32, #tpu.memory_space<vmem>>, vector<1x32xf32>
    %cst = arith.constant dense<0.000000e+00> : vector<16xf32>
    %3 = vector.multi_reduction <add>, %0, %cst [1] : vector<16x32xf32> to vector<16xf32>
    %4 = vector.shape_cast %3 : vector<16xf32> to vector<16x1xf32>
    %cst_5 = arith.constant 3.200000e+01 : f32
    %5 = vector.broadcast %cst_5 : f32 to vector<16x1xf32>
    %6 = arith.divf %4, %5 : vector<16x1xf32>
    %7 = vector.broadcast %6 : vector<16x1xf32> to vector<16x32xf32>
    %8 = arith.subf %0, %7 : vector<16x32xf32>
    %9 = arith.mulf %8, %8 : vector<16x32xf32>
    %cst_6 = arith.constant dense<0.000000e+00> : vector<16xf32>
    %10 = vector.multi_reduction <add>, %9, %cst_6 [1] : vector<16x32xf32> to vector<16xf32>
    %11 = vector.shape_cast %10 : vector<16xf32> to vector<16x1xf32>
    %cst_7 = arith.constant 3.200000e+01 : f32
    %12 = vector.broadcast %cst_7 : f32 to vector<16x1xf32>
    %13 = arith.divf %11, %12 : vector<16x1xf32>
    %14 = vector.broadcast %6 : vector<16x1xf32> to vector<16x32xf32>
    %15 = arith.subf %0, %14 : vector<16x32xf32>
    %cst_8 = arith.constant 9.99999974E-6 : f32
    %16 = vector.broadcast %cst_8 : f32 to vector<16x1xf32>
    %17 = arith.addf %13, %16 : vector<16x1xf32>
    %18 = math.rsqrt %17 : vector<16x1xf32>
    %19 = vector.broadcast %18 : vector<16x1xf32> to vector<16x32xf32>
    %20 = arith.mulf %15, %19 : vector<16x32xf32>
    %21 = vector.broadcast %1 : vector<1x32xf32> to vector<16x32xf32>
    %22 = arith.mulf %20, %21 : vector<16x32xf32>
    %23 = vector.broadcast %2 : vector<1x32xf32> to vector<16x32xf32>
    %24 = arith.addf %22, %23 : vector<16x32xf32>
    %25 = arith.truncf %24 : vector<16x32xf32> to vector<16x32xbf16>
    %c0_9 = arith.constant 0 : index
    %c0_10 = arith.constant 0 : index
    %26 = vector.load %arg4[%c0_9, %c0_10] : memref<32x192xbf16, #tpu.memory_space<vmem>>, vector<32x192xbf16>
    %cst_11 = arith.constant dense<0.000000e+00> : vector<16x192xf32>
    %27 = tpu.matmul %25, %26, %cst_11 {dimension_numbers = #tpu.dot_dimension_numbers<[1], [0], [0], [1], [0, 0, 1, 1], [], []>} : vector<16x32xbf16>, vector<32x192xbf16>, vector<16x192xf32> -> vector<16x192xf32>
    %c0_12 = arith.constant 0 : index
    %c0_13 = arith.constant 0 : index
    %28 = vector.load %arg5[%c0_12, %c0_13] : memref<1x192xf32, #tpu.memory_space<vmem>>, vector<1x192xf32>
    %29 = vector.broadcast %28 : vector<1x192xf32> to vector<16x192xf32>
    %30 = arith.addf %27, %29 : vector<16x192xf32>
    %31 = vector.extract_strided_slice %30 {offsets = [0, 0], sizes = [16, 64], strides = [1, 1]} : vector<16x192xf32> to vector<16x64xf32>
    %32 = vector.extract_strided_slice %30 {offsets = [0, 64], sizes = [16, 64], strides = [1, 1]} : vector<16x192xf32> to vector<16x64xf32>
    %33 = vector.extract_strided_slice %30 {offsets = [0, 128], sizes = [16, 64], strides = [1, 1]} : vector<16x192xf32> to vector<16x64xf32>
    %34 = arith.mulf %33, %33 : vector<16x64xf32>
    %35 = arith.mulf %33, %34 : vector<16x64xf32>
    %cst_14 = arith.constant 4.471500e-02 : f32
    %36 = vector.broadcast %cst_14 : f32 to vector<16x64xf32>
    %37 = arith.mulf %36, %35 : vector<16x64xf32>
    %38 = arith.addf %33, %37 : vector<16x64xf32>
    %cst_15 = arith.constant 0.797884583 : f32
    %39 = vector.broadcast %cst_15 : f32 to vector<16x64xf32>
    %40 = arith.mulf %39, %38 : vector<16x64xf32>
    %41 = math.tanh %40 : vector<16x64xf32>
    %cst_16 = arith.constant 1.000000e+00 : f32
    %42 = vector.broadcast %cst_16 : f32 to vector<16x64xf32>
    %43 = arith.addf %42, %41 : vector<16x64xf32>
    %cst_17 = arith.constant 5.000000e-01 : f32
    %44 = vector.broadcast %cst_17 : f32 to vector<16x64xf32>
    %45 = arith.mulf %44, %43 : vector<16x64xf32>
    %46 = arith.mulf %33, %45 : vector<16x64xf32>
    %47 = arith.truncf %46 : vector<16x64xf32> to vector<16x64xbf16>
    %c0_18 = arith.constant 0 : index
    %c0_19 = arith.constant 0 : index
    %48 = vector.load %arg6[%c0_18, %c0_19] : memref<64x64xbf16, #tpu.memory_space<vmem>>, vector<64x64xbf16>
    %cst_20 = arith.constant dense<0.000000e+00> : vector<16x64xf32>
    %49 = tpu.matmul %47, %48, %cst_20 {dimension_numbers = #tpu.dot_dimension_numbers<[1], [0], [0], [1], [0, 0, 1, 1], [], []>} : vector<16x64xbf16>, vector<64x64xbf16>, vector<16x64xf32> -> vector<16x64xf32>
    %c0_21 = arith.constant 0 : index
    %c0_22 = arith.constant 0 : index
    %50 = vector.load %arg7[%c0_21, %c0_22] : memref<1x64xf32, #tpu.memory_space<vmem>>, vector<1x64xf32>
    %51 = vector.broadcast %50 : vector<1x64xf32> to vector<16x64xf32>
    %52 = arith.addf %49, %51 : vector<16x64xf32>
    %53 = vector.shape_cast %31 : vector<16x64xf32> to vector<2x8x64xf32>
    %54 = arith.truncf %53 : vector<2x8x64xf32> to vector<2x8x64xbf16>
    %55 = vector.shape_cast %32 : vector<16x64xf32> to vector<2x8x64xf32>
    %56 = arith.truncf %55 : vector<2x8x64xf32> to vector<2x8x64xbf16>
    %57 = vector.shape_cast %52 : vector<16x64xf32> to vector<2x8x64xf32>
    %58 = arith.truncf %57 : vector<2x8x64xf32> to vector<2x8x64xbf16>
    %cst_23 = arith.constant dense<0.000000e+00> : vector<2x64x64xf32>
    %59 = tpu.matmul %54, %56, %cst_23 {dimension_numbers = #tpu.dot_dimension_numbers<[1], [1], [2], [2], [0, 0, 0, 2, 1, 2], [0], [0]>} : vector<2x8x64xbf16>, vector<2x8x64xbf16>, vector<2x64x64xf32> -> vector<2x64x64xf32>
    %cst_24 = arith.constant dense<0xFF800000> : vector<2x64xf32>
    %60 = vector.multi_reduction <maximumf>, %59, %cst_24 [2] : vector<2x64x64xf32> to vector<2x64xf32>
    %61 = vector.shape_cast %60 : vector<2x64xf32> to vector<2x64x1xf32>
    %62 = vector.broadcast %61 : vector<2x64x1xf32> to vector<2x64x64xf32>
    %63 = arith.subf %59, %62 : vector<2x64x64xf32>
    %64 = math.exp %63 : vector<2x64x64xf32>
    %cst_25 = arith.constant dense<0.000000e+00> : vector<2x64xf32>
    %65 = vector.multi_reduction <add>, %64, %cst_25 [2] : vector<2x64x64xf32> to vector<2x64xf32>
    %66 = vector.shape_cast %65 : vector<2x64xf32> to vector<2x64x1xf32>
    %67 = tpu.reciprocal %66 {approx = true} : vector<2x64x1xf32> -> vector<2x64x1xf32>
    %68 = vector.broadcast %67 : vector<2x64x1xf32> to vector<2x64x64xf32>
    %69 = arith.mulf %64, %68 : vector<2x64x64xf32>
    %70 = arith.truncf %69 : vector<2x64x64xf32> to vector<2x64x64xbf16>
    %cst_26 = arith.constant dense<0.000000e+00> : vector<2x8x64xf32>
    %71 = tpu.matmul %58, %70, %cst_26 {dimension_numbers = #tpu.dot_dimension_numbers<[2], [1], [1], [2], [0, 0, 0, 1, 1, 2], [0], [0]>} : vector<2x8x64xbf16>, vector<2x64x64xbf16>, vector<2x8x64xf32> -> vector<2x8x64xf32>
    %72 = vector.shape_cast %71 : vector<2x8x64xf32> to vector<16x64xf32>
    %73 = arith.truncf %72 : vector<16x64xf32> to vector<16x64xbf16>
    %c0_27 = arith.constant 0 : index
    %c0_28 = arith.constant 0 : index
    %74 = vector.load %arg8[%c0_27, %c0_28] : memref<64x32xbf16, #tpu.memory_space<vmem>>, vector<64x32xbf16>
    %cst_29 = arith.constant dense<0.000000e+00> : vector<16x32xf32>
    %75 = tpu.matmul %73, %74, %cst_29 {dimension_numbers = #tpu.dot_dimension_numbers<[1], [0], [0], [1], [0, 0, 1, 1], [], []>} : vector<16x64xbf16>, vector<64x32xbf16>, vector<16x32xf32> -> vector<16x32xf32>
    %c0_30 = arith.constant 0 : index
    %c0_31 = arith.constant 0 : index
    %76 = vector.load %arg9[%c0_30, %c0_31] : memref<1x32xf32, #tpu.memory_space<vmem>>, vector<1x32xf32>
    %77 = vector.broadcast %76 : vector<1x32xf32> to vector<16x32xf32>
    %78 = arith.addf %75, %77 : vector<16x32xf32>
    %79 = arith.addf %78, %0 : vector<16x32xf32>
    %c0_32 = arith.constant 0 : index
    %c0_33 = arith.constant 0 : index
    %80 = vector.load %arg10[%c0_32, %c0_33] : memref<1x32xf32, #tpu.memory_space<vmem>>, vector<1x32xf32>
    %c0_34 = arith.constant 0 : index
    %c0_35 = arith.constant 0 : index
    %81 = vector.load %arg11[%c0_34, %c0_35] : memref<1x32xf32, #tpu.memory_space<vmem>>, vector<1x32xf32>
    %cst_36 = arith.constant dense<0.000000e+00> : vector<16xf32>
    %82 = vector.multi_reduction <add>, %79, %cst_36 [1] : vector<16x32xf32> to vector<16xf32>
    %83 = vector.shape_cast %82 : vector<16xf32> to vector<16x1xf32>
    %cst_37 = arith.constant 3.200000e+01 : f32
    %84 = vector.broadcast %cst_37 : f32 to vector<16x1xf32>
    %85 = arith.divf %83, %84 : vector<16x1xf32>
    %86 = vector.broadcast %85 : vector<16x1xf32> to vector<16x32xf32>
    %87 = arith.subf %79, %86 : vector<16x32xf32>
    %88 = arith.mulf %87, %87 : vector<16x32xf32>
    %cst_38 = arith.constant dense<0.000000e+00> : vector<16xf32>
    %89 = vector.multi_reduction <add>, %88, %cst_38 [1] : vector<16x32xf32> to vector<16xf32>
    %90 = vector.shape_cast %89 : vector<16xf32> to vector<16x1xf32>
    %cst_39 = arith.constant 3.200000e+01 : f32
    %91 = vector.broadcast %cst_39 : f32 to vector<16x1xf32>
    %92 = arith.divf %90, %91 : vector<16x1xf32>
    %93 = vector.broadcast %85 : vector<16x1xf32> to vector<16x32xf32>
    %94 = arith.subf %79, %93 : vector<16x32xf32>
    %cst_40 = arith.constant 9.99999974E-6 : f32
    %95 = vector.broadcast %cst_40 : f32 to vector<16x1xf32>
    %96 = arith.addf %92, %95 : vector<16x1xf32>
    %97 = math.rsqrt %96 : vector<16x1xf32>
    %98 = vector.broadcast %97 : vector<16x1xf32> to vector<16x32xf32>
    %99 = arith.mulf %94, %98 : vector<16x32xf32>
    %100 = vector.broadcast %80 : vector<1x32xf32> to vector<16x32xf32>
    %101 = arith.mulf %99, %100 : vector<16x32xf32>
    %102 = vector.broadcast %81 : vector<1x32xf32> to vector<16x32xf32>
    %103 = arith.addf %101, %102 : vector<16x32xf32>
    %104 = arith.truncf %103 : vector<16x32xf32> to vector<16x32xbf16>
    %c0_41 = arith.constant 0 : index
    %c0_42 = arith.constant 0 : index
    %105 = vector.load %arg12[%c0_41, %c0_42] : memref<32x32xbf16, #tpu.memory_space<vmem>>, vector<32x32xbf16>
    %cst_43 = arith.constant dense<0.000000e+00> : vector<16x32xf32>
    %106 = tpu.matmul %104, %105, %cst_43 {dimension_numbers = #tpu.dot_dimension_numbers<[1], [0], [0], [1], [0, 0, 1, 1], [], []>} : vector<16x32xbf16>, vector<32x32xbf16>, vector<16x32xf32> -> vector<16x32xf32>
    %c0_44 = arith.constant 0 : index
    %c0_45 = arith.constant 0 : index
    %107 = vector.load %arg13[%c0_44, %c0_45] : memref<1x32xf32, #tpu.memory_space<vmem>>, vector<1x32xf32>
    %108 = vector.broadcast %107 : vector<1x32xf32> to vector<16x32xf32>
    %109 = arith.addf %106, %108 : vector<16x32xf32>
    %110 = arith.mulf %109, %109 : vector<16x32xf32>
    %111 = arith.mulf %109, %110 : vector<16x32xf32>
    %cst_46 = arith.constant 4.471500e-02 : f32
    %112 = vector.broadcast %cst_46 : f32 to vector<16x32xf32>
    %113 = arith.mulf %112, %111 : vector<16x32xf32>
    %114 = arith.addf %109, %113 : vector<16x32xf32>
    %cst_47 = arith.constant 0.797884583 : f32
    %115 = vector.broadcast %cst_47 : f32 to vector<16x32xf32>
    %116 = arith.mulf %115, %114 : vector<16x32xf32>
    %117 = math.tanh %116 : vector<16x32xf32>
    %cst_48 = arith.constant 1.000000e+00 : f32
    %118 = vector.broadcast %cst_48 : f32 to vector<16x32xf32>
    %119 = arith.addf %118, %117 : vector<16x32xf32>
    %cst_49 = arith.constant 5.000000e-01 : f32
    %120 = vector.broadcast %cst_49 : f32 to vector<16x32xf32>
    %121 = arith.mulf %120, %119 : vector<16x32xf32>
    %122 = arith.mulf %109, %121 : vector<16x32xf32>
    %123 = arith.truncf %122 : vector<16x32xf32> to vector<16x32xbf16>
    %c0_50 = arith.constant 0 : index
    %c0_51 = arith.constant 0 : index
    %124 = vector.load %arg14[%c0_50, %c0_51] : memref<32x32xbf16, #tpu.memory_space<vmem>>, vector<32x32xbf16>
    %cst_52 = arith.constant dense<0.000000e+00> : vector<16x32xf32>
    %125 = tpu.matmul %123, %124, %cst_52 {dimension_numbers = #tpu.dot_dimension_numbers<[1], [0], [0], [1], [0, 0, 1, 1], [], []>} : vector<16x32xbf16>, vector<32x32xbf16>, vector<16x32xf32> -> vector<16x32xf32>
    %c0_53 = arith.constant 0 : index
    %c0_54 = arith.constant 0 : index
    %126 = vector.load %arg15[%c0_53, %c0_54] : memref<1x32xf32, #tpu.memory_space<vmem>>, vector<1x32xf32>
    %127 = vector.broadcast %126 : vector<1x32xf32> to vector<16x32xf32>
    %128 = arith.addf %125, %127 : vector<16x32xf32>
    %129 = arith.addf %128, %103 : vector<16x32xf32>
    %130 = arith.addf %129, %79 : vector<16x32xf32>
    %c0_55 = arith.constant 0 : index
    %c0_56 = arith.constant 0 : index
    %131 = vector.load %arg16[%c0_55, %c0_56] : memref<16x32xf32, #tpu.memory_space<vmem>>, vector<16x32xf32>
    tpu.vector_store %arg16[%c0_55, %c0_56], %130 {strides = array<i32>} : memref<16x32xf32, #tpu.memory_space<vmem>>, vector<16x32xf32>,
    return
  }
  func.func @transform_0(%arg0: i32) -> (i32, i32) {
    %c0_i32 = arith.constant 0 : i32
    %c0_i32_0 = arith.constant 0 : i32
    return %arg0, %c0_i32 : i32, i32
  }
  func.func @transform_1(%arg0: i32) -> (i32, i32) {
    %c0_i32 = arith.constant 0 : i32
    %c0_i32_0 = arith.constant 0 : i32
    %c0_i32_1 = arith.constant 0 : i32
    return %c0_i32, %c0_i32_0 : i32, i32
  }
  func.func @transform_2(%arg0: i32) -> (i32, i32) {
    %c0_i32 = arith.constant 0 : i32
    %c0_i32_0 = arith.constant 0 : i32
    %c0_i32_1 = arith.constant 0 : i32
    return %c0_i32, %c0_i32_0 : i32, i32
  }
  func.func @transform_3(%arg0: i32) -> (i32, i32) {
    %c0_i32 = arith.constant 0 : i32
    %c0_i32_0 = arith.constant 0 : i32
    %c0_i32_1 = arith.constant 0 : i32
    return %c0_i32, %c0_i32_0 : i32, i32
  }
  func.func @transform_4(%arg0: i32) -> (i32, i32) {
    %c0_i32 = arith.constant 0 : i32
    %c0_i32_0 = arith.constant 0 : i32
    %c0_i32_1 = arith.constant 0 : i32
    return %c0_i32, %c0_i32_0 : i32, i32
  }
  func.func @transform_5(%arg0: i32) -> (i32, i32) {
    %c0_i32 = arith.constant 0 : i32
    %c0_i32_0 = arith.constant 0 : i32
    %c0_i32_1 = arith.constant 0 : i32
    return %c0_i32, %c0_i32_0 : i32, i32
  }
  func.func @transform_6(%arg0: i32) -> (i32, i32) {
    %c0_i32 = arith.constant 0 : i32
    %c0_i32_0 = arith.constant 0 : i32
    %c0_i32_1 = arith.constant 0 : i32
    return %c0_i32, %c0_i32_0 : i32, i32
  }
  func.func @transform_7(%arg0: i32) -> (i32, i32) {
    %c0_i32 = arith.constant 0 : i32
    %c0_i32_0 = arith.constant 0 : i32
    %c0_i32_1 = arith.constant 0 : i32
    return %c0_i32, %c0_i32_0 : i32, i32
  }
  func.func @transform_8(%arg0: i32) -> (i32, i32) {
    %c0_i32 = arith.constant 0 : i32
    %c0_i32_0 = arith.constant 0 : i32
    %c0_i32_1 = arith.constant 0 : i32
    return %c0_i32, %c0_i32_0 : i32, i32
  }
  func.func @transform_9(%arg0: i32) -> (i32, i32) {
    %c0_i32 = arith.constant 0 : i32
    %c0_i32_0 = arith.constant 0 : i32
    %c0_i32_1 = arith.constant 0 : i32
    return %c0_i32, %c0_i32_0 : i32, i32
  }
  func.func @transform_10(%arg0: i32) -> (i32, i32) {
    %c0_i32 = arith.constant 0 : i32
    %c0_i32_0 = arith.constant 0 : i32
    %c0_i32_1 = arith.constant 0 : i32
    return %c0_i32, %c0_i32_0 : i32, i32
  }
  func.func @transform_11(%arg0: i32) -> (i32, i32) {
    %c0_i32 = arith.constant 0 : i32
    %c0_i32_0 = arith.constant 0 : i32
    %c0_i32_1 = arith.constant 0 : i32
    return %c0_i32, %c0_i32_0 : i32, i32
  }
  func.func @transform_12(%arg0: i32) -> (i32, i32) {
    %c0_i32 = arith.constant 0 : i32
    %c0_i32_0 = arith.constant 0 : i32
    %c0_i32_1 = arith.constant 0 : i32
    return %c0_i32, %c0_i32_0 : i32, i32
  }
  func.func @transform_13(%arg0: i32) -> (i32, i32) {
    %c0_i32 = arith.constant 0 : i32
    %c0_i32_0 = arith.constant 0 : i32
    %c0_i32_1 = arith.constant 0 : i32
    return %c0_i32, %c0_i32_0 : i32, i32
  }
  func.func @transform_14(%arg0: i32) -> (i32, i32) {
    %c0_i32 = arith.constant 0 : i32
    %c0_i32_0 = arith.constant 0 : i32
    %c0_i32_1 = arith.constant 0 : i32
    return %c0_i32, %c0_i32_0 : i32, i32
  }
  func.func @transform_15(%arg0: i32) -> (i32, i32) {
    %c0_i32 = arith.constant 0 : i32
    %c0_i32_0 = arith.constant 0 : i32
    return %arg0, %c0_i32 : i32, i32
  }
}

module attributes {stable_mosaic.version = 11 : i64} {
  func.func @transolver_kernel(%arg0: i32, %arg1: memref<16x32xf32, #tpu.memory_space<vmem>>, %arg2: memref<1x32xf32, #tpu.memory_space<vmem>>, %arg3: memref<1x32xf32, #tpu.memory_space<vmem>>, %arg4: memref<32x192xbf16, #tpu.memory_space<vmem>>, %arg5: memref<1x192xf32, #tpu.memory_space<vmem>>, %arg6: memref<64x64xbf16, #tpu.memory_space<vmem>>, %arg7: memref<1x64xf32, #tpu.memory_space<vmem>>, %arg8: memref<64x32xbf16, #tpu.memory_space<vmem>>, %arg9: memref<1x32xf32, #tpu.memory_space<vmem>>, %arg10: memref<1x32xf32, #tpu.memory_space<vmem>>, %arg11: memref<1x32xf32, #tpu.memory_space<vmem>>, %arg12: memref<32x32xbf16, #tpu.memory_space<vmem>>, %arg13: memref<1x32xf32, #tpu.memory_space<vmem>>, %arg14: memref<32x32xbf16, #tpu.memory_space<vmem>>, %arg15: memref<1x32xf32, #tpu.memory_space<vmem>>, %arg16: memref<16x32xf32, #tpu.memory_space<vmem>>) attributes {dimension_semantics = [#tpu.dimension_semantics<parallel>], iteration_bounds = array<i64: 2>, scalar_prefetch = 0 : i64, scratch_operands = 0 : i64, tpu.core_type = #tpu.core_type<tc>, window_params = [{transform_indices = @transform_0, window_bounds = array<i64: 16, 32>}, {pipeline_mode = #tpu.pipeline_mode<synchronous>, transform_indices = @transform_1, window_bounds = array<i64: 1, 32>}, {pipeline_mode = #tpu.pipeline_mode<synchronous>, transform_indices = @transform_2, window_bounds = array<i64: 1, 32>}, {pipeline_mode = #tpu.pipeline_mode<synchronous>, transform_indices = @transform_3, window_bounds = array<i64: 32, 192>}, {pipeline_mode = #tpu.pipeline_mode<synchronous>, transform_indices = @transform_4, window_bounds = array<i64: 1, 192>}, {pipeline_mode = #tpu.pipeline_mode<synchronous>, transform_indices = @transform_5, window_bounds = array<i64: 64, 64>}, {pipeline_mode = #tpu.pipeline_mode<synchronous>, transform_indices = @transform_6, window_bounds = array<i64: 1, 64>}, {pipeline_mode = #tpu.pipeline_mode<synchronous>, transform_indices = @transform_7, window_bounds = array<i64: 64, 32>}, {pipeline_mode = #tpu.pipeline_mode<synchronous>, transform_indices = @transform_8, window_bounds = array<i64: 1, 32>}, {pipeline_mode = #tpu.pipeline_mode<synchronous>, transform_indices = @transform_9, window_bounds = array<i64: 1, 32>}, {pipeline_mode = #tpu.pipeline_mode<synchronous>, transform_indices = @transform_10, window_bounds = array<i64: 1, 32>}, {pipeline_mode = #tpu.pipeline_mode<synchronous>, transform_indices = @transform_11, window_bounds = array<i64: 32, 32>}, {pipeline_mode = #tpu.pipeline_mode<synchronous>, transform_indices = @transform_12, window_bounds = array<i64: 1, 32>}, {pipeline_mode = #tpu.pipeline_mode<synchronous>, transform_indices = @transform_13, window_bounds = array<i64: 32, 32>}, {pipeline_mode = #tpu.pipeline_mode<synchronous>, transform_indices = @transform_14, window_bounds = array<i64: 1, 32>}, {transform_indices = @transform_15, window_bounds = array<i64: 16, 32>}]} {
    %c0 = arith.constant 0 : index
    %c0_0 = arith.constant 0 : index
    %0 = vector.load %arg1[%c0, %c0_0] : memref<16x32xf32, #tpu.memory_space<vmem>>, vector<16x32xf32>
    %c0_1 = arith.constant 0 : index
    %c0_2 = arith.constant 0 : index
    %1 = vector.load %arg2[%c0_1, %c0_2] : memref<1x32xf32, #tpu.memory_space<vmem>>, vector<1x32xf32>
    %c0_3 = arith.constant 0 : index
    %c0_4 = arith.constant 0 : index
    %2 = vector.load %arg3[%c0_3, %c0_4] : memref<1x32xf32, #tpu.memory_space<vmem>>, vector<1x32xf32>
    %cst = arith.constant dense<0.000000e+00> : vector<16xf32>
    %3 = vector.multi_reduction <add>, %0, %cst [1] : vector<16x32xf32> to vector<16xf32>
    %4 = vector.shape_cast %3 : vector<16xf32> to vector<16x1xf32>
    %cst_5 = arith.constant 3.200000e+01 : f32
    %5 = vector.broadcast %cst_5 : f32 to vector<16x1xf32>
    %6 = arith.divf %4, %5 : vector<16x1xf32>
    %7 = vector.broadcast %6 : vector<16x1xf32> to vector<16x32xf32>
    %8 = arith.subf %0, %7 : vector<16x32xf32>
    %9 = arith.mulf %8, %8 : vector<16x32xf32>
    %cst_6 = arith.constant dense<0.000000e+00> : vector<16xf32>
    %10 = vector.multi_reduction <add>, %9, %cst_6 [1] : vector<16x32xf32> to vector<16xf32>
    %11 = vector.shape_cast %10 : vector<16xf32> to vector<16x1xf32>
    %cst_7 = arith.constant 3.200000e+01 : f32
    %12 = vector.broadcast %cst_7 : f32 to vector<16x1xf32>
    %13 = arith.divf %11, %12 : vector<16x1xf32>
    %14 = vector.broadcast %6 : vector<16x1xf32> to vector<16x32xf32>
    %15 = arith.subf %0, %14 : vector<16x32xf32>
    %cst_8 = arith.constant 9.99999974E-6 : f32
    %16 = vector.broadcast %cst_8 : f32 to vector<16x1xf32>
    %17 = arith.addf %13, %16 : vector<16x1xf32>
    %18 = math.rsqrt %17 : vector<16x1xf32>
    %19 = vector.broadcast %18 : vector<16x1xf32> to vector<16x32xf32>
    %20 = arith.mulf %15, %19 : vector<16x32xf32>
    %21 = vector.broadcast %1 : vector<1x32xf32> to vector<16x32xf32>
    %22 = arith.mulf %20, %21 : vector<16x32xf32>
    %23 = vector.broadcast %2 : vector<1x32xf32> to vector<16x32xf32>
    %24 = arith.addf %22, %23 : vector<16x32xf32>
    %25 = arith.truncf %24 : vector<16x32xf32> to vector<16x32xbf16>
    %c0_9 = arith.constant 0 : index
    %c0_10 = arith.constant 0 : index
    %26 = vector.load %arg4[%c0_9, %c0_10] : memref<32x192xbf16, #tpu.memory_space<vmem>>, vector<32x192xbf16>
    %cst_11 = arith.constant dense<0.000000e+00> : vector<16x192xf32>
    %27 = tpu.matmul %25, %26, %cst_11 {dimension_numbers = #tpu.dot_dimension_numbers<[1], [0], [0], [1], [0, 0, 1, 1], [], []>} : vector<16x32xbf16>, vector<32x192xbf16>, vector<16x192xf32> -> vector<16x192xf32>
    %c0_12 = arith.constant 0 : index
    %c0_13 = arith.constant 0 : index
    %28 = vector.load %arg5[%c0_12, %c0_13] : memref<1x192xf32, #tpu.memory_space<vmem>>, vector<1x192xf32>
    %29 = vector.broadcast %28 : vector<1x192xf32> to vector<16x192xf32>
    %30 = arith.addf %27, %29 : vector<16x192xf32>
    %31 = vector.extract_strided_slice %30 {offsets = [0, 0], sizes = [16, 64], strides = [1, 1]} : vector<16x192xf32> to vector<16x64xf32>
    %32 = vector.extract_strided_slice %30 {offsets = [0, 64], sizes = [16, 64], strides = [1, 1]} : vector<16x192xf32> to vector<16x64xf32>
    %33 = vector.extract_strided_slice %30 {offsets = [0, 128], sizes = [16, 64], strides = [1, 1]} : vector<16x192xf32> to vector<16x64xf32>
    %34 = arith.mulf %33, %33 : vector<16x64xf32>
    %35 = arith.mulf %33, %34 : vector<16x64xf32>
    %cst_14 = arith.constant 4.471500e-02 : f32
    %36 = vector.broadcast %cst_14 : f32 to vector<16x64xf32>
    %37 = arith.mulf %36, %35 : vector<16x64xf32>
    %38 = arith.addf %33, %37 : vector<16x64xf32>
    %cst_15 = arith.constant 0.797884583 : f32
    %39 = vector.broadcast %cst_15 : f32 to vector<16x64xf32>
    %40 = arith.mulf %39, %38 : vector<16x64xf32>
    %41 = math.tanh %40 : vector<16x64xf32>
    %cst_16 = arith.constant 1.000000e+00 : f32
    %42 = vector.broadcast %cst_16 : f32 to vector<16x64xf32>
    %43 = arith.addf %42, %41 : vector<16x64xf32>
    %cst_17 = arith.constant 5.000000e-01 : f32
    %44 = vector.broadcast %cst_17 : f32 to vector<16x64xf32>
    %45 = arith.mulf %44, %43 : vector<16x64xf32>
    %46 = arith.mulf %33, %45 : vector<16x64xf32>
    %47 = arith.truncf %46 : vector<16x64xf32> to vector<16x64xbf16>
    %c0_18 = arith.constant 0 : index
    %c0_19 = arith.constant 0 : index
    %48 = vector.load %arg6[%c0_18, %c0_19] : memref<64x64xbf16, #tpu.memory_space<vmem>>, vector<64x64xbf16>
    %cst_20 = arith.constant dense<0.000000e+00> : vector<16x64xf32>
    %49 = tpu.matmul %47, %48, %cst_20 {dimension_numbers = #tpu.dot_dimension_numbers<[1], [0], [0], [1], [0, 0, 1, 1], [], []>} : vector<16x64xbf16>, vector<64x64xbf16>, vector<16x64xf32> -> vector<16x64xf32>
    %c0_21 = arith.constant 0 : index
    %c0_22 = arith.constant 0 : index
    %50 = vector.load %arg7[%c0_21, %c0_22] : memref<1x64xf32, #tpu.memory_space<vmem>>, vector<1x64xf32>
    %51 = vector.broadcast %50 : vector<1x64xf32> to vector<16x64xf32>
    %52 = arith.addf %49, %51 : vector<16x64xf32>
    %53 = vector.shape_cast %31 : vector<16x64xf32> to vector<2x8x64xf32>
    %54 = arith.truncf %53 : vector<2x8x64xf32> to vector<2x8x64xbf16>
    %55 = vector.shape_cast %32 : vector<16x64xf32> to vector<2x8x64xf32>
    %56 = arith.truncf %55 : vector<2x8x64xf32> to vector<2x8x64xbf16>
    %57 = vector.shape_cast %52 : vector<16x64xf32> to vector<2x8x64xf32>
    %58 = arith.truncf %57 : vector<2x8x64xf32> to vector<2x8x64xbf16>
    %cst_23 = arith.constant dense<0.000000e+00> : vector<2x64x64xf32>
    %59 = tpu.matmul %54, %56, %cst_23 {dimension_numbers = #tpu.dot_dimension_numbers<[1], [1], [2], [2], [0, 0, 0, 2, 1, 2], [0], [0]>} : vector<2x8x64xbf16>, vector<2x8x64xbf16>, vector<2x64x64xf32> -> vector<2x64x64xf32>
    %cst_24 = arith.constant dense<0xFF800000> : vector<2x64xf32>
    %60 = vector.multi_reduction <maximumf>, %59, %cst_24 [2] : vector<2x64x64xf32> to vector<2x64xf32>
    %61 = vector.shape_cast %60 : vector<2x64xf32> to vector<2x64x1xf32>
    %62 = vector.broadcast %61 : vector<2x64x1xf32> to vector<2x64x64xf32>
    %63 = arith.subf %59, %62 : vector<2x64x64xf32>
    %64 = math.exp %63 : vector<2x64x64xf32>
    %cst_25 = arith.constant dense<0.000000e+00> : vector<2x64xf32>
    %65 = vector.multi_reduction <add>, %64, %cst_25 [2] : vector<2x64x64xf32> to vector<2x64xf32>
    %66 = vector.shape_cast %65 : vector<2x64xf32> to vector<2x64x1xf32>
    %67 = tpu.reciprocal %66 {approx = true} : vector<2x64x1xf32> -> vector<2x64x1xf32>
    %68 = vector.broadcast %67 : vector<2x64x1xf32> to vector<2x64x64xf32>
    %69 = arith.mulf %64, %68 : vector<2x64x64xf32>
    %70 = arith.truncf %69 : vector<2x64x64xf32> to vector<2x64x64xbf16>
    %cst_26 = arith.constant dense<0.000000e+00> : vector<2x8x64xf32>
    %71 = tpu.matmul %58, %70, %cst_26 {dimension_numbers = #tpu.dot_dimension_numbers<[2], [1], [1], [2], [0, 0, 0, 1, 1, 2], [0], [0]>} : vector<2x8x64xbf16>, vector<2x64x64xbf16>, vector<2x8x64xf32> -> vector<2x8x64xf32>
    %72 = vector.shape_cast %71 : vector<2x8x64xf32> to vector<16x64xf32>
    %73 = arith.truncf %72 : vector<16x64xf32> to vector<16x64xbf16>
    %c0_27 = arith.constant 0 : index
    %c0_28 = arith.constant 0 : index
    %74 = vector.load %arg8[%c0_27, %c0_28] : memref<64x32xbf16, #tpu.memory_space<vmem>>, vector<64x32xbf16>
    %cst_29 = arith.constant dense<0.000000e+00> : vector<16x32xf32>
    %75 = tpu.matmul %73, %74, %cst_29 {dimension_numbers = #tpu.dot_dimension_numbers<[1], [0], [0], [1], [0, 0, 1, 1], [], []>} : vector<16x64xbf16>, vector<64x32xbf16>, vector<16x32xf32> -> vector<16x32xf32>
    %c0_30 = arith.constant 0 : index
    %c0_31 = arith.constant 0 : index
    %76 = vector.load %arg9[%c0_30, %c0_31] : memref<1x32xf32, #tpu.memory_space<vmem>>, vector<1x32xf32>
    %77 = vector.broadcast %76 : vector<1x32xf32> to vector<16x32xf32>
    %78 = arith.addf %75, %77 : vector<16x32xf32>
    %79 = arith.addf %78, %0 : vector<16x32xf32>
    %c0_32 = arith.constant 0 : index
    %c0_33 = arith.constant 0 : index
    %80 = vector.load %arg10[%c0_32, %c0_33] : memref<1x32xf32, #tpu.memory_space<vmem>>, vector<1x32xf32>
    %c0_34 = arith.constant 0 : index
    %c0_35 = arith.constant 0 : index
    %81 = vector.load %arg11[%c0_34, %c0_35] : memref<1x32xf32, #tpu.memory_space<vmem>>, vector<1x32xf32>
    %cst_36 = arith.constant dense<0.000000e+00> : vector<16xf32>
    %82 = vector.multi_reduction <add>, %79, %cst_36 [1] : vector<16x32xf32> to vector<16xf32>
    %83 = vector.shape_cast %82 : vector<16xf32> to vector<16x1xf32>
    %cst_37 = arith.constant 3.200000e+01 : f32
    %84 = vector.broadcast %cst_37 : f32 to vector<16x1xf32>
    %85 = arith.divf %83, %84 : vector<16x1xf32>
    %86 = vector.broadcast %85 : vector<16x1xf32> to vector<16x32xf32>
    %87 = arith.subf %79, %86 : vector<16x32xf32>
    %88 = arith.mulf %87, %87 : vector<16x32xf32>
    %cst_38 = arith.constant dense<0.000000e+00> : vector<16xf32>
    %89 = vector.multi_reduction <add>, %88, %cst_38 [1] : vector<16x32xf32> to vector<16xf32>
    %90 = vector.shape_cast %89 : vector<16xf32> to vector<16x1xf32>
    %cst_39 = arith.constant 3.200000e+01 : f32
    %91 = vector.broadcast %cst_39 : f32 to vector<16x1xf32>
    %92 = arith.divf %90, %91 : vector<16x1xf32>
    %93 = vector.broadcast %85 : vector<16x1xf32> to vector<16x32xf32>
    %94 = arith.subf %79, %93 : vector<16x32xf32>
    %cst_40 = arith.constant 9.99999974E-6 : f32
    %95 = vector.broadcast %cst_40 : f32 to vector<16x1xf32>
    %96 = arith.addf %92, %95 : vector<16x1xf32>
    %97 = math.rsqrt %96 : vector<16x1xf32>
    %98 = vector.broadcast %97 : vector<16x1xf32> to vector<16x32xf32>
    %99 = arith.mulf %94, %98 : vector<16x32xf32>
    %100 = vector.broadcast %80 : vector<1x32xf32> to vector<16x32xf32>
    %101 = arith.mulf %99, %100 : vector<16x32xf32>
    %102 = vector.broadcast %81 : vector<1x32xf32> to vector<16x32xf32>
    %103 = arith.addf %101, %102 : vector<16x32xf32>
    %104 = arith.truncf %103 : vector<16x32xf32> to vector<16x32xbf16>
    %c0_41 = arith.constant 0 : index
    %c0_42 = arith.constant 0 : index
    %105 = vector.load %arg12[%c0_41, %c0_42] : memref<32x32xbf16, #tpu.memory_space<vmem>>, vector<32x32xbf16>
    %cst_43 = arith.constant dense<0.000000e+00> : vector<16x32xf32>
    %106 = tpu.matmul %104, %105, %cst_43 {dimension_numbers = #tpu.dot_dimension_numbers<[1], [0], [0], [1], [0, 0, 1, 1], [], []>} : vector<16x32xbf16>, vector<32x32xbf16>, vector<16x32xf32> -> vector<16x32xf32>
    %c0_44 = arith.constant 0 : index
    %c0_45 = arith.constant 0 : index
    %107 = vector.load %arg13[%c0_44, %c0_45] : memref<1x32xf32, #tpu.memory_space<vmem>>, vector<1x32xf32>
    %108 = vector.broadcast %107 : vector<1x32xf32> to vector<16x32xf32>
    %109 = arith.addf %106, %108 : vector<16x32xf32>
    %110 = arith.mulf %109, %109 : vector<16x32xf32>
    %111 = arith.mulf %109, %110 : vector<16x32xf32>
    %cst_46 = arith.constant 4.471500e-02 : f32
    %112 = vector.broadcast %cst_46 : f32 to vector<16x32xf32>
    %113 = arith.mulf %112, %111 : vector<16x32xf32>
    %114 = arith.addf %109, %113 : vector<16x32xf32>
    %cst_47 = arith.constant 0.797884583 : f32
    %115 = vector.broadcast %cst_47 : f32 to vector<16x32xf32>
    %116 = arith.mulf %115, %114 : vector<16x32xf32>
    %117 = math.tanh %116 : vector<16x32xf32>
    %cst_48 = arith.constant 1.000000e+00 : f32
    %118 = vector.broadcast %cst_48 : f32 to vector<16x32xf32>
    %119 = arith.addf %118, %117 : vector<16x32xf32>
    %cst_49 = arith.constant 5.000000e-01 : f32
    %120 = vector.broadcast %cst_49 : f32 to vector<16x32xf32>
    %121 = arith.mulf %120, %119 : vector<16x32xf32>
    %122 = arith.mulf %109, %121 : vector<16x32xf32>
    %123 = arith.truncf %122 : vector<16x32xf32> to vector<16x32xbf16>
    %c0_50 = arith.constant 0 : index
    %c0_51 = arith.constant 0 : index
    %124 = vector.load %arg14[%c0_50, %c0_51] : memref<32x32xbf16, #tpu.memory_space<vmem>>, vector<32x32xbf16>
    %cst_52 = arith.constant dense<0.000000e+00> : vector<16x32xf32>
    %125 = tpu.matmul %123, %124, %cst_52 {dimension_numbers = #tpu.dot_dimension_numbers<[1], [0], [0], [1], [0, 0, 1, 1], [], []>} : vector<16x32xbf16>, vector<32x32xbf16>, vector<16x32xf32> -> vector<16x32xf32>
    %c0_53 = arith.constant 0 : index
    %c0_54 = arith.constant 0 : index
    %126 = vector.load %arg15[%c0_53, %c0_54] : memref<1x32xf32, #tpu.memory_space<vmem>>, vector<1x32xf32>
    %127 = vector.broadcast %126 : vector<1x32xf32> to vector<16x32xf32>
    %128 = arith.addf %125, %127 : vector<16x32xf32>
    %129 = arith.addf %128, %103 : vector<16x32xf32>
    %130 = arith.addf %129, %79 : vector<16x32xf32>
    %c0_55 = arith.constant 0 : index
    %c0_56 = arith.constant 0 : index
    %131 = vector.load %arg16[%c0_55, %c0_56] : memref<16x32xf32, #tpu.memory_space<vmem>>, vector<16x32xf32>
    tpu.vector_store %arg16[%c0_55, %c0_56], %130 {strides = array<i32>} : memref<16x32xf32, #tpu.memory_space<vmem>>, vector<16x32xf32>,
    return
  }
  func.func @transform_0(%arg0: i32) -> (i32, i32) {
    %c0_i32 = arith.constant 0 : i32
    %c0_i32_0 = arith.constant 0 : i32
    return %arg0, %c0_i32 : i32, i32
  }
  func.func @transform_1(%arg0: i32) -> (i32, i32) {
    %c0_i32 = arith.constant 0 : i32
    %c0_i32_0 = arith.constant 0 : i32
    %c0_i32_1 = arith.constant 0 : i32
    return %c0_i32, %c0_i32_0 : i32, i32
  }
  func.func @transform_2(%arg0: i32) -> (i32, i32) {
    %c0_i32 = arith.constant 0 : i32
    %c0_i32_0 = arith.constant 0 : i32
    %c0_i32_1 = arith.constant 0 : i32
    return %c0_i32, %c0_i32_0 : i32, i32
  }
  func.func @transform_3(%arg0: i32) -> (i32, i32) {
    %c0_i32 = arith.constant 0 : i32
    %c0_i32_0 = arith.constant 0 : i32
    %c0_i32_1 = arith.constant 0 : i32
    return %c0_i32, %c0_i32_0 : i32, i32
  }
  func.func @transform_4(%arg0: i32) -> (i32, i32) {
    %c0_i32 = arith.constant 0 : i32
    %c0_i32_0 = arith.constant 0 : i32
    %c0_i32_1 = arith.constant 0 : i32
    return %c0_i32, %c0_i32_0 : i32, i32
  }
  func.func @transform_5(%arg0: i32) -> (i32, i32) {
    %c0_i32 = arith.constant 0 : i32
    %c0_i32_0 = arith.constant 0 : i32
    %c0_i32_1 = arith.constant 0 : i32
    return %c0_i32, %c0_i32_0 : i32, i32
  }
  func.func @transform_6(%arg0: i32) -> (i32, i32) {
    %c0_i32 = arith.constant 0 : i32
    %c0_i32_0 = arith.constant 0 : i32
    %c0_i32_1 = arith.constant 0 : i32
    return %c0_i32, %c0_i32_0 : i32, i32
  }
  func.func @transform_7(%arg0: i32) -> (i32, i32) {
    %c0_i32 = arith.constant 0 : i32
    %c0_i32_0 = arith.constant 0 : i32
    %c0_i32_1 = arith.constant 0 : i32
    return %c0_i32, %c0_i32_0 : i32, i32
  }
  func.func @transform_8(%arg0: i32) -> (i32, i32) {
    %c0_i32 = arith.constant 0 : i32
    %c0_i32_0 = arith.constant 0 : i32
    %c0_i32_1 = arith.constant 0 : i32
    return %c0_i32, %c0_i32_0 : i32, i32
  }
  func.func @transform_9(%arg0: i32) -> (i32, i32) {
    %c0_i32 = arith.constant 0 : i32
    %c0_i32_0 = arith.constant 0 : i32
    %c0_i32_1 = arith.constant 0 : i32
    return %c0_i32, %c0_i32_0 : i32, i32
  }
  func.func @transform_10(%arg0: i32) -> (i32, i32) {
    %c0_i32 = arith.constant 0 : i32
    %c0_i32_0 = arith.constant 0 : i32
    %c0_i32_1 = arith.constant 0 : i32
    return %c0_i32, %c0_i32_0 : i32, i32
  }
  func.func @transform_11(%arg0: i32) -> (i32, i32) {
    %c0_i32 = arith.constant 0 : i32
    %c0_i32_0 = arith.constant 0 : i32
    %c0_i32_1 = arith.constant 0 : i32
    return %c0_i32, %c0_i32_0 : i32, i32
  }
  func.func @transform_12(%arg0: i32) -> (i32, i32) {
    %c0_i32 = arith.constant 0 : i32
    %c0_i32_0 = arith.constant 0 : i32
    %c0_i32_1 = arith.constant 0 : i32
    return %c0_i32, %c0_i32_0 : i32, i32
  }
  func.func @transform_13(%arg0: i32) -> (i32, i32) {
    %c0_i32 = arith.constant 0 : i32
    %c0_i32_0 = arith.constant 0 : i32
    %c0_i32_1 = arith.constant 0 : i32
    return %c0_i32, %c0_i32_0 : i32, i32
  }
  func.func @transform_14(%arg0: i32) -> (i32, i32) {
    %c0_i32 = arith.constant 0 : i32
    %c0_i32_0 = arith.constant 0 : i32
    %c0_i32_1 = arith.constant 0 : i32
    return %c0_i32, %c0_i32_0 : i32, i32
  }
  func.func @transform_15(%arg0: i32) -> (i32, i32) {
    %c0_i32 = arith.constant 0 : i32
    %c0_i32_0 = arith.constant 0 : i32
    return %arg0, %c0_i32 : i32, i32
  }
}

</mosaic_0001>

<bundles_post_ra>
// kernel: tpu_custom_call.1
= control target key start
LH: loop header
LB: loop body
LE: loop exit
PB: predicated region body
PF: predicated region fallthrough
CT: control target
= control target key end

     0   :  { %s3148_s0 = inlined_call_operand.vmem [shape: f32[32,32], index: 0, kind: input, shape index: {}]   ;;  %s3149_s1 = inlined_call_operand.vmem [shape: f32[1,32], index: 1, kind: input, shape index: {}]   ;;  %s3150_s2 = inlined_call_operand.hbm [shape: f32[1,32], index: 2, kind: input, shape index: {}]   ;;  %s3151_s3 = inlined_call_operand.hbm [shape: bf16[32,192], index: 3, kind: input, shape index: {}]   ;;  %s3152_s4 = inlined_call_operand.hbm [shape: f32[1,192], index: 4, kind: input, shape index: {}]   ;;  %s3153_s5 = inlined_call_operand.vmem [shape: bf16[64,64], index: 5, kind: input, shape index: {}]   ;;  %s3154_s6 = inlined_call_operand.hbm [shape: f32[1,64], index: 6, kind: input, shape index: {}]   ;;  %s3155_s7 = inlined_call_operand.vmem [shape: bf16[64,32], index: 7, kind: input, shape index: {}]   ;;  %s3156_s8 = inlined_call_operand.hbm [shape: f32[1,32], index: 8, kind: input, shape index: {}]   ;;  %s3157_s9 = inlined_call_operand.hbm [shape: f32[1,32], index: 9, kind: input, shape index: {}]   ;;  %s3158_s10 = inlined_call_operand.hbm [shape: f32[1,32], index: 10, kind: input, shape index: {}]   ;;  %s3159_s11 = inlined_call_operand.vmem [shape: bf16[32,32], index: 11, kind: input, shape index: {}]   ;;  %s3160_s12 = inlined_call_operand.hbm [shape: f32[1,32], index: 12, kind: input, shape index: {}]   ;;  %s3161_s13 = inlined_call_operand.vmem [shape: bf16[32,32], index: 13, kind: input, shape index: {}]   ;;  %s3162_s14 = inlined_call_operand.vmem [shape: f32[1,32], index: 14, kind: input, shape index: {}]   ;;  %s3163_s15 = inlined_call_operand.hbm [shape: f32[32,32], index: 15, kind: output, shape index: {}]  }
   0x1   :  { %3178 = sst [smem:[#allocation31_spill]] %s3161_s13 }
   0x2   :  { %3179 = sst [smem:[#allocation32_spill]] %s3162_s14 }
   0x3   :  { %3180 = sst [smem:[#allocation33_spill]] %s3163_s15 }
   0x4   :  { %20 = vsyncpa [#allocation3], 0 }
   0x5   :  { %21 = vsyncpa [#allocation6], 0 }
   0x6   :  { %22 = vsyncpa [#allocation9], 0 }
   0x7   :  { %23 = vsyncpa [#allocation12], 0 }
   0x8   :  { %24 = vsyncpa [#allocation15], 0 }
   0x9   :  { %25 = vsyncpa [#allocation4], 0 }
   0xa   :  { %27 = vsyncpa [#allocation4 + $0x1], 0  ;;  %s2574_s18 = smov 0   ;;  %s2576_s19 = smov 0  }
   0xb   :  { %s2578_s20 = smov 0   ;;  %s2580_s21 = smov 0  }
   0xc LB: > { %3181 = sst [smem:[#allocation23_spill]] %s2463_s18  ;;  %s2595_s22 = sadd.s32 4294967295, %s2475_s21   ;;  %s2475_s21 = sphi %s2580_s21, %s3215_s21   ;;  %s2471_s20 = sphi %s2578_s20, %s3218_s20   ;;  %s2467_s19 = sphi %s2576_s19, %s3217_s19   ;;  %s2463_s18 = sphi %s2574_s18, %s3216_s18  }
   0xd   : > { %3182 = sst [smem:[#allocation24_spill]] %s2467_s19  ;;  %s1753_s23 = sadd.s32 4294967294, %s2475_s21  }
   0xe   : > { %3183 = sst [smem:[#allocation25_spill]] %s2471_s20  ;;  %s2599_s24 = sadd.s32 1, %s2475_s21  }
   0xf   : > { %3184 = sst [smem:[#allocation26_spill]] %s2475_s21  ;;  %s360_s25 = sadd.s32 1, %s2471_s20 }
  0x10   : > { %3185 = sst [smem:[#allocation27_spill]] %s2599_s24  ;;  %s357_s26 = ssub.s32 %s2475_s21, %s2599_s24 }
  0x11   : > { %p370_p0 = scmp.ne.s32.totalorder %s2471_s20, %s2467_s19  ;;  %p358_p1 = scmp.eq.s32.totalorder %s357_s26, 0 }
  0x12   : > { %p371_p2 = scmp.eq.s32.totalorder %s2595_s22, 1  ;;  %p376_p3 = scmp.ne.s32.totalorder %s2467_s19, %s2463_s18 }
  0x13   : > { %p377_p4 = scmp.eq.s32.totalorder %s1753_s23, 1  ;;  %p1754_p7 = scmp.ge.s32.totalorder %s2475_s21, 1 }
  0x14   : > { %s2610_s27 = scalar_select %p358_p1, %s2471_s20, %s360_s25  }
  0x15   : > { %p2612_p5 = por %p371_p2, %p370_p0  ;;  %p2616_p6 = por %p377_p4, %p376_p3 }
  0x16   : > { %3186 = sst [smem:[#allocation28_spill]] %s2610_s27  ;;  %p384_p8 = scmp.lt.s32.totalorder %s2475_s21, 3 }
  0x17   : > { %s3187_s28 = scalar_select %p2612_p5, 1, 0 }
  0x18   : > { %s3189_s29 = scalar_select %p2616_p6, 1, 0 }
  0x19   : > { %3188 = sst [smem:[#allocation29_spill]] %s3187_s28  ;;  %p3171_p9 = scmp.eq.s32.totalorder %s2595_s22, 0 }
  0x1a   : > { %3190 = sst [smem:[#allocation30_spill]] %s3189_s29  ;;  %p2623_p10 = pnand %p1754_p7, %p384_p8 }
  0x1b   : > { %s2477_s16 = smov [#allocation5]   ;;  %s2478_s25 = smov [#allocation8]  }
  0x1c   : > { %s3191_s30 = scalar_select %p2623_p10, 1, 0 }
  0x1d   : > { %s410_s17 = sshll.u32 %s2477_s16, 4  ;;  %p1977_p11 = pneg %p2623_p10  ;;  %s2629_s17 = int_to_ptr.vmem [resolvable:$true] %s410_s17 }
  0x1e   : > { %s438_s26 = sshll.u32 %s2478_s25, 4  ;;  %s2479_s27 = smov [#allocation11]   ;;  %s2637_s26 = int_to_ptr.vmem [resolvable:$true] %s438_s26 }
  0x1f   : > { %p2633_p12 = pnand %p3171_p9, %p1977_p11  ;;  %s2639_s20 = sshll.u32 %s2479_s27, 4  ;;  %s464_s20 = int_to_ptr.vmem [resolvable:$true] %s2639_s20 }
  0x20   : > { %s2169_s16 = scalar_lea.hbm %s3151_s3, 512 }
  0x21   : > { %p2170_p13 = scmp.ne.s32.totalorder %s3151_s3, %s2169_s16  ;;  %p2649_p0 = pneg %p2633_p12 }
  0x22   : > { %p2176_p3 = scmp.lt.u32.totalorder %s2169_s16, %s3151_s3 }
  0x23   : > { %p2172_p1 = pnand %p2649_p0, %p2170_p13 }
  0x25   : > { %p2173_p2 = pneg %p2172_p1 }
  0x27   : > { %p2178_p4 = pnand %p2176_p3, %p2173_p2 }
  0x29   : > { %2181 = shalt.err (!%p2178_p4)
}
  0x2a   : > { %s2182_s18 = scalar_lea.vmem %s2629_s17, 512  ;;  %p2190_p9 = scmp.lt.s32.totalorder %s2629_s17, %s2629_s17 }
  0x2b   : > { %p2183_p7 = scmp.ne.s32.totalorder %s2629_s17, %s2182_s18  ;;  %p2191_p6 = scmp.lt.s32.totalorder %s2182_s18, %s2182_s18 }
  0x2d   : > { %p2185_p8 = pnand %p2183_p7, %p2649_p0  ;;  %p2192_p13 = por %p2191_p6, %p2190_p9 }
  0x2f   : > { %p2186_p11 = pneg %p2185_p8 }
  0x31   : > { %p2193_p1 = pnand %p2192_p13, %p2186_p11 }
  0x33   : > { %2196 = shalt.err (!%p2193_p1)
}
  0x34   : > { %s2480_s21 = smov 128   ;;  %s2481_s24 = smov 8  }
  0x35   : > { %1983 = dma.hbm_to_vmem [thread:$0]  (!%p2633_p12), %s3151_s3, 512, %s2629_s17, [#allocation6], %s2480_s21, %s2480_s21, %s2481_s24  }
  0x36   : > { %s2197_s28 = scalar_lea.hbm %s3154_s6, 16 }
  0x37   : > { %p2198_p6 = scmp.ne.s32.totalorder %s3154_s6, %s2197_s28  ;;  %p2204_p3 = scmp.lt.u32.totalorder %s2197_s28, %s3154_s6 }
  0x39   : > { %p2200_p9 = pnand %p2198_p6, %p2649_p0 }
  0x3b   : > { %p2201_p2 = pneg %p2200_p9 }
  0x3d   : > { %p2206_p4 = pnand %p2204_p3, %p2201_p2 }
  0x3f   : > { %2209 = shalt.err (!%p2206_p4)
}
  0x40   : > { %s2210_s17 = scalar_lea.vmem %s2637_s26, 16  ;;  %s2217_s14 = scalar_lea.vmem %s2637_s26, 32 }
  0x41   : > { %p2211_p7 = scmp.ne.s32.totalorder %s2637_s26, %s2210_s17  ;;  %p2218_p13 = scmp.lt.s32.totalorder %s2637_s26, %s2637_s26 }
  0x42   : > { %p2219_p1 = scmp.lt.s32.totalorder %s2217_s14, %s2210_s17 }
  0x43   : > { %p2213_p8 = pnand %p2211_p7, %p2649_p0 }
  0x44   : > { %p2220_p6 = por %p2219_p1, %p2218_p13 }
  0x45   : > { %p2214_p11 = pneg %p2213_p8 }
  0x47   : > { %p2221_p9 = pnand %p2220_p6, %p2214_p11 }
  0x49   : > { %2224 = shalt.err (!%p2221_p9)
}
  0x4a   : > { %1989 = dma.hbm_to_vmem [thread:$0]  (!%p2633_p12), %s3154_s6, 16, %s2637_s26, [#allocation9]  }
  0x4b   : > { %s2225_s24 = scalar_lea.hbm %s3157_s9, 16 }
  0x4c   : > { %p2226_p2 = scmp.ne.s32.totalorder %s3157_s9, %s2225_s24  ;;  %p2232_p7 = scmp.lt.u32.totalorder %s2225_s24, %s3157_s9 }
  0x4e   : > { %p2228_p3 = pnand %p2226_p2, %p2649_p0 }
  0x50   : > { %p2229_p4 = pneg %p2228_p3 }
  0x52   : > { %p2234_p8 = pnand %p2232_p7, %p2229_p4 }
  0x54   : > { %2237 = shalt.err (!%p2234_p8)
}
  0x55   : > { %s2238_s18 = scalar_lea.vmem %s464_s20, 16  ;;  %s2245_s26 = scalar_lea.vmem %s464_s20, 32 }
  0x56   : > { %p2239_p11 = scmp.ne.s32.totalorder %s464_s20, %s2238_s18  ;;  %p2246_p6 = scmp.lt.s32.totalorder %s464_s20, %s464_s20 }
  0x57   : > { %p2247_p9 = scmp.lt.s32.totalorder %s2245_s26, %s2238_s18 }
  0x58   : > { %p2241_p13 = pnand %p2239_p11, %p2649_p0 }
  0x59   : > { %p2248_p5 = por %p2247_p9, %p2246_p6 }
  0x5a   : > { %p2242_p1 = pneg %p2241_p13 }
  0x5c   : > { %p2249_p10 = pnand %p2248_p5, %p2242_p1 }
  0x5e   : > { %2252 = shalt.err (!%p2249_p10)
}
  0x5f   : > { %1995 = dma.hbm_to_vmem [thread:$0]  (!%p2633_p12), %s3157_s9, 16, %s464_s20, [#allocation12]  }
  0x60   : > { %s2482_s13 = smov [#allocation2]   ;;  %s2483_s28 = smov [#allocation7]  }
  0x61   : > { %s400_s19 = sshll.u32 %s2482_s13, 4  ;;  %s424_s21 = sshll.u32 %s2483_s28, 4  ;;  %s401_s19 = int_to_ptr.vmem [resolvable:$true] %s400_s19  ;;  %s425_s21 = int_to_ptr.vmem [resolvable:$true] %s424_s21 }
  0x62   : > { %s2253_s16 = scalar_lea.hbm %s3150_s2, 16 }
  0x63   : > { %p2254_p5 = scmp.ne.s32.totalorder %s3150_s2, %s2253_s16  ;;  %p2260_p3 = scmp.lt.u32.totalorder %s2253_s16, %s3150_s2 }
  0x65   : > { %p2256_p10 = pnand %p2254_p5, %p2649_p0 }
  0x67   : > { %p2257_p2 = pneg %p2256_p10 }
  0x69   : > { %p2262_p4 = pnand %p2260_p3, %p2257_p2 }
  0x6b   : > { %2265 = shalt.err (!%p2262_p4)
}
  0x6c   : > { %s2266_s20 = scalar_lea.vmem %s401_s19, 16  ;;  %s2273_s17 = scalar_lea.vmem %s401_s19, 32 }
  0x6d   : > { %p2267_p7 = scmp.ne.s32.totalorder %s401_s19, %s2266_s20  ;;  %p2274_p13 = scmp.lt.s32.totalorder %s401_s19, %s401_s19 }
  0x6e   : > { %p2275_p1 = scmp.lt.s32.totalorder %s2273_s17, %s2266_s20 }
  0x6f   : > { %p2269_p8 = pnand %p2267_p7, %p2649_p0 }
  0x70   : > { %p2276_p6 = por %p2275_p1, %p2274_p13 }
  0x71   : > { %p2270_p11 = pneg %p2269_p8 }
  0x73   : > { %p2277_p9 = pnand %p2276_p6, %p2270_p11 }
  0x75   : > { %2280 = shalt.err (!%p2277_p9)
}
  0x76   : > { %1980 = dma.hbm_to_vmem [thread:$0]  (!%p2633_p12), %s3150_s2, 16, %s401_s19, [#allocation3]  }
  0x77   : > { %s2281_s29 = scalar_lea.hbm %s3152_s4, 32 }
  0x78   : > { %p2282_p5 = scmp.ne.s32.totalorder %s3152_s4, %s2281_s29  ;;  %p2288_p3 = scmp.lt.u32.totalorder %s2281_s29, %s3152_s4 }
  0x7a   : > { %p2284_p10 = pnand %p2282_p5, %p2649_p0 }
  0x7c   : > { %p2285_p2 = pneg %p2284_p10 }
  0x7e   : > { %p2290_p4 = pnand %p2288_p3, %p2285_p2 }
  0x80   : > { %2293 = shalt.err (!%p2290_p4)
}
  0x81   : > { %s2294_s26 = scalar_lea.vmem %s425_s21, 32  ;;  %p2302_p13 = scmp.lt.s32.totalorder %s425_s21, %s425_s21 }
  0x82   : > { %p2295_p7 = scmp.ne.s32.totalorder %s425_s21, %s2294_s26  ;;  %p2303_p1 = scmp.lt.s32.totalorder %s2294_s26, %s2294_s26 }
  0x84   : > { %p2297_p8 = pnand %p2295_p7, %p2649_p0  ;;  %p2304_p6 = por %p2303_p1, %p2302_p13 }
  0x86   : > { %p2298_p11 = pneg %p2297_p8 }
  0x88   : > { %p2305_p9 = pnand %p2304_p6, %p2298_p11 }
  0x8a   : > { %2308 = shalt.err (!%p2305_p9)
}
  0x8b   : > { %1986 = dma.hbm_to_vmem [thread:$0]  (!%p2633_p12), %s3152_s4, 32, %s425_s21, [#allocation6]  }
  0x8c   : > { %s2484_s17 = smov [#allocation10]   ;;  %s2485_s13 = smov [#allocation13]  }
  0x8d   : > { %s452_s14 = sshll.u32 %s2484_s17, 4  ;;  %s474_s28 = sshll.u32 %s2485_s13, 4  ;;  %s453_s14 = int_to_ptr.vmem [resolvable:$true] %s452_s14  ;;  %s475_s28 = int_to_ptr.vmem [resolvable:$true] %s474_s28 }
  0x8e   : > { %s2309_s16 = scalar_lea.hbm %s3156_s8, 16 }
  0x8f   : > { %p2310_p5 = scmp.ne.s32.totalorder %s3156_s8, %s2309_s16  ;;  %p2316_p3 = scmp.lt.u32.totalorder %s2309_s16, %s3156_s8 }
  0x91   : > { %p2312_p10 = pnand %p2310_p5, %p2649_p0 }
  0x93   : > { %p2313_p2 = pneg %p2312_p10 }
  0x95   : > { %p2318_p4 = pnand %p2316_p3, %p2313_p2 }
  0x97   : > { %2321 = shalt.err (!%p2318_p4)
}
  0x98   : > { %s2322_s21 = scalar_lea.vmem %s453_s14, 16  ;;  %s2329_s19 = scalar_lea.vmem %s453_s14, 32 }
  0x99   : > { %p2323_p7 = scmp.ne.s32.totalorder %s453_s14, %s2322_s21  ;;  %p2330_p13 = scmp.lt.s32.totalorder %s453_s14, %s453_s14 }
  0x9a   : > { %p2331_p1 = scmp.lt.s32.totalorder %s2329_s19, %s2322_s21 }
  0x9b   : > { %p2325_p8 = pnand %p2323_p7, %p2649_p0 }
  0x9c   : > { %p2332_p6 = por %p2331_p1, %p2330_p13 }
  0x9d   : > { %p2326_p11 = pneg %p2325_p8 }
  0x9f   : > { %p2333_p9 = pnand %p2332_p6, %p2326_p11 }
  0xa1   : > { %2336 = shalt.err (!%p2333_p9)
}
  0xa2   : > { %1992 = dma.hbm_to_vmem [thread:$0]  (!%p2633_p12), %s3156_s8, 16, %s453_s14, [#allocation9]  }
  0xa3   : > { %s2337_s29 = scalar_lea.hbm %s3158_s10, 16 }
  0xa4   : > { %p2338_p5 = scmp.ne.s32.totalorder %s3158_s10, %s2337_s29  ;;  %p2344_p3 = scmp.lt.u32.totalorder %s2337_s29, %s3158_s10 }
  0xa6   : > { %p2340_p10 = pnand %p2338_p5, %p2649_p0 }
  0xa8   : > { %p2341_p2 = pneg %p2340_p10 }
  0xaa   : > { %p2346_p4 = pnand %p2344_p3, %p2341_p2 }
  0xac   : > { %2349 = shalt.err (!%p2346_p4)
}
  0xad   : > { %s2350_s26 = scalar_lea.vmem %s475_s28, 16  ;;  %s2357_s14 = scalar_lea.vmem %s475_s28, 32 }
  0xae   : > { %p2351_p7 = scmp.ne.s32.totalorder %s475_s28, %s2350_s26  ;;  %p2358_p13 = scmp.lt.s32.totalorder %s475_s28, %s475_s28 }
  0xaf   : > { %p2359_p1 = scmp.lt.s32.totalorder %s2357_s14, %s2350_s26 }
  0xb0   : > { %p2353_p8 = pnand %p2351_p7, %p2649_p0 }
  0xb1   : > { %p2360_p6 = por %p2359_p1, %p2358_p13 }
  0xb2   : > { %p2354_p11 = pneg %p2353_p8 }
  0xb4   : > { %p2361_p9 = pnand %p2360_p6, %p2354_p11 }
  0xb6   : > { %2364 = shalt.err (!%p2361_p9)
}
  0xb7   : > { %1998 = dma.hbm_to_vmem [thread:$0]  (!%p2633_p12), %s3158_s10, 16, %s475_s28, [#allocation12]  }
  0xb8   : > { %s2486_s20 = smov [#allocation14]   ;;  %s2365_s29 = scalar_lea.hbm %s3160_s12, 16 }
  0xb9   : > { %s488_s17 = sshll.u32 %s2486_s20, 4  ;;  %p2366_p5 = scmp.ne.s32.totalorder %s3160_s12, %s2365_s29  ;;  %s489_s17 = int_to_ptr.vmem [resolvable:$true] %s488_s17 }
  0xba   : > { %p2372_p3 = scmp.lt.u32.totalorder %s2365_s29, %s3160_s12 }
  0xbb   : > { %p2368_p10 = pnand %p2366_p5, %p2649_p0 }
  0xbd   : > { %p2369_p2 = pneg %p2368_p10 }
  0xbf   : > { %p2374_p4 = pnand %p2372_p3, %p2369_p2 }
  0xc1   : > { %2377 = shalt.err (!%p2374_p4)
}
  0xc2   : > { %s2378_s28 = scalar_lea.vmem %s489_s17, 16  ;;  %s2385_s26 = scalar_lea.vmem %s489_s17, 32 }
  0xc3   : > { %p2379_p7 = scmp.ne.s32.totalorder %s489_s17, %s2378_s28  ;;  %p2386_p13 = scmp.lt.s32.totalorder %s489_s17, %s489_s17 }
  0xc4   : > { %p2387_p1 = scmp.lt.s32.totalorder %s2385_s26, %s2378_s28 }
  0xc5   : > { %p2381_p8 = pnand %p2379_p7, %p2649_p0 }
  0xc6   : > { %p2388_p6 = por %p2387_p1, %p2386_p13 }
  0xc7   : > { %p2382_p11 = pneg %p2381_p8 }
  0xc9   : > { %p2389_p9 = pnand %p2388_p6, %p2382_p11 }
  0xcb   : > { %2392 = shalt.err (!%p2389_p9)
}
  0xcc   : > { %2001 = dma.hbm_to_vmem [thread:$0]  (!%p2633_p12), %s3160_s12, 16, %s489_s17, [#allocation15]  }
  0xcd   : > { %p3194_p5 = scmp.ne.s32.totalorder %s3191_s30, 0 }
  0xce   : > { %p3195_p10 = scmp.eq.s32.totalorder (!%p3194_p5), %s2595_s22, 0 }
  0xcf   : > { %516 = sbr.rel (%p3194_p5) target bundleno = 2702 (0xa8e), region = 80 }
  0xd6   : > { %2438 = dma.done.wait (%p3195_p10), [#allocation3], 16   ;;  %p3196_p0 = pmov %p3195_p10 }
  0xd8   : > { %2440 = vsyncadd (%p3196_p0), [#allocation3], 4294967280  ;;  %p3197_p2 = pmov %p3196_p0 }
  0xd9   : > { %p3198_p3 = pmov %p3196_p0 }
  0xda   : > { %2442 = dma.done.wait (%p3197_p2), [#allocation6], 544  }
  0xdb   : > { %2444 = vsyncadd (%p3198_p3), [#allocation6], 4294966752  ;;  %p3199_p4 = pmov %p3196_p0 }
  0xdc   : > { %p3200_p12 = pmov %p3196_p0 }
  0xdd   : > { %2446 = dma.done.wait (%p3199_p4), [#allocation9], 32  }
  0xde   : > { %2448 = vsyncadd (%p3200_p12), [#allocation9], 4294967264  ;;  %p3201_p7 = pmov %p3196_p0 }
  0xdf   : > { %p3202_p8 = pmov %p3196_p0 }
  0xe0   : > { %2450 = dma.done.wait (%p3201_p7), [#allocation12], 32  }
  0xe1   : > { %2452 = vsyncadd (%p3202_p8), [#allocation12], 4294967264  ;;  %p3203_p11 = pmov %p3196_p0 }
  0xe2   : > { %p3204_p13 = pmov %p3196_p0 }
  0xe3   : > { %2454 = dma.done.wait (%p3203_p11), [#allocation15], 16  }
  0xe4   : > { %2456 = vsyncadd (%p3204_p13), [#allocation15], 4294967280  ;;  %s1774_s15 = sshll.u32 %s2595_s22, 1  ;;  %vm604_vm0 = vcmask 261120   ;;  %v2071_v14 = vld [vmem:[#allocation5 + $0x4] ss:$8 sps:$4 sm:$0xff]   ;;  %v655_v41 = vlaneseq }
  0xe5   : > { %p593_p1 = scmp.lt.s32.totalorder %s1774_s15, 3  ;;  %v2073_v15 = vld [vmem:[#allocation5] ss:$8 sps:$4 sm:$0xff]   ;;  %688 = vmatprep.subr.bf16.mxu0 %v2071_v14  ;;  %v2074_v16 = vld [vmem:[#allocation5 + $0x14] ss:$8 sps:$4 sm:$0xff]   ;;  %v2487_v18 = vmov 0  }
  0xe6   : > { %689 = vmatpush1.bf16.msra.mxu0 %v2073_v15  ;;  %v2076_v17 = vld [vmem:[#allocation5 + $0x10] ss:$8 sps:$4 sm:$0xff]   ;;  %720 = vmatprep.mubr.bf16.mxu0 %v2487_v18  ;;  %v1776_v27 = vld [vmem:[%s3149_s1] ss:$0 sm:$0xff]  ;;  %v2488_v37 = vmov 0.0   ;;  %v2078_v38 = vld [vmem:[%s3153_s5 + $0x8] sm:$0xff]  }
  0xe7   : > { %s3220_s15 = smov (!%p593_p1, %s1774_s15), 3  ;;  %690 = vmatprep.subr.bf16.mxu0 %v2074_v16  ;;  %v1777_v31 = vld [vmem:[#allocation2] ss:$0 sm:$0xff]  ;;  %1857 = vmatprep.subr.bf16.mxu1 %v2488_v37  ;;  %v2079_v39 = vld [vmem:[%s3153_s5 + $0x10] sm:$0xff]   ;;  %v2080_v40 = vld [vmem:[%s3153_s5 + $0x18] sm:$0xff]   ;;  %vm2489_vm1 = vmmov 0  }
  0xe8   : > { %s1775_s30 = sshll.u32 %s3220_s15, 3  ;;  %v2077_v36 = vld [vmem:[%s3153_s5] sm:$0xff]   ;;  %1865 = vmatprep.mubr.msk.bf16.mxu1 %vm2489_vm1, %v2488_v37  ;;  %v656_v42 = vshrl.u32 %v655_v41, 7  ;;  %s2490_s14 = smov 64   ;;  %vm789_vm2 = vcmask 523264   ;;  %vm870_vm3 = vcmask 1043456  }
  0xe9   : > { %s596_s20 = scalar_lea.vmem %s3148_s0, %s1775_s30  ;;  %1858 = vmatpush3.bf16.msra.mxu1 %v2077_v36  ;;  %v653_v44 = vld [vmem:[#allocation7] sm:$0x3]  ;;  %vm857_vm4 = vcmask 64512   ;;  %s3205_s28 = sld [smem:[#allocation31_spill]] }
  0xea   : > { %v2829_v0 = vld [vmem:[%s596_s20] sm:$0xff]  ;;  %v2831_v1 = vld [vmem:[%s596_s20 + $0x8] sm:$0xff]  ;;  %691 = vmatpush1.bf16.msra.mxu0 %v2076_v17  ;;  %1859 = vmatprep.subr.bf16.mxu1 %v2488_v37  ;;  %v657_v43 = vsub.s32 0, %v656_v42  ;;  %v661_v45 = vsub.s32 1, %v656_v42  ;;  %s3206_s21 = sld [smem:[#allocation24_spill]]  ;;  %s3207_s20 = sld [smem:[#allocation32_spill]] }
  0xeb   : > { %v605_v2 = vsel %vm604_vm0, %v2829_v0, 0.0  ;;  %v608_v3 = vsel %vm604_vm0, %v2831_v1, 0.0  ;;  %s3208_s17 = sld [smem:[#allocation29_spill]]  ;;  %s1820_s13 = sshll.u32 %s2595_s22, 8 }
  0xec   : > { %606 = vadd.xlane.f32.xlu0 %v605_v2  ;;  %v658_v46 = vrot.slane %v653_v44, %v657_v43  ;;  %v662_v47 = vrot.slane %v653_v44, %v661_v45  ;;  %s3209_s27 = sld [smem:[#allocation33_spill]] }
  0xed   : > { %1860 = vmatpush3.bf16.msra.mxu1 %v2078_v38 }
  0xee   : > { %1861 = vmatprep.subr.bf16.mxu1 %v2488_v37 }
  0xf0   : > { %609 = vadd.xlane.f32.xlu0 %v608_v3  ;;  %s589_s15 = sand.u32 1, %s3206_s21  }
  0xf1   : > { %1862 = vmatpush3.bf16.msra.mxu1 %v2079_v39  ;;  %s1773_s30 = sshll.u32 %s589_s15, 4  ;;  %s3107_s22 = scalar_lea.sflag [#allocation4], %s589_s15 }
  0xf2   : > { %1863 = vmatprep.subr.bf16.mxu1 %v2488_v37  ;;  %s591_s24 = scalar_lea.vmem [#allocation16], %s1773_s30  ;;  %s3100_s18 = scalar_lea.hbm %s3209_s27, %s1820_s13 }
  0xf3   : > { %s1612_s29 = sshll.u32 %s591_s24, 4  ;;  %p3210_p9 = scmp.ne.s32.totalorder %s3208_s17, 0  ;;  %s3102_s29 = int_to_ptr.vmem [resolvable:$true] %s1612_s29 }
  0xf4   : > { %s2393_s26 = scalar_lea.vmem %s3102_s29, 256 }
  0xf5   : > { %1864 = vmatpush3.bf16.msra.mxu1 %v2080_v40  ;;  %p2394_p6 = scmp.ne.s32.totalorder %s3102_s29, %s2393_s26 }
  0xf7   : > { %p2395_p5 = pnand %p2394_p6, %p3210_p9 }
  0xf9   : > { %p2396_p10 = pneg %p2395_p5 }
 0x179   : > { %v607_v4 = vpop.xlane.xlu0 %606 }
 0x17a   : > { %v612_v5 = vmul.f32 0.03125, %v607_v4 }
 0x17c   : > { %v614_v6 = vsub.f32 %v2829_v0, %v612_v5 }
 0x17d   : > { %v610_v7 = vpop.xlane.xlu0 %609 }
 0x17e   : > { %v613_v8 = vmul.f32 0.03125, %v610_v7  ;;  %v616_v9 = vmul.f32 %v614_v6, %v614_v6 }
 0x180   : > { %v615_v10 = vsub.f32 %v2831_v1, %v613_v8  ;;  %v618_v11 = vsel %vm604_vm0, %v616_v9, 0.0 }
 0x181   : > { %619 = vadd.xlane.f32.xlu1 %v618_v11 }
 0x182   : > { %v617_v12 = vmul.f32 %v615_v10, %v615_v10 }
 0x184   : > { %v621_v13 = vsel %vm604_vm0, %v617_v12, 0.0 }
 0x185   : > { %622 = vadd.xlane.f32.xlu1 %v621_v13 }
 0x20e   : > { %v620_v19 = vpop.xlane.xlu1 %619 }
 0x20f   : > { %v624_v20 = vmul.f32 0.03125, %v620_v19 }
 0x211   : > { %v626_v21 = vadd.f32 1e-05, %v624_v20 }
 0x212   : > { %v623_v22 = vpop.xlane.xlu1 %622 }
 0x213   : > { %2089 = vrsqrt.f32 %v626_v21  ;;  %v625_v23 = vmul.f32 0.03125, %v623_v22 }
 0x215   : > { %v627_v24 = vadd.f32 1e-05, %v625_v23 }
 0x217   : > { %2091 = vrsqrt.f32 %v627_v24 }
 0x21d   : > { %v2090_v25 = vpop.eup %2089 }
 0x21e   : > { %v630_v26 = vmul.f32 %v2090_v25, %v614_v6 }
 0x220   : > { %v638_v30 = vmul.f32 %v1776_v27, %v630_v26 }
 0x221   : > { %v2092_v28 = vpop.eup %2091 }
 0x222   : > { %v631_v29 = vmul.f32 %v2092_v28, %v615_v10  ;;  %v646_v33 = vadd.f32 %v1777_v31, %v638_v30 }
 0x224   : > { %v639_v32 = vmul.f32 %v1776_v27, %v631_v29 }
 0x226   : > { %v647_v34 = vadd.f32 %v1777_v31, %v639_v32 }
 0x228   : > { %v648_v35 = vpack.c.bf16 %v647_v34, %v646_v33 }
 0x22a   : > { %1782 = vmatmul.mubr.msk.bf16.vlgmr.msra.gmra.mrb[0].mxu0 %vm604_vm0, %v648_v35 }
 0x2fd   : > { %v722_v48 = vpop.f32.mrb[0].mxu0 }
 0x2fe   : > { %v723_v49 = vadd.f32 %v722_v48, %v658_v46  ;;  %v724_v50 = vpop.f32.mrb[1].mxu0 }
 0x2ff   : > { %v725_v51 = vadd.f32 %v724_v50, %v662_v47  ;;  %v726_v52 = vpop.f32.mrb[2].mxu0 }
 0x300   : > { %v834_v53 = vpack.c.bf16 %v723_v49, %v723_v49  ;;  %v727_v54 = vadd.f32 %v726_v52, %v658_v46  ;;  %v728_v55 = vpop.f32.mrb[3].mxu0 }
 0x301   : > { %v731_v56 = vmul.f32 %v725_v51, %v725_v51  ;;  %v729_v57 = vadd.f32 %v728_v55, %v662_v47 }
 0x302   : > { %v835_v58 = vpack.c.bf16 %v727_v54, %v727_v54  ;;  %855 = vrot.lane.b32.xlu0 %v834_v53, %s2490_s14 }
 0x303   : > { %v733_v59 = vmul.f32 %v731_v56, %v725_v51  ;;  %v732_v60 = vmul.f32 %v729_v57, %v729_v57 }
 0x304   : > { %956 = vrot.lane.b32.xlu1 %v835_v58, %s2490_s14  ;;  %s2491_s14 = smov [#allocation16]  }
 0x305   : > { %v735_v61 = vmul.f32 0.044715, %v733_v59  ;;  %v734_v62 = vmul.f32 %v732_v60, %v729_v57  ;;  %s2397_s21 = sshll.u32 %s2491_s14, 4  ;;  %s2398_s21 = int_to_ptr.vmem [resolvable:$false] %s2397_s21 }
 0x306   : > { %s2399_s30 = scalar_lea.vmem %s2398_s21, 512  ;;  %p2400_p0 = scmp.lt.s32.totalorder %s3102_s29, %s2398_s21 }
 0x307   : > { %v737_v63 = vadd.f32 %v735_v61, %v725_v51  ;;  %v736_v2 = vmul.f32 0.044715, %v734_v62  ;;  %p2401_p2 = scmp.lt.s32.totalorder %s2399_s30, %s2393_s26 }
 0x309   : > { %v739_v3 = vmul.f32 0.7978846, %v737_v63  ;;  %v738_v4 = vadd.f32 %v736_v2, %v729_v57  ;;  %p2402_p3 = por %p2401_p2, %p2400_p0 }
 0x30b   : > { %2093 = vtanh.f32 %v739_v3  ;;  %v740_v5 = vmul.f32 0.7978846, %v738_v4  ;;  %p2403_p4 = pnand %p2402_p3, %p2396_p10 }
 0x30d   : > { %2095 = vtanh.f32 %v740_v5 }
 0x315   : > { %v2094_v6 = vpop.eup %2093 }
 0x316   : > { %v743_v7 = vadd.f32 1.0, %v2094_v6 }
 0x317   : > { %v2096_v8 = vpop.eup %2095 }
 0x318   : > { %v745_v9 = vmul.f32 0.5, %v743_v7  ;;  %v744_v10 = vadd.f32 1.0, %v2096_v8 }
 0x31a   : > { %v746_v11 = vmul.f32 0.5, %v744_v10  ;;  %v747_v12 = vmul.f32 %v745_v9, %v725_v51 }
 0x31c   : > { %v748_v13 = vmul.f32 %v746_v11, %v729_v57 }
 0x31e   : > { %v749_v14 = vpack.c.bf16 %v748_v13, %v747_v12 }
 0x320   : > { %1866 = vmatmul.mubr.msk.bf16.vlgmr.msra.gmra.mrb[0].mxu1 %vm789_vm2, %v749_v14  ;;  %939 = vxpose.xlu0.c.b16.start.end [1/1] (short) (narrow) %v835_v58, 64 }
 0x327   : > { %838 = vxpose.xlu1.c.b16.start.end [1/1] (short) (narrow) %v834_v53, 64 }
 0x374   : > { %v856_v15 = vpop.permute.xlu0 %855 }
 0x375   : > { %v872_v16 = vsel %vm870_vm3, %v856_v15, 0  ;;  %1941 = vmatprep.subr.msk.bf16.mxu0 %vm870_vm3, %v856_v15 }
 0x376   : > { %v957_v17 = vpop.permute.xlu1 %956  ;;  %1870 = vmatpush3.bf16.msra.mxu0 %v872_v16 }
 0x377   : > { %v971_v18 = vsel %vm870_vm3, %v957_v17, 0  ;;  %1942 = vmatprep.subr.msk.bf16.mxu1 %vm870_vm3, %v957_v17  ;;  %1889 = vmatprep.subr.bf16.mxu0 %v2488_v37 }
 0x378   : > { %1880 = vmatpush3.bf16.msra.mxu1 %v971_v18 }
 0x379   : > { %1901 = vmatprep.subr.bf16.mxu1 %v2488_v37 }
 0x386   : > { %v947_v19 = vpop.trf.xlu0 }
 0x387   : > { %1881 = vmatprep.mubr.msk.bf16.mxu1 %vm857_vm4, %v947_v19 }
 0x38a   : > { %v948_v20 = vpop.trf.xlu0 }
 0x38b   : > { %1882 = vmatmul.mubr.msk.bf16.vlgmr.msra.gmra.mrb[4].mxu1 %vm857_vm4, %v948_v20 }
 0x38d   : > { %v846_v21 = vpop.trf.xlu1 }
 0x38e   : > { %1871 = vmatprep.mubr.msk.bf16.mxu0 %vm857_vm4, %v846_v21  ;;  %v949_v22 = vpop.trf.xlu0 }
 0x38f   : > { %1885 = vmatprep.mubr.msk.bf16.mxu1 %vm857_vm4, %v949_v22 }
 0x391   : > { %v847_v23 = vpop.trf.xlu1 }
 0x392   : > { %1872 = vmatmul.mubr.msk.bf16.vlgmr.msra.gmra.mrb[4].mxu0 %vm857_vm4, %v847_v23  ;;  %v950_v24 = vpop.trf.xlu0 }
 0x393   : > { %1886 = vmatmul.mubr.msk.bf16.gmra.mrb[8].mxu1 %vm857_vm4, %v950_v24 }
 0x394   : > { %1909 = vmatprep.mubr.msk.bf16.mxu1 %vm2489_vm1, %v2488_v37 }
 0x395   : > { %v848_v25 = vpop.trf.xlu1 }
 0x396   : > { %1875 = vmatprep.mubr.msk.bf16.mxu0 %vm857_vm4, %v848_v25 }
 0x399   : > { %v849_v26 = vpop.trf.xlu1 }
 0x39a   : > { %1876 = vmatmul.mubr.msk.bf16.gmra.mrb[8].mxu0 %vm857_vm4, %v849_v26 }
 0x39b   : > { %1897 = vmatprep.mubr.msk.bf16.mxu0 %vm2489_vm1, %v2488_v37 }
 0x3f3   : > { %v2878_v27 = vpop.f32.mrb[0].mxu1 }
 0x3f4   : > { %v1867_v28 = vpop.f32.mrb[1].mxu1 }
 0x3f5   : > { %v2880_v29 = vpop.f32.mrb[2].mxu1 }
 0x3f6   : > { %v1868_v30 = vpop.f32.mrb[3].mxu1 }
 0x45e   : > { %v2882_v31 = vpop.f32.mrb[4].mxu1 }
 0x45f   : > { %v2884_v32 = vpop.f32.mrb[5].mxu1  ;;  %v1068_v48 = vsel %vm789_vm2, %v2882_v31, -inf }
 0x460   : > { %v2886_v33 = vpop.f32.mrb[6].mxu1  ;;  %v1062_v54 = vsel %vm789_vm2, %v2884_v32, -inf }
 0x461   : > { %v2888_v34 = vpop.f32.mrb[7].mxu1  ;;  %v1071_v52 = vsel %vm789_vm2, %v2886_v33, -inf }
 0x462   : > { %v1065_v55 = vsel %vm789_vm2, %v2888_v34, -inf }
 0x465   : > { %v1873_v35 = vpop.f32.mrb[4].mxu0 }
 0x466   : > { %v908_v36 = vpop.f32.mrb[5].mxu0  ;;  %v1044_v38 = vsel %vm789_vm2, %v1873_v35, -inf  ;;  %v2891_v39 = vpop.f32.mrb[8].mxu1 }
 0x467   : > { %1045 = vmax.xlane.f32.xlu0 %v1044_v38  ;;  %v1874_v40 = vpop.f32.mrb[6].mxu0  ;;  %v2893_v41 = vpop.f32.mrb[9].mxu1  ;;  %v1038_v46 = vsel %vm789_vm2, %v908_v36, -inf  ;;  %v1080_v62 = vsel %vm789_vm2, %v2891_v39, -inf }
 0x468   : > { %v911_v42 = vpop.f32.mrb[7].mxu0  ;;  %v1047_v43 = vsel %vm789_vm2, %v1874_v40, -inf  ;;  %v2896_v44 = vpop.f32.mrb[10].mxu1  ;;  %v1074_v60 = vsel %vm789_vm2, %v2893_v41, -inf }
 0x469   : > { %1048 = vmax.xlane.f32.xlu1 %v1047_v43  ;;  %v2898_v45 = vpop.f32.mrb[11].mxu1  ;;  %v1041_v47 = vsel %vm789_vm2, %v911_v42, -inf  ;;  %v1083_v63 = vsel %vm789_vm2, %v2896_v44, -inf }
 0x46a   : > { %v1077_v61 = vsel %vm789_vm2, %v2898_v45, -inf }
 0x46b   : > { %1039 = vmax.xlane.f32.xlu0 %v1038_v46 }
 0x46d   : > { %1042 = vmax.xlane.f32.xlu1 %v1041_v47  ;;  %v2904_v49 = vpop.f32.mrb[8].mxu0 }
 0x46e   : > { %v2906_v50 = vpop.f32.mrb[9].mxu0  ;;  %v1056_v56 = vsel %vm789_vm2, %v2904_v49, -inf }
 0x46f   : > { %1069 = vmax.xlane.f32.xlu0 %v1068_v48  ;;  %v2908_v51 = vpop.f32.mrb[10].mxu0  ;;  %v1050_v58 = vsel %vm789_vm2, %v2906_v50, -inf }
 0x470   : > { %v2912_v53 = vpop.f32.mrb[11].mxu0  ;;  %v1059_v57 = vsel %vm789_vm2, %v2908_v51, -inf }
 0x471   : > { %1072 = vmax.xlane.f32.xlu1 %v1071_v52  ;;  %v1053_v59 = vsel %vm789_vm2, %v2912_v53, -inf }
 0x473   : > { %1063 = vmax.xlane.f32.xlu0 %v1062_v54 }
 0x475   : > { %1066 = vmax.xlane.f32.xlu1 %v1065_v55 }
 0x477   : > { %1057 = vmax.xlane.f32.xlu0 %v1056_v56 }
 0x479   : > { %1060 = vmax.xlane.f32.xlu1 %v1059_v57 }
 0x47b   : > { %1051 = vmax.xlane.f32.xlu0 %v1050_v58 }
 0x47d   : > { %1054 = vmax.xlane.f32.xlu1 %v1053_v59 }
 0x47f   : > { %1075 = vmax.xlane.f32.xlu0 %v1074_v60 }
 0x481   : > { %1078 = vmax.xlane.f32.xlu1 %v1077_v61 }
 0x483   : > { %1081 = vmax.xlane.f32.xlu0 %v1080_v62 }
 0x485   : > { %1084 = vmax.xlane.f32.xlu1 %v1083_v63 }
 0x4f4   : > { %v1046_v2 = vpop.xlane.xlu0 %1045 }
 0x4f5   : > { %v1088_v3 = vsub.f32 %v1873_v35, %v1046_v2 }
 0x4f6   : > { %v1049_v4 = vpop.xlane.xlu1 %1048 }
 0x4f7   : > { %v1106_v5 = vmul.f32 1.442695, %v1088_v3  ;;  %v1089_v6 = vsub.f32 %v1874_v40, %v1049_v4 }
 0x4f8   : > { %v1040_v7 = vpop.xlane.xlu0 %1039 }
 0x4f9   : > { %2097 = vpow2.f32 %v1106_v5  ;;  %v1108_v8 = vmul.f32 1.442695, %v1089_v6  ;;  %v1086_v9 = vsub.f32 %v908_v36, %v1040_v7 }
 0x4fa   : > { %v1043_v10 = vpop.xlane.xlu1 %1042 }
 0x4fb   : > { %2099 = vpow2.f32 %v1108_v8  ;;  %v1102_v11 = vmul.f32 1.442695, %v1086_v9  ;;  %v1087_v12 = vsub.f32 %v911_v42, %v1043_v10 }
 0x4fc   : > { %v1070_v13 = vpop.xlane.xlu0 %1069 }
 0x4fd   : > { %2101 = vpow2.f32 %v1102_v11  ;;  %v1104_v14 = vmul.f32 1.442695, %v1087_v12  ;;  %v1096_v15 = vsub.f32 %v2882_v31, %v1070_v13 }
 0x4fe   : > { %v1073_v16 = vpop.xlane.xlu1 %1072 }
 0x4ff   : > { %2103 = vpow2.f32 %v1104_v14  ;;  %v1122_v17 = vmul.f32 1.442695, %v1096_v15  ;;  %v1097_v18 = vsub.f32 %v2886_v33, %v1073_v16 }
 0x500   : > { %v1064_v19 = vpop.xlane.xlu0 %1063 }
 0x501   : > { %2105 = vpow2.f32 %v1122_v17  ;;  %v1124_v20 = vmul.f32 1.442695, %v1097_v18  ;;  %v1094_v21 = vsub.f32 %v2884_v32, %v1064_v19 }
 0x502   : > { %v1067_v22 = vpop.xlane.xlu1 %1066 }
 0x503   : > { %v2937_v23 = vpop.eup %2097  ;;  %2107 = vpow2.f32 %v1124_v20  ;;  %v1118_v24 = vmul.f32 1.442695, %v1094_v21  ;;  %v1095_v25 = vsub.f32 %v2888_v34, %v1067_v22 }
 0x504   : > { %v1058_v26 = vpop.xlane.xlu0 %1057  ;;  %v1140_v28 = vsel %vm789_vm2, %v2937_v23, 0.0 }
 0x505   : > { %v2942_v30 = vpop.eup %2099  ;;  %2109 = vpow2.f32 %v1118_v24  ;;  %v1120_v31 = vmul.f32 1.442695, %v1095_v25  ;;  %v1092_v33 = vsub.f32 %v2904_v49, %v1058_v26  ;;  %1141 = vadd.xlane.f32.xlu0 %v1140_v28 }
 0x506   : > { %v1061_v35 = vpop.xlane.xlu1 %1060  ;;  %v1143_v32 = vsel %vm789_vm2, %v2942_v30, 0.0 }
 0x507   : > { %v2947_v36 = vpop.eup %2101  ;;  %2111 = vpow2.f32 %v1120_v31  ;;  %v1114_v38 = vmul.f32 1.442695, %v1092_v33  ;;  %v1093_v34 = vsub.f32 %v2908_v51, %v1061_v35  ;;  %1144 = vadd.xlane.f32.xlu1 %v1143_v32 }
 0x508   : > { %v1052_v40 = vpop.xlane.xlu0 %1051  ;;  %v1134_v42 = vsel %vm789_vm2, %v2947_v36, 0.0 }
 0x509   : > { %v2952_v43 = vpop.eup %2103  ;;  %2113 = vpow2.f32 %v1114_v38  ;;  %v1116_v46 = vmul.f32 1.442695, %v1093_v34  ;;  %v1090_v47 = vsub.f32 %v2906_v50, %v1052_v40  ;;  %1135 = vadd.xlane.f32.xlu0 %v1134_v42 }
 0x50a   : > { %v1055_v48 = vpop.xlane.xlu1 %1054  ;;  %v1137_v49 = vsel %vm789_vm2, %v2952_v43, 0.0 }
 0x50b   : > { %v2957_v52 = vpop.eup %2105  ;;  %2115 = vpow2.f32 %v1116_v46  ;;  %v1110_v51 = vmul.f32 1.442695, %v1090_v47  ;;  %v1091_v54 = vsub.f32 %v2912_v53, %v1055_v48  ;;  %1138 = vadd.xlane.f32.xlu1 %v1137_v49 }
 0x50c   : > { %v1076_v55 = vpop.xlane.xlu0 %1075  ;;  %v1164_v56 = vsel %vm789_vm2, %v2957_v52, 0.0 }
 0x50d   : > { %v2962_v57 = vpop.eup %2107  ;;  %2117 = vpow2.f32 %v1110_v51  ;;  %v1112_v50 = vmul.f32 1.442695, %v1091_v54  ;;  %v1098_v58 = vsub.f32 %v2893_v41, %v1076_v55  ;;  %1165 = vadd.xlane.f32.xlu0 %v1164_v56 }
 0x50e   : > { %v1079_v59 = vpop.xlane.xlu1 %1078  ;;  %v1167_v60 = vsel %vm789_vm2, %v2962_v57, 0.0 }
 0x50f   : > { %v2967_v61 = vpop.eup %2109  ;;  %2119 = vpow2.f32 %v1112_v50  ;;  %v1126_v53 = vmul.f32 1.442695, %v1098_v58  ;;  %v1099_v62 = vsub.f32 %v2898_v45, %v1079_v59  ;;  %1168 = vadd.xlane.f32.xlu1 %v1167_v60 }
 0x510   : > { %v1082_v63 = vpop.xlane.xlu0 %1081  ;;  %v1158_v2 = vsel %vm789_vm2, %v2967_v61, 0.0 }
 0x511   : > { %v2972_v3 = vpop.eup %2111  ;;  %2121 = vpow2.f32 %v1126_v53  ;;  %v1128_v41 = vmul.f32 1.442695, %v1099_v62  ;;  %v1100_v4 = vsub.f32 %v2891_v39, %v1082_v63  ;;  %1159 = vadd.xlane.f32.xlu0 %v1158_v2 }
 0x512   : > { %v1085_v5 = vpop.xlane.xlu1 %1084  ;;  %v1161_v6 = vsel %vm789_vm2, %v2972_v3, 0.0 }
 0x513   : > { %v2977_v7 = vpop.eup %2113  ;;  %2123 = vpow2.f32 %v1128_v41  ;;  %v1130_v45 = vmul.f32 1.442695, %v1100_v4  ;;  %v1101_v8 = vsub.f32 %v2896_v44, %v1085_v5  ;;  %1162 = vadd.xlane.f32.xlu1 %v1161_v6 }
 0x514   : > { %v1152_v9 = vsel %vm789_vm2, %v2977_v7, 0.0 }
 0x515   : > { %v2982_v10 = vpop.eup %2115  ;;  %2125 = vpow2.f32 %v1130_v45  ;;  %v1132_v11 = vmul.f32 1.442695, %v1101_v8  ;;  %1153 = vadd.xlane.f32.xlu0 %v1152_v9 }
 0x516   : > { %v1155_v39 = vsel %vm789_vm2, %v2982_v10, 0.0 }
 0x517   : > { %v2986_v12 = vpop.eup %2117  ;;  %2127 = vpow2.f32 %v1132_v11  ;;  %1156 = vadd.xlane.f32.xlu1 %v1155_v39 }
 0x518   : > { %v1146_v13 = vsel %vm789_vm2, %v2986_v12, 0.0 }
 0x519   : > { %v2990_v44 = vpop.eup %2119  ;;  %1147 = vadd.xlane.f32.xlu0 %v1146_v13 }
 0x51a   : > { %v1149_v14 = vsel %vm789_vm2, %v2990_v44, 0.0 }
 0x51b   : > { %v2994_v15 = vpop.eup %2121  ;;  %1150 = vadd.xlane.f32.xlu1 %v1149_v14 }
 0x51c   : > { %v1170_v16 = vsel %vm789_vm2, %v2994_v15, 0.0 }
 0x51d   : > { %v2998_v17 = vpop.eup %2123  ;;  %1171 = vadd.xlane.f32.xlu0 %v1170_v16 }
 0x51e   : > { %v1173_v18 = vsel %vm789_vm2, %v2998_v17, 0.0 }
 0x51f   : > { %v3002_v19 = vpop.eup %2125  ;;  %1174 = vadd.xlane.f32.xlu1 %v1173_v18 }
 0x520   : > { %v1176_v20 = vsel %vm789_vm2, %v3002_v19, 0.0 }
 0x521   : > { %v3006_v21 = vpop.eup %2127  ;;  %1177 = vadd.xlane.f32.xlu0 %v1176_v20 }
 0x522   : > { %v1179_v22 = vsel %vm789_vm2, %v3006_v21, 0.0 }
 0x523   : > { %1180 = vadd.xlane.f32.xlu1 %v1179_v22 }
 0x592   : > { %v1142_v24 = vpop.xlane.xlu0 %1141 }
 0x594   : > { %v1145_v25 = vpop.xlane.xlu1 %1144 }
 0x596   : > { %v1136_v26 = vpop.xlane.xlu0 %1135 }
 0x597   : > { %2129 = vrcp.f32 %v1136_v26 }
 0x598   : > { %2131 = vrcp.f32 %v1145_v25  ;;  %v1139_v28 = vpop.xlane.xlu1 %1138 }
 0x599   : > { %2133 = vrcp.f32 %v1139_v28  ;;  %v2084_v28 = vld [vmem:[%s3155_s7 + $0x18] sm:$0xff]  }
 0x59a   : > { %v1166_v31 = vpop.xlane.xlu0 %1165  ;;  %2135 = vrcp.f32 %v1142_v24 }
 0x59c   : > { %v1169_v33 = vpop.xlane.xlu1 %1168 }
 0x59e   : > { %v1160_v35 = vpop.xlane.xlu0 %1159 }
 0x59f   : > { %2137 = vrcp.f32 %v1160_v35 }
 0x5a0   : > { %2139 = vrcp.f32 %v1169_v33  ;;  %v1163_v32 = vpop.xlane.xlu1 %1162 }
 0x5a1   : > { %v2130_v38 = vpop.eup %2129  ;;  %2141 = vrcp.f32 %v1163_v32 }
 0x5a2   : > { %v2132_v34 = vpop.eup %2131  ;;  %v1154_v40 = vpop.xlane.xlu0 %1153  ;;  %2143 = vrcp.f32 %v1166_v31  ;;  %v1198_v47 = vmul.f32 %v2130_v38, %v2947_v36 }
 0x5a3   : > { %v2134_v42 = vpop.eup %2133  ;;  %v1201_v55 = vmul.f32 %v2132_v34, %v2942_v30 }
 0x5a4   : > { %v1157_v46 = vpop.xlane.xlu1 %1156  ;;  %v1199_v48 = vmul.f32 %v2134_v42, %v2952_v43  ;;  %v2136_v49 = vpop.eup %2135 }
 0x5a5   : > { %v1200_v50 = vmul.f32 %v2136_v49, %v2937_v23 }
 0x5a6   : > { %v1148_v51 = vpop.xlane.xlu0 %1147  ;;  %v1214_v54 = vpack.c.bf16 %v1199_v48, %v1198_v47  ;;  %v1799_v47 = vld [vmem:[#allocation10] ss:$0 sm:$0xff] }
 0x5a7   : > { %2145 = vrcp.f32 %v1148_v51  ;;  %v1215_v60 = vpack.c.bf16 %v1201_v55, %v1200_v50 }
 0x5a8   : > { %2147 = vrcp.f32 %v1157_v46  ;;  %v1151_v56 = vpop.xlane.xlu1 %1150  ;;  %1890 = vmatpush3.bf16.msra.mxu0 %v1214_v54 }
 0x5a9   : > { %v2138_v58 = vpop.eup %2137  ;;  %2149 = vrcp.f32 %v1151_v56  ;;  %1891 = vmatprep.subr.bf16.mxu0 %v2488_v37 }
 0x5aa   : > { %v2140_v59 = vpop.eup %2139  ;;  %2151 = vrcp.f32 %v1154_v40  ;;  %v1172_v36 = vpop.xlane.xlu0 %1171  ;;  %v1206_v30 = vmul.f32 %v2138_v58, %v2967_v61 }
 0x5ab   : > { %v2142_v43 = vpop.eup %2141  ;;  %2153 = vrcp.f32 %v1172_v36  ;;  %v1209_v41 = vmul.f32 %v2140_v59, %v2962_v57  ;;  %v1783_v57 = vld [vmem:[#allocation8] ss:$0 sm:$0xff] }
 0x5ac   : > { %v1175_v53 = vpop.xlane.xlu1 %1174  ;;  %1892 = vmatpush3.bf16.msra.mxu0 %v1215_v60  ;;  %v1207_v62 = vmul.f32 %v2142_v43, %v2972_v3  ;;  %v2144_v63 = vpop.eup %2143 }
 0x5ad   : > { %2155 = vrcp.f32 %v1175_v53  ;;  %1893 = vmatprep.subr.bf16.mxu0 %v2488_v37  ;;  %v1208_v5 = vmul.f32 %v2144_v63, %v2957_v52 }
 0x5ae   : > { %v1178_v23 = vpop.xlane.xlu0 %1177  ;;  %v1218_v2 = vpack.c.bf16 %v1207_v62, %v1206_v30 }
 0x5af   : > { %2157 = vrcp.f32 %v1178_v23  ;;  %v1219_v45 = vpack.c.bf16 %v1209_v41, %v1208_v5  ;;  %v2085_v41 = vld [vmem:[%s3159_s11] sm:$0xff]  }
 0x5b0   : > { %v1181_v4 = vpop.xlane.xlu1 %1180  ;;  %1902 = vmatpush3.bf16.msra.mxu1 %v1218_v2 }
 0x5b1   : > { %v2146_v6 = vpop.eup %2145  ;;  %2159 = vrcp.f32 %v1181_v4  ;;  %1903 = vmatprep.subr.bf16.mxu1 %v2488_v37  ;;  %v2086_v4 = vld [vmem:[%s3159_s11 + $0x8] sm:$0xff]  }
 0x5b2   : > { %v2148_v61 = vpop.eup %2147  ;;  %v1202_v9 = vmul.f32 %v2146_v6, %v2986_v12  ;;  %v828_v12 = vadd.f32 %v1783_v57, %v2878_v27 }
 0x5b3   : > { %v2150_v3 = vpop.eup %2149  ;;  %v1205_v52 = vmul.f32 %v2148_v61, %v2982_v10 }
 0x5b4   : > { %v2152_v8 = vpop.eup %2151  ;;  %1904 = vmatpush3.bf16.msra.mxu1 %v1219_v45  ;;  %v1203_v11 = vmul.f32 %v2150_v3, %v2990_v44 }
 0x5b5   : > { %v2154_v39 = vpop.eup %2153  ;;  %1905 = vmatprep.subr.bf16.mxu1 %v2488_v37  ;;  %v1204_v16 = vmul.f32 %v2152_v8, %v2977_v7  ;;  %v2081_v7 = vld [vmem:[%s3155_s7] sm:$0xff]  }
 0x5b6   : > { %v1216_v13 = vpack.c.bf16 %v1203_v11, %v1202_v9  ;;  %v1210_v18 = vmul.f32 %v2154_v39, %v2994_v15  ;;  %v836_v15 = vpack.c.bf16 %v828_v12, %v828_v12  ;;  %v1805_v11 = vld [vmem:[#allocation11] ss:$0 sm:$0xff]  ;;  %v2087_v12 = vld [vmem:[%s3205_s28] sm:$0xff]  }
 0x5b7   : > { %v2156_v14 = vpop.eup %2155  ;;  %v1217_v44 = vpack.c.bf16 %v1205_v52, %v1204_v16 }
 0x5b8   : > { %1894 = vmatpush3.bf16.msra.mxu0 %v1216_v13  ;;  %v1211_v20 = vmul.f32 %v2156_v14, %v2998_v17  ;;  %v831_v17 = vadd.f32 %v1783_v57, %v2880_v29  ;;  %v2083_v29 = vld [vmem:[%s3155_s7 + $0x10] sm:$0xff]   ;;  %v1806_v14 = vld [vmem:[#allocation13] ss:$0 sm:$0xff] }
 0x5b9   : > { %v2158_v22 = vpop.eup %2157  ;;  %1895 = vmatprep.subr.bf16.mxu0 %v2488_v37 }
 0x5ba   : > { %v1220_v24 = vpack.c.bf16 %v1211_v20, %v1210_v18  ;;  %v1212_v10 = vmul.f32 %v2158_v22, %v3002_v19  ;;  %v2082_v19 = vld [vmem:[%s3155_s7 + $0x8] sm:$0xff]  }
 0x5bb   : > { %v2160_v25 = vpop.eup %2159 }
 0x5bc   : > { %1896 = vmatpush3.bf16.msra.mxu0 %v1217_v44  ;;  %1906 = vmatpush3.bf16.msra.mxu1 %v1220_v24  ;;  %v1213_v26 = vmul.f32 %v2160_v25, %v3006_v21  ;;  %v837_v21 = vpack.c.bf16 %v831_v17, %v831_v17  ;;  %v2088_v44 = vld [vmem:[%s3205_s28 + $0x8] sm:$0xff]  }
 0x5bd   : > { %1907 = vmatprep.subr.bf16.mxu1 %v2488_v37  ;;  %1913 = vmatprep.subr.bf16.mxu0 %v2488_v37  ;;  %v1807_v24 = vld [vmem:[#allocation14] ss:$0 sm:$0xff] }
 0x5be   : > { %v1221_v27 = vpack.c.bf16 %v1213_v26, %v1212_v10 }
 0x5bf   : > { %1898 = vmatmul.mubr.msk.bf16.vlgmr.msra.gmra.mrb[12].mxu0 %vm789_vm2, %v836_v15 }
 0x5c0   : > { %1908 = vmatpush3.bf16.msra.mxu1 %v1221_v27  ;;  %1914 = vmatpush3.bf16.msra.mxu0 %v2081_v7 }
 0x5c1   : > { %1915 = vmatprep.subr.bf16.mxu0 %v2488_v37  ;;  %1921 = vmatprep.mubr.msk.bf16.mxu0 %vm2489_vm1, %v2488_v37 }
 0x5c2   : > { %1925 = vmatprep.subr.bf16.mxu1 %v2488_v37 }
 0x5c3   : > { %1910 = vmatmul.mubr.msk.bf16.vlgmr.msra.gmra.mrb[12].mxu1 %vm789_vm2, %v837_v21 }
 0x5c4   : > { %1916 = vmatpush3.bf16.msra.mxu0 %v2082_v19  ;;  %1929 = vmatprep.mubr.msk.bf16.mxu1 %vm2489_vm1, %v2488_v37 }
 0x5c5   : > { %1917 = vmatprep.subr.bf16.mxu0 %v2488_v37  ;;  %1926 = vmatpush3.bf16.msra.mxu1 %v2085_v41 }
 0x5c6   : > { %1927 = vmatprep.subr.bf16.mxu1 %v2488_v37 }
 0x5c8   : > { %1918 = vmatpush3.bf16.msra.mxu0 %v2083_v29 }
 0x5c9   : > { %1919 = vmatprep.subr.bf16.mxu0 %v2488_v37  ;;  %1928 = vmatpush3.bf16.msra.mxu1 %v2086_v4 }
 0x5cc   : > { %1920 = vmatpush3.bf16.msra.mxu0 %v2084_v28 }
 0x5cd   : > { %1933 = vmatprep.subr.bf16.mxu0 %v2488_v37 }
 0x692   : > { %v1259_v31 = vpop.f32.mrb[12].mxu0 }
 0x693   : > { %v1899_v33 = vpop.f32.mrb[13].mxu0 }
 0x694   : > { %v1262_v35 = vpop.f32.mrb[14].mxu0 }
 0x695   : > { %v1900_v32 = vpop.f32.mrb[15].mxu0 }
 0x696   : > { %v1302_v38 = vpop.f32.mrb[12].mxu1 }
 0x697   : > { %v1308_v34 = vpack.c.bf16 %v1302_v38, %v1259_v31  ;;  %v1911_v40 = vpop.f32.mrb[13].mxu1 }
 0x698   : > { %v1305_v42 = vpop.f32.mrb[14].mxu1 }
 0x699   : > { %v1912_v46 = vpop.f32.mrb[15].mxu1  ;;  %1922 = vmatmul.mubr.msk.bf16.vlgmr.msra.gmra.mrb[16].mxu0 %vm789_vm2, %v1308_v34 }
 0x69a   : > { %1937 = vmatprep.mubr.msk.bf16.mxu0 %vm2489_vm1, %v2488_v37  ;;  %1934 = vmatpush3.bf16.msra.mxu0 %v2087_v12 }
 0x69b   : > { %1935 = vmatprep.subr.bf16.mxu0 %v2488_v37 }
 0x69e   : > { %1936 = vmatpush3.bf16.msra.mxu0 %v2088_v44 }
 0x76c   : > { %v1385_v48 = vpop.f32.mrb[16].mxu0 }
 0x76d   : > { %v1386_v49 = vadd.f32 %v1799_v47, %v1385_v48  ;;  %v1923_v51 = vpop.f32.mrb[17].mxu0 }
 0x76e   : > { %v1388_v54 = vpop.f32.mrb[18].mxu0 }
 0x76f   : > { %v3062_v55 = vadd.f32 %v1386_v49, %v2829_v0  ;;  %v1389_v56 = vadd.f32 %v1799_v47, %v1388_v54  ;;  %v1924_v50 = vpop.f32.mrb[19].mxu0  ;;  %v1811_v54 = vld [vmem:[%s3207_s20] ss:$0 sm:$0xff] }
 0x771   : > { %v3065_v58 = vadd.f32 %v1389_v56, %v2831_v1  ;;  %v1396_v59 = vsel %vm604_vm0, %v3062_v55, 0.0 }
 0x772   : > { %1397 = vadd.xlane.f32.xlu0 %v1396_v59 }
 0x773   : > { %v1399_v36 = vsel %vm604_vm0, %v3065_v58, 0.0 }
 0x774   : > { %1400 = vadd.xlane.f32.xlu1 %v1399_v36 }
 0x7ff   : > { %v1398_v60 = vpop.xlane.xlu0 %1397 }
 0x800   : > { %v1402_v43 = vmul.f32 0.03125, %v1398_v60 }
 0x801   : > { %v1401_v53 = vpop.xlane.xlu1 %1400 }
 0x802   : > { %v1404_v30 = vsub.f32 %v3062_v55, %v1402_v43  ;;  %v1403_v0 = vmul.f32 0.03125, %v1401_v53 }
 0x804   : > { %v1405_v62 = vsub.f32 %v3065_v58, %v1403_v0  ;;  %v1406_v63 = vmul.f32 %v1404_v30, %v1404_v30 }
 0x806   : > { %v1408_v1 = vsel %vm604_vm0, %v1406_v63, 0.0  ;;  %v1407_v23 = vmul.f32 %v1405_v62, %v1405_v62 }
 0x807   : > { %1409 = vadd.xlane.f32.xlu0 %v1408_v1 }
 0x808   : > { %v1411_v2 = vsel %vm604_vm0, %v1407_v23, 0.0 }
 0x809   : > { %1412 = vadd.xlane.f32.xlu1 %v1411_v2 }
 0x894   : > { %v1410_v5 = vpop.xlane.xlu0 %1409 }
 0x895   : > { %v1414_v6 = vmul.f32 0.03125, %v1410_v5 }
 0x896   : > { %v1413_v61 = vpop.xlane.xlu1 %1412 }
 0x897   : > { %v1416_v45 = vadd.f32 1e-05, %v1414_v6  ;;  %v1415_v3 = vmul.f32 0.03125, %v1413_v61 }
 0x899   : > { %2161 = vrsqrt.f32 %v1416_v45  ;;  %v1417_v8 = vadd.f32 1e-05, %v1415_v3 }
 0x89b   : > { %2163 = vrsqrt.f32 %v1417_v8 }
 0x8a3   : > { %v2162_v9 = vpop.eup %2161 }
 0x8a4   : > { %v1420_v39 = vmul.f32 %v2162_v9, %v1404_v30 }
 0x8a5   : > { %v2164_v57 = vpop.eup %2163 }
 0x8a6   : > { %v1428_v13 = vmul.f32 %v1805_v11, %v1420_v39  ;;  %v1421_v52 = vmul.f32 %v2164_v57, %v1405_v62 }
 0x8a8   : > { %v1429_v16 = vmul.f32 %v1805_v11, %v1421_v52  ;;  %v1436_v18 = vadd.f32 %v1806_v14, %v1428_v13 }
 0x8aa   : > { %v1437_v20 = vadd.f32 %v1806_v14, %v1429_v16 }
 0x8ac   : > { %v1438_v22 = vpack.c.bf16 %v1437_v20, %v1436_v18 }
 0x8ae   : > { %1930 = vmatmul.mubr.msk.bf16.vlgmr.msra.gmra.mrb[16].mxu1 %vm604_vm0, %v1438_v22 }
 0x981   : > { %v1499_v25 = vpop.f32.mrb[16].mxu1 }
 0x982   : > { %v1500_v10 = vadd.f32 %v1807_v24, %v1499_v25  ;;  %v1931_v26 = vpop.f32.mrb[17].mxu1 }
 0x983   : > { %v1502_v7 = vpop.f32.mrb[18].mxu1 }
 0x984   : > { %v1506_v15 = vmul.f32 %v1500_v10, %v1500_v10  ;;  %v1503_v17 = vadd.f32 %v1807_v24, %v1502_v7  ;;  %v1932_v27 = vpop.f32.mrb[19].mxu1 }
 0x986   : > { %v1508_v19 = vmul.f32 %v1506_v15, %v1500_v10  ;;  %v1507_v21 = vmul.f32 %v1503_v17, %v1503_v17 }
 0x988   : > { %v1510_v29 = vmul.f32 0.044715, %v1508_v19  ;;  %v1509_v28 = vmul.f32 %v1507_v21, %v1503_v17 }
 0x98a   : > { %v1512_v31 = vadd.f32 %v1510_v29, %v1500_v10  ;;  %v1511_v33 = vmul.f32 0.044715, %v1509_v28 }
 0x98c   : > { %v1514_v37 = vmul.f32 0.7978846, %v1512_v31  ;;  %v1513_v35 = vadd.f32 %v1511_v33, %v1503_v17 }
 0x98e   : > { %2165 = vtanh.f32 %v1514_v37  ;;  %v1515_v32 = vmul.f32 0.7978846, %v1513_v35 }
 0x990   : > { %2167 = vtanh.f32 %v1515_v32 }
 0x998   : > { %v2166_v38 = vpop.eup %2165 }
 0x999   : > { %v1518_v34 = vadd.f32 1.0, %v2166_v38 }
 0x99a   : > { %v2168_v40 = vpop.eup %2167 }
 0x99b   : > { %v1520_v42 = vmul.f32 0.5, %v1518_v34  ;;  %v1519_v46 = vadd.f32 1.0, %v2168_v40 }
 0x99d   : > { %v1521_v47 = vmul.f32 0.5, %v1519_v46  ;;  %v1522_v48 = vmul.f32 %v1520_v42, %v1500_v10 }
 0x99f   : > { %v1523_v49 = vmul.f32 %v1521_v47, %v1503_v17 }
 0x9a1   : > { %v1524_v51 = vpack.c.bf16 %v1523_v49, %v1522_v48 }
 0x9a3   : > { %1938 = vmatmul.mubr.msk.bf16.vlgmr.msra.gmra.mrb[20].mxu0 %vm604_vm0, %v1524_v51 }
 0xa76   : > { %v1585_v56 = vpop.f32.mrb[20].mxu0 }
 0xa77   : > { %v1586_v50 = vadd.f32 %v1811_v54, %v1585_v56  ;;  %v1939_v59 = vpop.f32.mrb[21].mxu0 }
 0xa78   : > { %v1588_v36 = vpop.f32.mrb[22].mxu0 }
 0xa79   : > { %v1592_v60 = vadd.f32 %v1586_v50, %v1436_v18  ;;  %v1589_v43 = vadd.f32 %v1811_v54, %v1588_v36  ;;  %v1940_v53 = vpop.f32.mrb[23].mxu0 }
 0xa7b   : > { %v1594_v30 = vadd.f32 %v1592_v60, %v3062_v55  ;;  %v1593_v0 = vadd.f32 %v1589_v43, %v1437_v20 }
 0xa7d   : > { %1596 = vst.msk [vmem:[%s591_s24] sm:$0xff] %vm604_vm0, %v1594_v30  ;;  %v1595_v62 = vadd.f32 %v1593_v0, %v3065_v58 }
 0xa7f   : > { %1597 = vst.msk [vmem:[%s591_s24 + $0x8] sm:$0xff] %vm604_vm0, %v1595_v62 }
 0xa80   : > { %2406 = shalt.err (!%p2403_p4)
}
 0xa81   : > { %s2407_s15 = scalar_lea.hbm %s3100_s18, 256  ;;  %s2411_s20 = scalar_lea.hbm %s3209_s27, 512 }
 0xa82   : > { %p2408_p12 = scmp.ne.s32.totalorder %s3100_s18, %s2407_s15  ;;  %p2412_p11 = scmp.lt.u32.totalorder %s3100_s18, %s3209_s27 }
 0xa83   : > { %p2413_p13 = scmp.lt.u32.totalorder %s2411_s20, %s2407_s15  ;;  %p2415_p6 = scmp.lt.u32.totalorder %s2407_s15, %s3100_s18 }
 0xa84   : > { %p2409_p7 = pnand %p2408_p12, %p3210_p9 }
 0xa85   : > { %p2414_p1 = por %p2413_p13, %p2412_p11 }
 0xa86   : > { %p2410_p8 = pneg %p2409_p7 }
 0xa87   : > { %p2416_p5 = por %p2415_p6, %p2414_p1 }
 0xa89   : > { %p2417_p10 = pnand %p2416_p5, %p2410_p8 }
 0xa8b   : > { %2420 = shalt.err (!%p2417_p10)
}
 0xa8c   : > { %s2492_s16 = smov 128   ;;  %s2493_s25 = smov 8  }
 0xa8d   : > { %1975 = dma.vmem_to_hbm [thread:$0]  (%p3210_p9), %s3102_s29, 256, %s3100_s18, %s3107_s22, %s2492_s16, %s2492_s16, %s2493_s25  }
 0xa8e PF: > { %s3211_s26 = sld [smem:[#allocation26_spill]]  ;;  %s3212_s14 = sld [smem:[#allocation23_spill]] }
 0xa8f   : > { %s3213_s21 = sld [smem:[#allocation30_spill]] }
 0xa94   : > { %p2022_p0 = scmp.ge.s32.totalorder %s3211_s26, 2  ;;  %s1627_s30 = sand.u32 1, %s3212_s14  }
 0xa95   : > { %p3214_p2 = scmp.ne.s32.totalorder %s3213_s21, 0  ;;  %s1628_s15 = scalar_lea.sflag [#allocation4], %s1627_s30 }
 0xa97   : > { %p2003_p3 = pnand %p2022_p0, %p3214_p2 }
 0xa99   : > { %2458 = dma.done.wait (!%p2003_p3), %s1628_s15, 256  }
 0xa9a   : > { %2460 = vsyncadd (!%p2003_p3), %s1628_s15, 4294967040  ;;  %s3215_s21 = sld [smem:[#allocation27_spill]]  ;;  %s3216_s18 = sld [smem:[#allocation24_spill]] }
 0xa9b   : > { %s3217_s19 = sld [smem:[#allocation25_spill]]  ;;  %s3218_s20 = sld [smem:[#allocation28_spill]] }
 0xaa0   : > { %p30_p4 = scmp.ge.s32.totalorder %s3215_s21, 4  }
 0xaa2   :  { %32 = sbr.rel (!%p30_p4) target bundleno = 12 (0xc), region = 148 }
 0xaa9   :  { %1633 = vsyncpa [#allocation3], 1 }
 0xaaa   :  { %1635 = vsyncpa [#allocation3 + $0x1], 1 }
 0xaab   :  { %1636 = vsyncpa [#allocation6], 1 }
 0xaac   :  { %1637 = vsyncpa [#allocation9], 1 }
 0xaad   :  { %1638 = vsyncpa [#allocation12], 1 }
 0xaae   :  { %1639 = vsyncpa [#allocation15], 1 }
 0xaaf   :  { %1640 = vsyncpa [#allocation4], 1 }
 0xab0   :  { %1642 = vsyncpa [#allocation4 + $0x1], 1 }

// kernel: tpu_custom_call.1
= control target key start
LH: loop header
LB: loop body
LE: loop exit
PB: predicated region body
PF: predicated region fallthrough
CT: control target
= control target key end

     0   :  { %s3148_s0 = inlined_call_operand.vmem [shape: f32[32,32], index: 0, kind: input, shape index: {}]   ;;  %s3149_s1 = inlined_call_operand.vmem [shape: f32[1,32], index: 1, kind: input, shape index: {}]   ;;  %s3150_s2 = inlined_call_operand.hbm [shape: f32[1,32], index: 2, kind: input, shape index: {}]   ;;  %s3151_s3 = inlined_call_operand.hbm [shape: bf16[32,192], index: 3, kind: input, shape index: {}]   ;;  %s3152_s4 = inlined_call_operand.hbm [shape: f32[1,192], index: 4, kind: input, shape index: {}]   ;;  %s3153_s5 = inlined_call_operand.vmem [shape: bf16[64,64], index: 5, kind: input, shape index: {}]   ;;  %s3154_s6 = inlined_call_operand.hbm [shape: f32[1,64], index: 6, kind: input, shape index: {}]   ;;  %s3155_s7 = inlined_call_operand.vmem [shape: bf16[64,32], index: 7, kind: input, shape index: {}]   ;;  %s3156_s8 = inlined_call_operand.hbm [shape: f32[1,32], index: 8, kind: input, shape index: {}]   ;;  %s3157_s9 = inlined_call_operand.hbm [shape: f32[1,32], index: 9, kind: input, shape index: {}]   ;;  %s3158_s10 = inlined_call_operand.hbm [shape: f32[1,32], index: 10, kind: input, shape index: {}]   ;;  %s3159_s11 = inlined_call_operand.vmem [shape: bf16[32,32], index: 11, kind: input, shape index: {}]   ;;  %s3160_s12 = inlined_call_operand.hbm [shape: f32[1,32], index: 12, kind: input, shape index: {}]   ;;  %s3161_s13 = inlined_call_operand.vmem [shape: bf16[32,32], index: 13, kind: input, shape index: {}]   ;;  %s3162_s14 = inlined_call_operand.vmem [shape: f32[1,32], index: 14, kind: input, shape index: {}]   ;;  %s3163_s15 = inlined_call_operand.hbm [shape: f32[32,32], index: 15, kind: output, shape index: {}]  }
   0x1   :  { %3178 = sst [smem:[#allocation31_spill]] %s3161_s13 }
   0x2   :  { %3179 = sst [smem:[#allocation32_spill]] %s3162_s14 }
   0x3   :  { %3180 = sst [smem:[#allocation33_spill]] %s3163_s15 }
   0x4   :  { %20 = vsyncpa [#allocation3], 0 }
   0x5   :  { %21 = vsyncpa [#allocation6], 0 }
   0x6   :  { %22 = vsyncpa [#allocation9], 0 }
   0x7   :  { %23 = vsyncpa [#allocation12], 0 }
   0x8   :  { %24 = vsyncpa [#allocation15], 0 }
   0x9   :  { %25 = vsyncpa [#allocation4], 0 }
   0xa   :  { %27 = vsyncpa [#allocation4 + $0x1], 0  ;;  %s2574_s18 = smov 0   ;;  %s2576_s19 = smov 0  }
   0xb   :  { %s2578_s20 = smov 0   ;;  %s2580_s21 = smov 0  }
   0xc LB: > { %3181 = sst [smem:[#allocation23_spill]] %s2463_s18  ;;  %s2595_s22 = sadd.s32 4294967295, %s2475_s21   ;;  %s2475_s21 = sphi %s2580_s21, %s3215_s21   ;;  %s2471_s20 = sphi %s2578_s20, %s3218_s20   ;;  %s2467_s19 = sphi %s2576_s19, %s3217_s19   ;;  %s2463_s18 = sphi %s2574_s18, %s3216_s18  }
   0xd   : > { %3182 = sst [smem:[#allocation24_spill]] %s2467_s19  ;;  %s1753_s23 = sadd.s32 4294967294, %s2475_s21  }
   0xe   : > { %3183 = sst [smem:[#allocation25_spill]] %s2471_s20  ;;  %s2599_s24 = sadd.s32 1, %s2475_s21  }
   0xf   : > { %3184 = sst [smem:[#allocation26_spill]] %s2475_s21  ;;  %s360_s25 = sadd.s32 1, %s2471_s20 }
  0x10   : > { %3185 = sst [smem:[#allocation27_spill]] %s2599_s24  ;;  %s357_s26 = ssub.s32 %s2475_s21, %s2599_s24 }
  0x11   : > { %p370_p0 = scmp.ne.s32.totalorder %s2471_s20, %s2467_s19  ;;  %p358_p1 = scmp.eq.s32.totalorder %s357_s26, 0 }
  0x12   : > { %p371_p2 = scmp.eq.s32.totalorder %s2595_s22, 1  ;;  %p376_p3 = scmp.ne.s32.totalorder %s2467_s19, %s2463_s18 }
  0x13   : > { %p377_p4 = scmp.eq.s32.totalorder %s1753_s23, 1  ;;  %p1754_p7 = scmp.ge.s32.totalorder %s2475_s21, 1 }
  0x14   : > { %s2610_s27 = scalar_select %p358_p1, %s2471_s20, %s360_s25  }
  0x15   : > { %p2612_p5 = por %p371_p2, %p370_p0  ;;  %p2616_p6 = por %p377_p4, %p376_p3 }
  0x16   : > { %3186 = sst [smem:[#allocation28_spill]] %s2610_s27  ;;  %p384_p8 = scmp.lt.s32.totalorder %s2475_s21, 3 }
  0x17   : > { %s3187_s28 = scalar_select %p2612_p5, 1, 0 }
  0x18   : > { %s3189_s29 = scalar_select %p2616_p6, 1, 0 }
  0x19   : > { %3188 = sst [smem:[#allocation29_spill]] %s3187_s28  ;;  %p3171_p9 = scmp.eq.s32.totalorder %s2595_s22, 0 }
  0x1a   : > { %3190 = sst [smem:[#allocation30_spill]] %s3189_s29  ;;  %p2623_p10 = pnand %p1754_p7, %p384_p8 }
  0x1b   : > { %s2477_s16 = smov [#allocation5]   ;;  %s2478_s25 = smov [#allocation8]  }
  0x1c   : > { %s3191_s30 = scalar_select %p2623_p10, 1, 0 }
  0x1d   : > { %s410_s17 = sshll.u32 %s2477_s16, 4  ;;  %p1977_p11 = pneg %p2623_p10  ;;  %s2629_s17 = int_to_ptr.vmem [resolvable:$true] %s410_s17 }
  0x1e   : > { %s438_s26 = sshll.u32 %s2478_s25, 4  ;;  %s2479_s27 = smov [#allocation11]   ;;  %s2637_s26 = int_to_ptr.vmem [resolvable:$true] %s438_s26 }
  0x1f   : > { %p2633_p12 = pnand %p3171_p9, %p1977_p11  ;;  %s2639_s20 = sshll.u32 %s2479_s27, 4  ;;  %s464_s20 = int_to_ptr.vmem [resolvable:$true] %s2639_s20 }
  0x20   : > { %s2169_s16 = scalar_lea.hbm %s3151_s3, 512 }
  0x21   : > { %p2170_p13 = scmp.ne.s32.totalorder %s3151_s3, %s2169_s16  ;;  %p2649_p0 = pneg %p2633_p12 }
  0x22   : > { %p2176_p3 = scmp.lt.u32.totalorder %s2169_s16, %s3151_s3 }
  0x23   : > { %p2172_p1 = pnand %p2649_p0, %p2170_p13 }
  0x25   : > { %p2173_p2 = pneg %p2172_p1 }
  0x27   : > { %p2178_p4 = pnand %p2176_p3, %p2173_p2 }
  0x29   : > { %2181 = shalt.err (!%p2178_p4)
}
  0x2a   : > { %s2182_s18 = scalar_lea.vmem %s2629_s17, 512  ;;  %p2190_p9 = scmp.lt.s32.totalorder %s2629_s17, %s2629_s17 }
  0x2b   : > { %p2183_p7 = scmp.ne.s32.totalorder %s2629_s17, %s2182_s18  ;;  %p2191_p6 = scmp.lt.s32.totalorder %s2182_s18, %s2182_s18 }
  0x2d   : > { %p2185_p8 = pnand %p2183_p7, %p2649_p0  ;;  %p2192_p13 = por %p2191_p6, %p2190_p9 }
  0x2f   : > { %p2186_p11 = pneg %p2185_p8 }
  0x31   : > { %p2193_p1 = pnand %p2192_p13, %p2186_p11 }
  0x33   : > { %2196 = shalt.err (!%p2193_p1)
}
  0x34   : > { %s2480_s21 = smov 128   ;;  %s2481_s24 = smov 8  }
  0x35   : > { %1983 = dma.hbm_to_vmem [thread:$0]  (!%p2633_p12), %s3151_s3, 512, %s2629_s17, [#allocation6], %s2480_s21, %s2480_s21, %s2481_s24  }
  0x36   : > { %s2197_s28 = scalar_lea.hbm %s3154_s6, 16 }
  0x37   : > { %p2198_p6 = scmp.ne.s32.totalorder %s3154_s6, %s2197_s28  ;;  %p2204_p3 = scmp.lt.u32.totalorder %s2197_s28, %s3154_s6 }
  0x39   : > { %p2200_p9 = pnand %p2198_p6, %p2649_p0 }
  0x3b   : > { %p2201_p2 = pneg %p2200_p9 }
  0x3d   : > { %p2206_p4 = pnand %p2204_p3, %p2201_p2 }
  0x3f   : > { %2209 = shalt.err (!%p2206_p4)
}
  0x40   : > { %s2210_s17 = scalar_lea.vmem %s2637_s26, 16  ;;  %s2217_s14 = scalar_lea.vmem %s2637_s26, 32 }
  0x41   : > { %p2211_p7 = scmp.ne.s32.totalorder %s2637_s26, %s2210_s17  ;;  %p2218_p13 = scmp.lt.s32.totalorder %s2637_s26, %s2637_s26 }
  0x42   : > { %p2219_p1 = scmp.lt.s32.totalorder %s2217_s14, %s2210_s17 }
  0x43   : > { %p2213_p8 = pnand %p2211_p7, %p2649_p0 }
  0x44   : > { %p2220_p6 = por %p2219_p1, %p2218_p13 }
  0x45   : > { %p2214_p11 = pneg %p2213_p8 }
  0x47   : > { %p2221_p9 = pnand %p2220_p6, %p2214_p11 }
  0x49   : > { %2224 = shalt.err (!%p2221_p9)
}
  0x4a   : > { %1989 = dma.hbm_to_vmem [thread:$0]  (!%p2633_p12), %s3154_s6, 16, %s2637_s26, [#allocation9]  }
  0x4b   : > { %s2225_s24 = scalar_lea.hbm %s3157_s9, 16 }
  0x4c   : > { %p2226_p2 = scmp.ne.s32.totalorder %s3157_s9, %s2225_s24  ;;  %p2232_p7 = scmp.lt.u32.totalorder %s2225_s24, %s3157_s9 }
  0x4e   : > { %p2228_p3 = pnand %p2226_p2, %p2649_p0 }
  0x50   : > { %p2229_p4 = pneg %p2228_p3 }
  0x52   : > { %p2234_p8 = pnand %p2232_p7, %p2229_p4 }
  0x54   : > { %2237 = shalt.err (!%p2234_p8)
}
  0x55   : > { %s2238_s18 = scalar_lea.vmem %s464_s20, 16  ;;  %s2245_s26 = scalar_lea.vmem %s464_s20, 32 }
  0x56   : > { %p2239_p11 = scmp.ne.s32.totalorder %s464_s20, %s2238_s18  ;;  %p2246_p6 = scmp.lt.s32.totalorder %s464_s20, %s464_s20 }
  0x57   : > { %p2247_p9 = scmp.lt.s32.totalorder %s2245_s26, %s2238_s18 }
  0x58   : > { %p2241_p13 = pnand %p2239_p11, %p2649_p0 }
  0x59   : > { %p2248_p5 = por %p2247_p9, %p2246_p6 }
  0x5a   : > { %p2242_p1 = pneg %p2241_p13 }
  0x5c   : > { %p2249_p10 = pnand %p2248_p5, %p2242_p1 }
  0x5e   : > { %2252 = shalt.err (!%p2249_p10)
}
  0x5f   : > { %1995 = dma.hbm_to_vmem [thread:$0]  (!%p2633_p12), %s3157_s9, 16, %s464_s20, [#allocation12]  }
  0x60   : > { %s2482_s13 = smov [#allocation2]   ;;  %s2483_s28 = smov [#allocation7]  }
  0x61   : > { %s400_s19 = sshll.u32 %s2482_s13, 4  ;;  %s424_s21 = sshll.u32 %s2483_s28, 4  ;;  %s401_s19 = int_to_ptr.vmem [resolvable:$true] %s400_s19  ;;  %s425_s21 = int_to_ptr.vmem [resolvable:$true] %s424_s21 }
  0x62   : > { %s2253_s16 = scalar_lea.hbm %s3150_s2, 16 }
  0x63   : > { %p2254_p5 = scmp.ne.s32.totalorder %s3150_s2, %s2253_s16  ;;  %p2260_p3 = scmp.lt.u32.totalorder %s2253_s16, %s3150_s2 }
  0x65   : > { %p2256_p10 = pnand %p2254_p5, %p2649_p0 }
  0x67   : > { %p2257_p2 = pneg %p2256_p10 }
  0x69   : > { %p2262_p4 = pnand %p2260_p3, %p2257_p2 }
  0x6b   : > { %2265 = shalt.err (!%p2262_p4)
}
  0x6c   : > { %s2266_s20 = scalar_lea.vmem %s401_s19, 16  ;;  %s2273_s17 = scalar_lea.vmem %s401_s19, 32 }
  0x6d   : > { %p2267_p7 = scmp.ne.s32.totalorder %s401_s19, %s2266_s20  ;;  %p2274_p13 = scmp.lt.s32.totalorder %s401_s19, %s401_s19 }
  0x6e   : > { %p2275_p1 = scmp.lt.s32.totalorder %s2273_s17, %s2266_s20 }
  0x6f   : > { %p2269_p8 = pnand %p2267_p7, %p2649_p0 }
  0x70   : > { %p2276_p6 = por %p2275_p1, %p2274_p13 }
  0x71   : > { %p2270_p11 = pneg %p2269_p8 }
  0x73   : > { %p2277_p9 = pnand %p2276_p6, %p2270_p11 }
  0x75   : > { %2280 = shalt.err (!%p2277_p9)
}
  0x76   : > { %1980 = dma.hbm_to_vmem [thread:$0]  (!%p2633_p12), %s3150_s2, 16, %s401_s19, [#allocation3]  }
  0x77   : > { %s2281_s29 = scalar_lea.hbm %s3152_s4, 32 }
  0x78   : > { %p2282_p5 = scmp.ne.s32.totalorder %s3152_s4, %s2281_s29  ;;  %p2288_p3 = scmp.lt.u32.totalorder %s2281_s29, %s3152_s4 }
  0x7a   : > { %p2284_p10 = pnand %p2282_p5, %p2649_p0 }
  0x7c   : > { %p2285_p2 = pneg %p2284_p10 }
  0x7e   : > { %p2290_p4 = pnand %p2288_p3, %p2285_p2 }
  0x80   : > { %2293 = shalt.err (!%p2290_p4)
}
  0x81   : > { %s2294_s26 = scalar_lea.vmem %s425_s21, 32  ;;  %p2302_p13 = scmp.lt.s32.totalorder %s425_s21, %s425_s21 }
  0x82   : > { %p2295_p7 = scmp.ne.s32.totalorder %s425_s21, %s2294_s26  ;;  %p2303_p1 = scmp.lt.s32.totalorder %s2294_s26, %s2294_s26 }
  0x84   : > { %p2297_p8 = pnand %p2295_p7, %p2649_p0  ;;  %p2304_p6 = por %p2303_p1, %p2302_p13 }
  0x86   : > { %p2298_p11 = pneg %p2297_p8 }
  0x88   : > { %p2305_p9 = pnand %p2304_p6, %p2298_p11 }
  0x8a   : > { %2308 = shalt.err (!%p2305_p9)
}
  0x8b   : > { %1986 = dma.hbm_to_vmem [thread:$0]  (!%p2633_p12), %s3152_s4, 32, %s425_s21, [#allocation6]  }
  0x8c   : > { %s2484_s17 = smov [#allocation10]   ;;  %s2485_s13 = smov [#allocation13]  }
  0x8d   : > { %s452_s14 = sshll.u32 %s2484_s17, 4  ;;  %s474_s28 = sshll.u32 %s2485_s13, 4  ;;  %s453_s14 = int_to_ptr.vmem [resolvable:$true] %s452_s14  ;;  %s475_s28 = int_to_ptr.vmem [resolvable:$true] %s474_s28 }
  0x8e   : > { %s2309_s16 = scalar_lea.hbm %s3156_s8, 16 }
  0x8f   : > { %p2310_p5 = scmp.ne.s32.totalorder %s3156_s8, %s2309_s16  ;;  %p2316_p3 = scmp.lt.u32.totalorder %s2309_s16, %s3156_s8 }
  0x91   : > { %p2312_p10 = pnand %p2310_p5, %p2649_p0 }
  0x93   : > { %p2313_p2 = pneg %p2312_p10 }
  0x95   : > { %p2318_p4 = pnand %p2316_p3, %p2313_p2 }
  0x97   : > { %2321 = shalt.err (!%p2318_p4)
}
  0x98   : > { %s2322_s21 = scalar_lea.vmem %s453_s14, 16  ;;  %s2329_s19 = scalar_lea.vmem %s453_s14, 32 }
  0x99   : > { %p2323_p7 = scmp.ne.s32.totalorder %s453_s14, %s2322_s21  ;;  %p2330_p13 = scmp.lt.s32.totalorder %s453_s14, %s453_s14 }
  0x9a   : > { %p2331_p1 = scmp.lt.s32.totalorder %s2329_s19, %s2322_s21 }
  0x9b   : > { %p2325_p8 = pnand %p2323_p7, %p2649_p0 }
  0x9c   : > { %p2332_p6 = por %p2331_p1, %p2330_p13 }
  0x9d   : > { %p2326_p11 = pneg %p2325_p8 }
  0x9f   : > { %p2333_p9 = pnand %p2332_p6, %p2326_p11 }
  0xa1   : > { %2336 = shalt.err (!%p2333_p9)
}
  0xa2   : > { %1992 = dma.hbm_to_vmem [thread:$0]  (!%p2633_p12), %s3156_s8, 16, %s453_s14, [#allocation9]  }
  0xa3   : > { %s2337_s29 = scalar_lea.hbm %s3158_s10, 16 }
  0xa4   : > { %p2338_p5 = scmp.ne.s32.totalorder %s3158_s10, %s2337_s29  ;;  %p2344_p3 = scmp.lt.u32.totalorder %s2337_s29, %s3158_s10 }
  0xa6   : > { %p2340_p10 = pnand %p2338_p5, %p2649_p0 }
  0xa8   : > { %p2341_p2 = pneg %p2340_p10 }
  0xaa   : > { %p2346_p4 = pnand %p2344_p3, %p2341_p2 }
  0xac   : > { %2349 = shalt.err (!%p2346_p4)
}
  0xad   : > { %s2350_s26 = scalar_lea.vmem %s475_s28, 16  ;;  %s2357_s14 = scalar_lea.vmem %s475_s28, 32 }
  0xae   : > { %p2351_p7 = scmp.ne.s32.totalorder %s475_s28, %s2350_s26  ;;  %p2358_p13 = scmp.lt.s32.totalorder %s475_s28, %s475_s28 }
  0xaf   : > { %p2359_p1 = scmp.lt.s32.totalorder %s2357_s14, %s2350_s26 }
  0xb0   : > { %p2353_p8 = pnand %p2351_p7, %p2649_p0 }
  0xb1   : > { %p2360_p6 = por %p2359_p1, %p2358_p13 }
  0xb2   : > { %p2354_p11 = pneg %p2353_p8 }
  0xb4   : > { %p2361_p9 = pnand %p2360_p6, %p2354_p11 }
  0xb6   : > { %2364 = shalt.err (!%p2361_p9)
}
  0xb7   : > { %1998 = dma.hbm_to_vmem [thread:$0]  (!%p2633_p12), %s3158_s10, 16, %s475_s28, [#allocation12]  }
  0xb8   : > { %s2486_s20 = smov [#allocation14]   ;;  %s2365_s29 = scalar_lea.hbm %s3160_s12, 16 }
  0xb9   : > { %s488_s17 = sshll.u32 %s2486_s20, 4  ;;  %p2366_p5 = scmp.ne.s32.totalorder %s3160_s12, %s2365_s29  ;;  %s489_s17 = int_to_ptr.vmem [resolvable:$true] %s488_s17 }
  0xba   : > { %p2372_p3 = scmp.lt.u32.totalorder %s2365_s29, %s3160_s12 }
  0xbb   : > { %p2368_p10 = pnand %p2366_p5, %p2649_p0 }
  0xbd   : > { %p2369_p2 = pneg %p2368_p10 }
  0xbf   : > { %p2374_p4 = pnand %p2372_p3, %p2369_p2 }
  0xc1   : > { %2377 = shalt.err (!%p2374_p4)
}
  0xc2   : > { %s2378_s28 = scalar_lea.vmem %s489_s17, 16  ;;  %s2385_s26 = scalar_lea.vmem %s489_s17, 32 }
  0xc3   : > { %p2379_p7 = scmp.ne.s32.totalorder %s489_s17, %s2378_s28  ;;  %p2386_p13 = scmp.lt.s32.totalorder %s489_s17, %s489_s17 }
  0xc4   : > { %p2387_p1 = scmp.lt.s32.totalorder %s2385_s26, %s2378_s28 }
  0xc5   : > { %p2381_p8 = pnand %p2379_p7, %p2649_p0 }
  0xc6   : > { %p2388_p6 = por %p2387_p1, %p2386_p13 }
  0xc7   : > { %p2382_p11 = pneg %p2381_p8 }
  0xc9   : > { %p2389_p9 = pnand %p2388_p6, %p2382_p11 }
  0xcb   : > { %2392 = shalt.err (!%p2389_p9)
}
  0xcc   : > { %2001 = dma.hbm_to_vmem [thread:$0]  (!%p2633_p12), %s3160_s12, 16, %s489_s17, [#allocation15]  }
  0xcd   : > { %p3194_p5 = scmp.ne.s32.totalorder %s3191_s30, 0 }
  0xce   : > { %p3195_p10 = scmp.eq.s32.totalorder (!%p3194_p5), %s2595_s22, 0 }
  0xcf   : > { %516 = sbr.rel (%p3194_p5) target bundleno = 2702 (0xa8e), region = 80 }
  0xd6   : > { %2438 = dma.done.wait (%p3195_p10), [#allocation3], 16   ;;  %p3196_p0 = pmov %p3195_p10 }
  0xd8   : > { %2440 = vsyncadd (%p3196_p0), [#allocation3], 4294967280  ;;  %p3197_p2 = pmov %p3196_p0 }
  0xd9   : > { %p3198_p3 = pmov %p3196_p0 }
  0xda   : > { %2442 = dma.done.wait (%p3197_p2), [#allocation6], 544  }
  0xdb   : > { %2444 = vsyncadd (%p3198_p3), [#allocation6], 4294966752  ;;  %p3199_p4 = pmov %p3196_p0 }
  0xdc   : > { %p3200_p12 = pmov %p3196_p0 }
  0xdd   : > { %2446 = dma.done.wait (%p3199_p4), [#allocation9], 32  }
  0xde   : > { %2448 = vsyncadd (%p3200_p12), [#allocation9], 4294967264  ;;  %p3201_p7 = pmov %p3196_p0 }
  0xdf   : > { %p3202_p8 = pmov %p3196_p0 }
  0xe0   : > { %2450 = dma.done.wait (%p3201_p7), [#allocation12], 32  }
  0xe1   : > { %2452 = vsyncadd (%p3202_p8), [#allocation12], 4294967264  ;;  %p3203_p11 = pmov %p3196_p0 }
  0xe2   : > { %p3204_p13 = pmov %p3196_p0 }
  0xe3   : > { %2454 = dma.done.wait (%p3203_p11), [#allocation15], 16  }
  0xe4   : > { %2456 = vsyncadd (%p3204_p13), [#allocation15], 4294967280  ;;  %s1774_s15 = sshll.u32 %s2595_s22, 1  ;;  %vm604_vm0 = vcmask 261120   ;;  %v2071_v14 = vld [vmem:[#allocation5 + $0x4] ss:$8 sps:$4 sm:$0xff]   ;;  %v655_v41 = vlaneseq }
  0xe5   : > { %p593_p1 = scmp.lt.s32.totalorder %s1774_s15, 3  ;;  %v2073_v15 = vld [vmem:[#allocation5] ss:$8 sps:$4 sm:$0xff]   ;;  %688 = vmatprep.subr.bf16.mxu0 %v2071_v14  ;;  %v2074_v16 = vld [vmem:[#allocation5 + $0x14] ss:$8 sps:$4 sm:$0xff]   ;;  %v2487_v18 = vmov 0  }
  0xe6   : > { %689 = vmatpush1.bf16.msra.mxu0 %v2073_v15  ;;  %v2076_v17 = vld [vmem:[#allocation5 + $0x10] ss:$8 sps:$4 sm:$0xff]   ;;  %720 = vmatprep.mubr.bf16.mxu0 %v2487_v18  ;;  %v1776_v27 = vld [vmem:[%s3149_s1] ss:$0 sm:$0xff]  ;;  %v2488_v37 = vmov 0.0   ;;  %v2078_v38 = vld [vmem:[%s3153_s5 + $0x8] sm:$0xff]  }
  0xe7   : > { %s3220_s15 = smov (!%p593_p1, %s1774_s15), 3  ;;  %690 = vmatprep.subr.bf16.mxu0 %v2074_v16  ;;  %v1777_v31 = vld [vmem:[#allocation2] ss:$0 sm:$0xff]  ;;  %1857 = vmatprep.subr.bf16.mxu1 %v2488_v37  ;;  %v2079_v39 = vld [vmem:[%s3153_s5 + $0x10] sm:$0xff]   ;;  %v2080_v40 = vld [vmem:[%s3153_s5 + $0x18] sm:$0xff]   ;;  %vm2489_vm1 = vmmov 0  }
  0xe8   : > { %s1775_s30 = sshll.u32 %s3220_s15, 3  ;;  %v2077_v36 = vld [vmem:[%s3153_s5] sm:$0xff]   ;;  %1865 = vmatprep.mubr.msk.bf16.mxu1 %vm2489_vm1, %v2488_v37  ;;  %v656_v42 = vshrl.u32 %v655_v41, 7  ;;  %s2490_s14 = smov 64   ;;  %vm789_vm2 = vcmask 523264   ;;  %vm870_vm3 = vcmask 1043456  }
  0xe9   : > { %s596_s20 = scalar_lea.vmem %s3148_s0, %s1775_s30  ;;  %1858 = vmatpush3.bf16.msra.mxu1 %v2077_v36  ;;  %v653_v44 = vld [vmem:[#allocation7] sm:$0x3]  ;;  %vm857_vm4 = vcmask 64512   ;;  %s3205_s28 = sld [smem:[#allocation31_spill]] }
  0xea   : > { %v2829_v0 = vld [vmem:[%s596_s20] sm:$0xff]  ;;  %v2831_v1 = vld [vmem:[%s596_s20 + $0x8] sm:$0xff]  ;;  %691 = vmatpush1.bf16.msra.mxu0 %v2076_v17  ;;  %1859 = vmatprep.subr.bf16.mxu1 %v2488_v37  ;;  %v657_v43 = vsub.s32 0, %v656_v42  ;;  %v661_v45 = vsub.s32 1, %v656_v42  ;;  %s3206_s21 = sld [smem:[#allocation24_spill]]  ;;  %s3207_s20 = sld [smem:[#allocation32_spill]] }
  0xeb   : > { %v605_v2 = vsel %vm604_vm0, %v2829_v0, 0.0  ;;  %v608_v3 = vsel %vm604_vm0, %v2831_v1, 0.0  ;;  %s3208_s17 = sld [smem:[#allocation29_spill]]  ;;  %s1820_s13 = sshll.u32 %s2595_s22, 8 }
  0xec   : > { %606 = vadd.xlane.f32.xlu0 %v605_v2  ;;  %v658_v46 = vrot.slane %v653_v44, %v657_v43  ;;  %v662_v47 = vrot.slane %v653_v44, %v661_v45  ;;  %s3209_s27 = sld [smem:[#allocation33_spill]] }
  0xed   : > { %1860 = vmatpush3.bf16.msra.mxu1 %v2078_v38 }
  0xee   : > { %1861 = vmatprep.subr.bf16.mxu1 %v2488_v37 }
  0xf0   : > { %609 = vadd.xlane.f32.xlu0 %v608_v3  ;;  %s589_s15 = sand.u32 1, %s3206_s21  }
  0xf1   : > { %1862 = vmatpush3.bf16.msra.mxu1 %v2079_v39  ;;  %s1773_s30 = sshll.u32 %s589_s15, 4  ;;  %s3107_s22 = scalar_lea.sflag [#allocation4], %s589_s15 }
  0xf2   : > { %1863 = vmatprep.subr.bf16.mxu1 %v2488_v37  ;;  %s591_s24 = scalar_lea.vmem [#allocation16], %s1773_s30  ;;  %s3100_s18 = scalar_lea.hbm %s3209_s27, %s1820_s13 }
  0xf3   : > { %s1612_s29 = sshll.u32 %s591_s24, 4  ;;  %p3210_p9 = scmp.ne.s32.totalorder %s3208_s17, 0  ;;  %s3102_s29 = int_to_ptr.vmem [resolvable:$true] %s1612_s29 }
  0xf4   : > { %s2393_s26 = scalar_lea.vmem %s3102_s29, 256 }
  0xf5   : > { %1864 = vmatpush3.bf16.msra.mxu1 %v2080_v40  ;;  %p2394_p6 = scmp.ne.s32.totalorder %s3102_s29, %s2393_s26 }
  0xf7   : > { %p2395_p5 = pnand %p2394_p6, %p3210_p9 }
  0xf9   : > { %p2396_p10 = pneg %p2395_p5 }
 0x179   : > { %v607_v4 = vpop.xlane.xlu0 %606 }
 0x17a   : > { %v612_v5 = vmul.f32 0.03125, %v607_v4 }
 0x17c   : > { %v614_v6 = vsub.f32 %v2829_v0, %v612_v5 }
 0x17d   : > { %v610_v7 = vpop.xlane.xlu0 %609 }
 0x17e   : > { %v613_v8 = vmul.f32 0.03125, %v610_v7  ;;  %v616_v9 = vmul.f32 %v614_v6, %v614_v6 }
 0x180   : > { %v615_v10 = vsub.f32 %v2831_v1, %v613_v8  ;;  %v618_v11 = vsel %vm604_vm0, %v616_v9, 0.0 }
 0x181   : > { %619 = vadd.xlane.f32.xlu1 %v618_v11 }
 0x182   : > { %v617_v12 = vmul.f32 %v615_v10, %v615_v10 }
 0x184   : > { %v621_v13 = vsel %vm604_vm0, %v617_v12, 0.0 }
 0x185   : > { %622 = vadd.xlane.f32.xlu1 %v621_v13 }
 0x20e   : > { %v620_v19 = vpop.xlane.xlu1 %619 }
 0x20f   : > { %v624_v20 = vmul.f32 0.03125, %v620_v19 }
 0x211   : > { %v626_v21 = vadd.f32 1e-05, %v624_v20 }
 0x212   : > { %v623_v22 = vpop.xlane.xlu1 %622 }
 0x213   : > { %2089 = vrsqrt.f32 %v626_v21  ;;  %v625_v23 = vmul.f32 0.03125, %v623_v22 }
 0x215   : > { %v627_v24 = vadd.f32 1e-05, %v625_v23 }
 0x217   : > { %2091 = vrsqrt.f32 %v627_v24 }
 0x21d   : > { %v2090_v25 = vpop.eup %2089 }
 0x21e   : > { %v630_v26 = vmul.f32 %v2090_v25, %v614_v6 }
 0x220   : > { %v638_v30 = vmul.f32 %v1776_v27, %v630_v26 }
 0x221   : > { %v2092_v28 = vpop.eup %2091 }
 0x222   : > { %v631_v29 = vmul.f32 %v2092_v28, %v615_v10  ;;  %v646_v33 = vadd.f32 %v1777_v31, %v638_v30 }
 0x224   : > { %v639_v32 = vmul.f32 %v1776_v27, %v631_v29 }
 0x226   : > { %v647_v34 = vadd.f32 %v1777_v31, %v639_v32 }
 0x228   : > { %v648_v35 = vpack.c.bf16 %v647_v34, %v646_v33 }
 0x22a   : > { %1782 = vmatmul.mubr.msk.bf16.vlgmr.msra.gmra.mrb[0].mxu0 %vm604_vm0, %v648_v35 }
 0x2fd   : > { %v722_v48 = vpop.f32.mrb[0].mxu0 }
 0x2fe   : > { %v723_v49 = vadd.f32 %v722_v48, %v658_v46  ;;  %v724_v50 = vpop.f32.mrb[1].mxu0 }
 0x2ff   : > { %v725_v51 = vadd.f32 %v724_v50, %v662_v47  ;;  %v726_v52 = vpop.f32.mrb[2].mxu0 }
 0x300   : > { %v834_v53 = vpack.c.bf16 %v723_v49, %v723_v49  ;;  %v727_v54 = vadd.f32 %v726_v52, %v658_v46  ;;  %v728_v55 = vpop.f32.mrb[3].mxu0 }
 0x301   : > { %v731_v56 = vmul.f32 %v725_v51, %v725_v51  ;;  %v729_v57 = vadd.f32 %v728_v55, %v662_v47 }
 0x302   : > { %v835_v58 = vpack.c.bf16 %v727_v54, %v727_v54  ;;  %855 = vrot.lane.b32.xlu0 %v834_v53, %s2490_s14 }
 0x303   : > { %v733_v59 = vmul.f32 %v731_v56, %v725_v51  ;;  %v732_v60 = vmul.f32 %v729_v57, %v729_v57 }
 0x304   : > { %956 = vrot.lane.b32.xlu1 %v835_v58, %s2490_s14  ;;  %s2491_s14 = smov [#allocation16]  }
 0x305   : > { %v735_v61 = vmul.f32 0.044715, %v733_v59  ;;  %v734_v62 = vmul.f32 %v732_v60, %v729_v57  ;;  %s2397_s21 = sshll.u32 %s2491_s14, 4  ;;  %s2398_s21 = int_to_ptr.vmem [resolvable:$false] %s2397_s21 }
 0x306   : > { %s2399_s30 = scalar_lea.vmem %s2398_s21, 512  ;;  %p2400_p0 = scmp.lt.s32.totalorder %s3102_s29, %s2398_s21 }
 0x307   : > { %v737_v63 = vadd.f32 %v735_v61, %v725_v51  ;;  %v736_v2 = vmul.f32 0.044715, %v734_v62  ;;  %p2401_p2 = scmp.lt.s32.totalorder %s2399_s30, %s2393_s26 }
 0x309   : > { %v739_v3 = vmul.f32 0.7978846, %v737_v63  ;;  %v738_v4 = vadd.f32 %v736_v2, %v729_v57  ;;  %p2402_p3 = por %p2401_p2, %p2400_p0 }
 0x30b   : > { %2093 = vtanh.f32 %v739_v3  ;;  %v740_v5 = vmul.f32 0.7978846, %v738_v4  ;;  %p2403_p4 = pnand %p2402_p3, %p2396_p10 }
 0x30d   : > { %2095 = vtanh.f32 %v740_v5 }
 0x315   : > { %v2094_v6 = vpop.eup %2093 }
 0x316   : > { %v743_v7 = vadd.f32 1.0, %v2094_v6 }
 0x317   : > { %v2096_v8 = vpop.eup %2095 }
 0x318   : > { %v745_v9 = vmul.f32 0.5, %v743_v7  ;;  %v744_v10 = vadd.f32 1.0, %v2096_v8 }
 0x31a   : > { %v746_v11 = vmul.f32 0.5, %v744_v10  ;;  %v747_v12 = vmul.f32 %v745_v9, %v725_v51 }
 0x31c   : > { %v748_v13 = vmul.f32 %v746_v11, %v729_v57 }
 0x31e   : > { %v749_v14 = vpack.c.bf16 %v748_v13, %v747_v12 }
 0x320   : > { %1866 = vmatmul.mubr.msk.bf16.vlgmr.msra.gmra.mrb[0].mxu1 %vm789_vm2, %v749_v14  ;;  %939 = vxpose.xlu0.c.b16.start.end [1/1] (short) (narrow) %v835_v58, 64 }
 0x327   : > { %838 = vxpose.xlu1.c.b16.start.end [1/1] (short) (narrow) %v834_v53, 64 }
 0x374   : > { %v856_v15 = vpop.permute.xlu0 %855 }
 0x375   : > { %v872_v16 = vsel %vm870_vm3, %v856_v15, 0  ;;  %1941 = vmatprep.subr.msk.bf16.mxu0 %vm870_vm3, %v856_v15 }
 0x376   : > { %v957_v17 = vpop.permute.xlu1 %956  ;;  %1870 = vmatpush3.bf16.msra.mxu0 %v872_v16 }
 0x377   : > { %v971_v18 = vsel %vm870_vm3, %v957_v17, 0  ;;  %1942 = vmatprep.subr.msk.bf16.mxu1 %vm870_vm3, %v957_v17  ;;  %1889 = vmatprep.subr.bf16.mxu0 %v2488_v37 }
 0x378   : > { %1880 = vmatpush3.bf16.msra.mxu1 %v971_v18 }
 0x379   : > { %1901 = vmatprep.subr.bf16.mxu1 %v2488_v37 }
 0x386   : > { %v947_v19 = vpop.trf.xlu0 }
 0x387   : > { %1881 = vmatprep.mubr.msk.bf16.mxu1 %vm857_vm4, %v947_v19 }
 0x38a   : > { %v948_v20 = vpop.trf.xlu0 }
 0x38b   : > { %1882 = vmatmul.mubr.msk.bf16.vlgmr.msra.gmra.mrb[4].mxu1 %vm857_vm4, %v948_v20 }
 0x38d   : > { %v846_v21 = vpop.trf.xlu1 }
 0x38e   : > { %1871 = vmatprep.mubr.msk.bf16.mxu0 %vm857_vm4, %v846_v21  ;;  %v949_v22 = vpop.trf.xlu0 }
 0x38f   : > { %1885 = vmatprep.mubr.msk.bf16.mxu1 %vm857_vm4, %v949_v22 }
 0x391   : > { %v847_v23 = vpop.trf.xlu1 }
 0x392   : > { %1872 = vmatmul.mubr.msk.bf16.vlgmr.msra.gmra.mrb[4].mxu0 %vm857_vm4, %v847_v23  ;;  %v950_v24 = vpop.trf.xlu0 }
 0x393   : > { %1886 = vmatmul.mubr.msk.bf16.gmra.mrb[8].mxu1 %vm857_vm4, %v950_v24 }
 0x394   : > { %1909 = vmatprep.mubr.msk.bf16.mxu1 %vm2489_vm1, %v2488_v37 }
 0x395   : > { %v848_v25 = vpop.trf.xlu1 }
 0x396   : > { %1875 = vmatprep.mubr.msk.bf16.mxu0 %vm857_vm4, %v848_v25 }
 0x399   : > { %v849_v26 = vpop.trf.xlu1 }
 0x39a   : > { %1876 = vmatmul.mubr.msk.bf16.gmra.mrb[8].mxu0 %vm857_vm4, %v849_v26 }
 0x39b   : > { %1897 = vmatprep.mubr.msk.bf16.mxu0 %vm2489_vm1, %v2488_v37 }
 0x3f3   : > { %v2878_v27 = vpop.f32.mrb[0].mxu1 }
 0x3f4   : > { %v1867_v28 = vpop.f32.mrb[1].mxu1 }
 0x3f5   : > { %v2880_v29 = vpop.f32.mrb[2].mxu1 }
 0x3f6   : > { %v1868_v30 = vpop.f32.mrb[3].mxu1 }
 0x45e   : > { %v2882_v31 = vpop.f32.mrb[4].mxu1 }
 0x45f   : > { %v2884_v32 = vpop.f32.mrb[5].mxu1  ;;  %v1068_v48 = vsel %vm789_vm2, %v2882_v31, -inf }
 0x460   : > { %v2886_v33 = vpop.f32.mrb[6].mxu1  ;;  %v1062_v54 = vsel %vm789_vm2, %v2884_v32, -inf }
 0x461   : > { %v2888_v34 = vpop.f32.mrb[7].mxu1  ;;  %v1071_v52 = vsel %vm789_vm2, %v2886_v33, -inf }
 0x462   : > { %v1065_v55 = vsel %vm789_vm2, %v2888_v34, -inf }
 0x465   : > { %v1873_v35 = vpop.f32.mrb[4].mxu0 }
 0x466   : > { %v908_v36 = vpop.f32.mrb[5].mxu0  ;;  %v1044_v38 = vsel %vm789_vm2, %v1873_v35, -inf  ;;  %v2891_v39 = vpop.f32.mrb[8].mxu1 }
 0x467   : > { %1045 = vmax.xlane.f32.xlu0 %v1044_v38  ;;  %v1874_v40 = vpop.f32.mrb[6].mxu0  ;;  %v2893_v41 = vpop.f32.mrb[9].mxu1  ;;  %v1038_v46 = vsel %vm789_vm2, %v908_v36, -inf  ;;  %v1080_v62 = vsel %vm789_vm2, %v2891_v39, -inf }
 0x468   : > { %v911_v42 = vpop.f32.mrb[7].mxu0  ;;  %v1047_v43 = vsel %vm789_vm2, %v1874_v40, -inf  ;;  %v2896_v44 = vpop.f32.mrb[10].mxu1  ;;  %v1074_v60 = vsel %vm789_vm2, %v2893_v41, -inf }
 0x469   : > { %1048 = vmax.xlane.f32.xlu1 %v1047_v43  ;;  %v2898_v45 = vpop.f32.mrb[11].mxu1  ;;  %v1041_v47 = vsel %vm789_vm2, %v911_v42, -inf  ;;  %v1083_v63 = vsel %vm789_vm2, %v2896_v44, -inf }
 0x46a   : > { %v1077_v61 = vsel %vm789_vm2, %v2898_v45, -inf }
 0x46b   : > { %1039 = vmax.xlane.f32.xlu0 %v1038_v46 }
 0x46d   : > { %1042 = vmax.xlane.f32.xlu1 %v1041_v47  ;;  %v2904_v49 = vpop.f32.mrb[8].mxu0 }
 0x46e   : > { %v2906_v50 = vpop.f32.mrb[9].mxu0  ;;  %v1056_v56 = vsel %vm789_vm2, %v2904_v49, -inf }
 0x46f   : > { %1069 = vmax.xlane.f32.xlu0 %v1068_v48  ;;  %v2908_v51 = vpop.f32.mrb[10].mxu0  ;;  %v1050_v58 = vsel %vm789_vm2, %v2906_v50, -inf }
 0x470   : > { %v2912_v53 = vpop.f32.mrb[11].mxu0  ;;  %v1059_v57 = vsel %vm789_vm2, %v2908_v51, -inf }
 0x471   : > { %1072 = vmax.xlane.f32.xlu1 %v1071_v52  ;;  %v1053_v59 = vsel %vm789_vm2, %v2912_v53, -inf }
 0x473   : > { %1063 = vmax.xlane.f32.xlu0 %v1062_v54 }
 0x475   : > { %1066 = vmax.xlane.f32.xlu1 %v1065_v55 }
 0x477   : > { %1057 = vmax.xlane.f32.xlu0 %v1056_v56 }
 0x479   : > { %1060 = vmax.xlane.f32.xlu1 %v1059_v57 }
 0x47b   : > { %1051 = vmax.xlane.f32.xlu0 %v1050_v58 }
 0x47d   : > { %1054 = vmax.xlane.f32.xlu1 %v1053_v59 }
 0x47f   : > { %1075 = vmax.xlane.f32.xlu0 %v1074_v60 }
 0x481   : > { %1078 = vmax.xlane.f32.xlu1 %v1077_v61 }
 0x483   : > { %1081 = vmax.xlane.f32.xlu0 %v1080_v62 }
 0x485   : > { %1084 = vmax.xlane.f32.xlu1 %v1083_v63 }
 0x4f4   : > { %v1046_v2 = vpop.xlane.xlu0 %1045 }
 0x4f5   : > { %v1088_v3 = vsub.f32 %v1873_v35, %v1046_v2 }
 0x4f6   : > { %v1049_v4 = vpop.xlane.xlu1 %1048 }
 0x4f7   : > { %v1106_v5 = vmul.f32 1.442695, %v1088_v3  ;;  %v1089_v6 = vsub.f32 %v1874_v40, %v1049_v4 }
 0x4f8   : > { %v1040_v7 = vpop.xlane.xlu0 %1039 }
 0x4f9   : > { %2097 = vpow2.f32 %v1106_v5  ;;  %v1108_v8 = vmul.f32 1.442695, %v1089_v6  ;;  %v1086_v9 = vsub.f32 %v908_v36, %v1040_v7 }
 0x4fa   : > { %v1043_v10 = vpop.xlane.xlu1 %1042 }
 0x4fb   : > { %2099 = vpow2.f32 %v1108_v8  ;;  %v1102_v11 = vmul.f32 1.442695, %v1086_v9  ;;  %v1087_v12 = vsub.f32 %v911_v42, %v1043_v10 }
 0x4fc   : > { %v1070_v13 = vpop.xlane.xlu0 %1069 }
 0x4fd   : > { %2101 = vpow2.f32 %v1102_v11  ;;  %v1104_v14 = vmul.f32 1.442695, %v1087_v12  ;;  %v1096_v15 = vsub.f32 %v2882_v31, %v1070_v13 }
 0x4fe   : > { %v1073_v16 = vpop.xlane.xlu1 %1072 }
 0x4ff   : > { %2103 = vpow2.f32 %v1104_v14  ;;  %v1122_v17 = vmul.f32 1.442695, %v1096_v15  ;;  %v1097_v18 = vsub.f32 %v2886_v33, %v1073_v16 }
 0x500   : > { %v1064_v19 = vpop.xlane.xlu0 %1063 }
 0x501   : > { %2105 = vpow2.f32 %v1122_v17  ;;  %v1124_v20 = vmul.f32 1.442695, %v1097_v18  ;;  %v1094_v21 = vsub.f32 %v2884_v32, %v1064_v19 }
 0x502   : > { %v1067_v22 = vpop.xlane.xlu1 %1066 }
 0x503   : > { %v2937_v23 = vpop.eup %2097  ;;  %2107 = vpow2.f32 %v1124_v20  ;;  %v1118_v24 = vmul.f32 1.442695, %v1094_v21  ;;  %v1095_v25 = vsub.f32 %v2888_v34, %v1067_v22 }
 0x504   : > { %v1058_v26 = vpop.xlane.xlu0 %1057  ;;  %v1140_v28 = vsel %vm789_vm2, %v2937_v23, 0.0 }
 0x505   : > { %v2942_v30 = vpop.eup %2099  ;;  %2109 = vpow2.f32 %v1118_v24  ;;  %v1120_v31 = vmul.f32 1.442695, %v1095_v25  ;;  %v1092_v33 = vsub.f32 %v2904_v49, %v1058_v26  ;;  %1141 = vadd.xlane.f32.xlu0 %v1140_v28 }
 0x506   : > { %v1061_v35 = vpop.xlane.xlu1 %1060  ;;  %v1143_v32 = vsel %vm789_vm2, %v2942_v30, 0.0 }
 0x507   : > { %v2947_v36 = vpop.eup %2101  ;;  %2111 = vpow2.f32 %v1120_v31  ;;  %v1114_v38 = vmul.f32 1.442695, %v1092_v33  ;;  %v1093_v34 = vsub.f32 %v2908_v51, %v1061_v35  ;;  %1144 = vadd.xlane.f32.xlu1 %v1143_v32 }
 0x508   : > { %v1052_v40 = vpop.xlane.xlu0 %1051  ;;  %v1134_v42 = vsel %vm789_vm2, %v2947_v36, 0.0 }
 0x509   : > { %v2952_v43 = vpop.eup %2103  ;;  %2113 = vpow2.f32 %v1114_v38  ;;  %v1116_v46 = vmul.f32 1.442695, %v1093_v34  ;;  %v1090_v47 = vsub.f32 %v2906_v50, %v1052_v40  ;;  %1135 = vadd.xlane.f32.xlu0 %v1134_v42 }
 0x50a   : > { %v1055_v48 = vpop.xlane.xlu1 %1054  ;;  %v1137_v49 = vsel %vm789_vm2, %v2952_v43, 0.0 }
 0x50b   : > { %v2957_v52 = vpop.eup %2105  ;;  %2115 = vpow2.f32 %v1116_v46  ;;  %v1110_v51 = vmul.f32 1.442695, %v1090_v47  ;;  %v1091_v54 = vsub.f32 %v2912_v53, %v1055_v48  ;;  %1138 = vadd.xlane.f32.xlu1 %v1137_v49 }
 0x50c   : > { %v1076_v55 = vpop.xlane.xlu0 %1075  ;;  %v1164_v56 = vsel %vm789_vm2, %v2957_v52, 0.0 }
 0x50d   : > { %v2962_v57 = vpop.eup %2107  ;;  %2117 = vpow2.f32 %v1110_v51  ;;  %v1112_v50 = vmul.f32 1.442695, %v1091_v54  ;;  %v1098_v58 = vsub.f32 %v2893_v41, %v1076_v55  ;;  %1165 = vadd.xlane.f32.xlu0 %v1164_v56 }
 0x50e   : > { %v1079_v59 = vpop.xlane.xlu1 %1078  ;;  %v1167_v60 = vsel %vm789_vm2, %v2962_v57, 0.0 }
 0x50f   : > { %v2967_v61 = vpop.eup %2109  ;;  %2119 = vpow2.f32 %v1112_v50  ;;  %v1126_v53 = vmul.f32 1.442695, %v1098_v58  ;;  %v1099_v62 = vsub.f32 %v2898_v45, %v1079_v59  ;;  %1168 = vadd.xlane.f32.xlu1 %v1167_v60 }
 0x510   : > { %v1082_v63 = vpop.xlane.xlu0 %1081  ;;  %v1158_v2 = vsel %vm789_vm2, %v2967_v61, 0.0 }
 0x511   : > { %v2972_v3 = vpop.eup %2111  ;;  %2121 = vpow2.f32 %v1126_v53  ;;  %v1128_v41 = vmul.f32 1.442695, %v1099_v62  ;;  %v1100_v4 = vsub.f32 %v2891_v39, %v1082_v63  ;;  %1159 = vadd.xlane.f32.xlu0 %v1158_v2 }
 0x512   : > { %v1085_v5 = vpop.xlane.xlu1 %1084  ;;  %v1161_v6 = vsel %vm789_vm2, %v2972_v3, 0.0 }
 0x513   : > { %v2977_v7 = vpop.eup %2113  ;;  %2123 = vpow2.f32 %v1128_v41  ;;  %v1130_v45 = vmul.f32 1.442695, %v1100_v4  ;;  %v1101_v8 = vsub.f32 %v2896_v44, %v1085_v5  ;;  %1162 = vadd.xlane.f32.xlu1 %v1161_v6 }
 0x514   : > { %v1152_v9 = vsel %vm789_vm2, %v2977_v7, 0.0 }
 0x515   : > { %v2982_v10 = vpop.eup %2115  ;;  %2125 = vpow2.f32 %v1130_v45  ;;  %v1132_v11 = vmul.f32 1.442695, %v1101_v8  ;;  %1153 = vadd.xlane.f32.xlu0 %v1152_v9 }
 0x516   : > { %v1155_v39 = vsel %vm789_vm2, %v2982_v10, 0.0 }
 0x517   : > { %v2986_v12 = vpop.eup %2117  ;;  %2127 = vpow2.f32 %v1132_v11  ;;  %1156 = vadd.xlane.f32.xlu1 %v1155_v39 }
 0x518   : > { %v1146_v13 = vsel %vm789_vm2, %v2986_v12, 0.0 }
 0x519   : > { %v2990_v44 = vpop.eup %2119  ;;  %1147 = vadd.xlane.f32.xlu0 %v1146_v13 }
 0x51a   : > { %v1149_v14 = vsel %vm789_vm2, %v2990_v44, 0.0 }
 0x51b   : > { %v2994_v15 = vpop.eup %2121  ;;  %1150 = vadd.xlane.f32.xlu1 %v1149_v14 }
 0x51c   : > { %v1170_v16 = vsel %vm789_vm2, %v2994_v15, 0.0 }
 0x51d   : > { %v2998_v17 = vpop.eup %2123  ;;  %1171 = vadd.xlane.f32.xlu0 %v1170_v16 }
 0x51e   : > { %v1173_v18 = vsel %vm789_vm2, %v2998_v17, 0.0 }
 0x51f   : > { %v3002_v19 = vpop.eup %2125  ;;  %1174 = vadd.xlane.f32.xlu1 %v1173_v18 }
 0x520   : > { %v1176_v20 = vsel %vm789_vm2, %v3002_v19, 0.0 }
 0x521   : > { %v3006_v21 = vpop.eup %2127  ;;  %1177 = vadd.xlane.f32.xlu0 %v1176_v20 }
 0x522   : > { %v1179_v22 = vsel %vm789_vm2, %v3006_v21, 0.0 }
 0x523   : > { %1180 = vadd.xlane.f32.xlu1 %v1179_v22 }
 0x592   : > { %v1142_v24 = vpop.xlane.xlu0 %1141 }
 0x594   : > { %v1145_v25 = vpop.xlane.xlu1 %1144 }
 0x596   : > { %v1136_v26 = vpop.xlane.xlu0 %1135 }
 0x597   : > { %2129 = vrcp.f32 %v1136_v26 }
 0x598   : > { %2131 = vrcp.f32 %v1145_v25  ;;  %v1139_v28 = vpop.xlane.xlu1 %1138 }
 0x599   : > { %2133 = vrcp.f32 %v1139_v28  ;;  %v2084_v28 = vld [vmem:[%s3155_s7 + $0x18] sm:$0xff]  }
 0x59a   : > { %v1166_v31 = vpop.xlane.xlu0 %1165  ;;  %2135 = vrcp.f32 %v1142_v24 }
 0x59c   : > { %v1169_v33 = vpop.xlane.xlu1 %1168 }
 0x59e   : > { %v1160_v35 = vpop.xlane.xlu0 %1159 }
 0x59f   : > { %2137 = vrcp.f32 %v1160_v35 }
 0x5a0   : > { %2139 = vrcp.f32 %v1169_v33  ;;  %v1163_v32 = vpop.xlane.xlu1 %1162 }
 0x5a1   : > { %v2130_v38 = vpop.eup %2129  ;;  %2141 = vrcp.f32 %v1163_v32 }
 0x5a2   : > { %v2132_v34 = vpop.eup %2131  ;;  %v1154_v40 = vpop.xlane.xlu0 %1153  ;;  %2143 = vrcp.f32 %v1166_v31  ;;  %v1198_v47 = vmul.f32 %v2130_v38, %v2947_v36 }
 0x5a3   : > { %v2134_v42 = vpop.eup %2133  ;;  %v1201_v55 = vmul.f32 %v2132_v34, %v2942_v30 }
 0x5a4   : > { %v1157_v46 = vpop.xlane.xlu1 %1156  ;;  %v1199_v48 = vmul.f32 %v2134_v42, %v2952_v43  ;;  %v2136_v49 = vpop.eup %2135 }
 0x5a5   : > { %v1200_v50 = vmul.f32 %v2136_v49, %v2937_v23 }
 0x5a6   : > { %v1148_v51 = vpop.xlane.xlu0 %1147  ;;  %v1214_v54 = vpack.c.bf16 %v1199_v48, %v1198_v47  ;;  %v1799_v47 = vld [vmem:[#allocation10] ss:$0 sm:$0xff] }
 0x5a7   : > { %2145 = vrcp.f32 %v1148_v51  ;;  %v1215_v60 = vpack.c.bf16 %v1201_v55, %v1200_v50 }
 0x5a8   : > { %2147 = vrcp.f32 %v1157_v46  ;;  %v1151_v56 = vpop.xlane.xlu1 %1150  ;;  %1890 = vmatpush3.bf16.msra.mxu0 %v1214_v54 }
 0x5a9   : > { %v2138_v58 = vpop.eup %2137  ;;  %2149 = vrcp.f32 %v1151_v56  ;;  %1891 = vmatprep.subr.bf16.mxu0 %v2488_v37 }
 0x5aa   : > { %v2140_v59 = vpop.eup %2139  ;;  %2151 = vrcp.f32 %v1154_v40  ;;  %v1172_v36 = vpop.xlane.xlu0 %1171  ;;  %v1206_v30 = vmul.f32 %v2138_v58, %v2967_v61 }
 0x5ab   : > { %v2142_v43 = vpop.eup %2141  ;;  %2153 = vrcp.f32 %v1172_v36  ;;  %v1209_v41 = vmul.f32 %v2140_v59, %v2962_v57  ;;  %v1783_v57 = vld [vmem:[#allocation8] ss:$0 sm:$0xff] }
 0x5ac   : > { %v1175_v53 = vpop.xlane.xlu1 %1174  ;;  %1892 = vmatpush3.bf16.msra.mxu0 %v1215_v60  ;;  %v1207_v62 = vmul.f32 %v2142_v43, %v2972_v3  ;;  %v2144_v63 = vpop.eup %2143 }
 0x5ad   : > { %2155 = vrcp.f32 %v1175_v53  ;;  %1893 = vmatprep.subr.bf16.mxu0 %v2488_v37  ;;  %v1208_v5 = vmul.f32 %v2144_v63, %v2957_v52 }
 0x5ae   : > { %v1178_v23 = vpop.xlane.xlu0 %1177  ;;  %v1218_v2 = vpack.c.bf16 %v1207_v62, %v1206_v30 }
 0x5af   : > { %2157 = vrcp.f32 %v1178_v23  ;;  %v1219_v45 = vpack.c.bf16 %v1209_v41, %v1208_v5  ;;  %v2085_v41 = vld [vmem:[%s3159_s11] sm:$0xff]  }
 0x5b0   : > { %v1181_v4 = vpop.xlane.xlu1 %1180  ;;  %1902 = vmatpush3.bf16.msra.mxu1 %v1218_v2 }
 0x5b1   : > { %v2146_v6 = vpop.eup %2145  ;;  %2159 = vrcp.f32 %v1181_v4  ;;  %1903 = vmatprep.subr.bf16.mxu1 %v2488_v37  ;;  %v2086_v4 = vld [vmem:[%s3159_s11 + $0x8] sm:$0xff]  }
 0x5b2   : > { %v2148_v61 = vpop.eup %2147  ;;  %v1202_v9 = vmul.f32 %v2146_v6, %v2986_v12  ;;  %v828_v12 = vadd.f32 %v1783_v57, %v2878_v27 }
 0x5b3   : > { %v2150_v3 = vpop.eup %2149  ;;  %v1205_v52 = vmul.f32 %v2148_v61, %v2982_v10 }
 0x5b4   : > { %v2152_v8 = vpop.eup %2151  ;;  %1904 = vmatpush3.bf16.msra.mxu1 %v1219_v45  ;;  %v1203_v11 = vmul.f32 %v2150_v3, %v2990_v44 }
 0x5b5   : > { %v2154_v39 = vpop.eup %2153  ;;  %1905 = vmatprep.subr.bf16.mxu1 %v2488_v37  ;;  %v1204_v16 = vmul.f32 %v2152_v8, %v2977_v7  ;;  %v2081_v7 = vld [vmem:[%s3155_s7] sm:$0xff]  }
 0x5b6   : > { %v1216_v13 = vpack.c.bf16 %v1203_v11, %v1202_v9  ;;  %v1210_v18 = vmul.f32 %v2154_v39, %v2994_v15  ;;  %v836_v15 = vpack.c.bf16 %v828_v12, %v828_v12  ;;  %v1805_v11 = vld [vmem:[#allocation11] ss:$0 sm:$0xff]  ;;  %v2087_v12 = vld [vmem:[%s3205_s28] sm:$0xff]  }
 0x5b7   : > { %v2156_v14 = vpop.eup %2155  ;;  %v1217_v44 = vpack.c.bf16 %v1205_v52, %v1204_v16 }
 0x5b8   : > { %1894 = vmatpush3.bf16.msra.mxu0 %v1216_v13  ;;  %v1211_v20 = vmul.f32 %v2156_v14, %v2998_v17  ;;  %v831_v17 = vadd.f32 %v1783_v57, %v2880_v29  ;;  %v2083_v29 = vld [vmem:[%s3155_s7 + $0x10] sm:$0xff]   ;;  %v1806_v14 = vld [vmem:[#allocation13] ss:$0 sm:$0xff] }
 0x5b9   : > { %v2158_v22 = vpop.eup %2157  ;;  %1895 = vmatprep.subr.bf16.mxu0 %v2488_v37 }
 0x5ba   : > { %v1220_v24 = vpack.c.bf16 %v1211_v20, %v1210_v18  ;;  %v1212_v10 = vmul.f32 %v2158_v22, %v3002_v19  ;;  %v2082_v19 = vld [vmem:[%s3155_s7 + $0x8] sm:$0xff]  }
 0x5bb   : > { %v2160_v25 = vpop.eup %2159 }
 0x5bc   : > { %1896 = vmatpush3.bf16.msra.mxu0 %v1217_v44  ;;  %1906 = vmatpush3.bf16.msra.mxu1 %v1220_v24  ;;  %v1213_v26 = vmul.f32 %v2160_v25, %v3006_v21  ;;  %v837_v21 = vpack.c.bf16 %v831_v17, %v831_v17  ;;  %v2088_v44 = vld [vmem:[%s3205_s28 + $0x8] sm:$0xff]  }
 0x5bd   : > { %1907 = vmatprep.subr.bf16.mxu1 %v2488_v37  ;;  %1913 = vmatprep.subr.bf16.mxu0 %v2488_v37  ;;  %v1807_v24 = vld [vmem:[#allocation14] ss:$0 sm:$0xff] }
 0x5be   : > { %v1221_v27 = vpack.c.bf16 %v1213_v26, %v1212_v10 }
 0x5bf   : > { %1898 = vmatmul.mubr.msk.bf16.vlgmr.msra.gmra.mrb[12].mxu0 %vm789_vm2, %v836_v15 }
 0x5c0   : > { %1908 = vmatpush3.bf16.msra.mxu1 %v1221_v27  ;;  %1914 = vmatpush3.bf16.msra.mxu0 %v2081_v7 }
 0x5c1   : > { %1915 = vmatprep.subr.bf16.mxu0 %v2488_v37  ;;  %1921 = vmatprep.mubr.msk.bf16.mxu0 %vm2489_vm1, %v2488_v37 }
 0x5c2   : > { %1925 = vmatprep.subr.bf16.mxu1 %v2488_v37 }
 0x5c3   : > { %1910 = vmatmul.mubr.msk.bf16.vlgmr.msra.gmra.mrb[12].mxu1 %vm789_vm2, %v837_v21 }
 0x5c4   : > { %1916 = vmatpush3.bf16.msra.mxu0 %v2082_v19  ;;  %1929 = vmatprep.mubr.msk.bf16.mxu1 %vm2489_vm1, %v2488_v37 }
 0x5c5   : > { %1917 = vmatprep.subr.bf16.mxu0 %v2488_v37  ;;  %1926 = vmatpush3.bf16.msra.mxu1 %v2085_v41 }
 0x5c6   : > { %1927 = vmatprep.subr.bf16.mxu1 %v2488_v37 }
 0x5c8   : > { %1918 = vmatpush3.bf16.msra.mxu0 %v2083_v29 }
 0x5c9   : > { %1919 = vmatprep.subr.bf16.mxu0 %v2488_v37  ;;  %1928 = vmatpush3.bf16.msra.mxu1 %v2086_v4 }
 0x5cc   : > { %1920 = vmatpush3.bf16.msra.mxu0 %v2084_v28 }
 0x5cd   : > { %1933 = vmatprep.subr.bf16.mxu0 %v2488_v37 }
 0x692   : > { %v1259_v31 = vpop.f32.mrb[12].mxu0 }
 0x693   : > { %v1899_v33 = vpop.f32.mrb[13].mxu0 }
 0x694   : > { %v1262_v35 = vpop.f32.mrb[14].mxu0 }
 0x695   : > { %v1900_v32 = vpop.f32.mrb[15].mxu0 }
 0x696   : > { %v1302_v38 = vpop.f32.mrb[12].mxu1 }
 0x697   : > { %v1308_v34 = vpack.c.bf16 %v1302_v38, %v1259_v31  ;;  %v1911_v40 = vpop.f32.mrb[13].mxu1 }
 0x698   : > { %v1305_v42 = vpop.f32.mrb[14].mxu1 }
 0x699   : > { %v1912_v46 = vpop.f32.mrb[15].mxu1  ;;  %1922 = vmatmul.mubr.msk.bf16.vlgmr.msra.gmra.mrb[16].mxu0 %vm789_vm2, %v1308_v34 }
 0x69a   : > { %1937 = vmatprep.mubr.msk.bf16.mxu0 %vm2489_vm1, %v2488_v37  ;;  %1934 = vmatpush3.bf16.msra.mxu0 %v2087_v12 }
 0x69b   : > { %1935 = vmatprep.subr.bf16.mxu0 %v2488_v37 }
 0x69e   : > { %1936 = vmatpush3.bf16.msra.mxu0 %v2088_v44 }
 0x76c   : > { %v1385_v48 = vpop.f32.mrb[16].mxu0 }
 0x76d   : > { %v1386_v49 = vadd.f32 %v1799_v47, %v1385_v48  ;;  %v1923_v51 = vpop.f32.mrb[17].mxu0 }
 0x76e   : > { %v1388_v54 = vpop.f32.mrb[18].mxu0 }
 0x76f   : > { %v3062_v55 = vadd.f32 %v1386_v49, %v2829_v0  ;;  %v1389_v56 = vadd.f32 %v1799_v47, %v1388_v54  ;;  %v1924_v50 = vpop.f32.mrb[19].mxu0  ;;  %v1811_v54 = vld [vmem:[%s3207_s20] ss:$0 sm:$0xff] }
 0x771   : > { %v3065_v58 = vadd.f32 %v1389_v56, %v2831_v1  ;;  %v1396_v59 = vsel %vm604_vm0, %v3062_v55, 0.0 }
 0x772   : > { %1397 = vadd.xlane.f32.xlu0 %v1396_v59 }
 0x773   : > { %v1399_v36 = vsel %vm604_vm0, %v3065_v58, 0.0 }
 0x774   : > { %1400 = vadd.xlane.f32.xlu1 %v1399_v36 }
 0x7ff   : > { %v1398_v60 = vpop.xlane.xlu0 %1397 }
 0x800   : > { %v1402_v43 = vmul.f32 0.03125, %v1398_v60 }
 0x801   : > { %v1401_v53 = vpop.xlane.xlu1 %1400 }
 0x802   : > { %v1404_v30 = vsub.f32 %v3062_v55, %v1402_v43  ;;  %v1403_v0 = vmul.f32 0.03125, %v1401_v53 }
 0x804   : > { %v1405_v62 = vsub.f32 %v3065_v58, %v1403_v0  ;;  %v1406_v63 = vmul.f32 %v1404_v30, %v1404_v30 }
 0x806   : > { %v1408_v1 = vsel %vm604_vm0, %v1406_v63, 0.0  ;;  %v1407_v23 = vmul.f32 %v1405_v62, %v1405_v62 }
 0x807   : > { %1409 = vadd.xlane.f32.xlu0 %v1408_v1 }
 0x808   : > { %v1411_v2 = vsel %vm604_vm0, %v1407_v23, 0.0 }
 0x809   : > { %1412 = vadd.xlane.f32.xlu1 %v1411_v2 }
 0x894   : > { %v1410_v5 = vpop.xlane.xlu0 %1409 }
 0x895   : > { %v1414_v6 = vmul.f32 0.03125, %v1410_v5 }
 0x896   : > { %v1413_v61 = vpop.xlane.xlu1 %1412 }
 0x897   : > { %v1416_v45 = vadd.f32 1e-05, %v1414_v6  ;;  %v1415_v3 = vmul.f32 0.03125, %v1413_v61 }
 0x899   : > { %2161 = vrsqrt.f32 %v1416_v45  ;;  %v1417_v8 = vadd.f32 1e-05, %v1415_v3 }
 0x89b   : > { %2163 = vrsqrt.f32 %v1417_v8 }
 0x8a3   : > { %v2162_v9 = vpop.eup %2161 }
 0x8a4   : > { %v1420_v39 = vmul.f32 %v2162_v9, %v1404_v30 }
 0x8a5   : > { %v2164_v57 = vpop.eup %2163 }
 0x8a6   : > { %v1428_v13 = vmul.f32 %v1805_v11, %v1420_v39  ;;  %v1421_v52 = vmul.f32 %v2164_v57, %v1405_v62 }
 0x8a8   : > { %v1429_v16 = vmul.f32 %v1805_v11, %v1421_v52  ;;  %v1436_v18 = vadd.f32 %v1806_v14, %v1428_v13 }
 0x8aa   : > { %v1437_v20 = vadd.f32 %v1806_v14, %v1429_v16 }
 0x8ac   : > { %v1438_v22 = vpack.c.bf16 %v1437_v20, %v1436_v18 }
 0x8ae   : > { %1930 = vmatmul.mubr.msk.bf16.vlgmr.msra.gmra.mrb[16].mxu1 %vm604_vm0, %v1438_v22 }
 0x981   : > { %v1499_v25 = vpop.f32.mrb[16].mxu1 }
 0x982   : > { %v1500_v10 = vadd.f32 %v1807_v24, %v1499_v25  ;;  %v1931_v26 = vpop.f32.mrb[17].mxu1 }
 0x983   : > { %v1502_v7 = vpop.f32.mrb[18].mxu1 }
 0x984   : > { %v1506_v15 = vmul.f32 %v1500_v10, %v1500_v10  ;;  %v1503_v17 = vadd.f32 %v1807_v24, %v1502_v7  ;;  %v1932_v27 = vpop.f32.mrb[19].mxu1 }
 0x986   : > { %v1508_v19 = vmul.f32 %v1506_v15, %v1500_v10  ;;  %v1507_v21 = vmul.f32 %v1503_v17, %v1503_v17 }
 0x988   : > { %v1510_v29 = vmul.f32 0.044715, %v1508_v19  ;;  %v1509_v28 = vmul.f32 %v1507_v21, %v1503_v17 }
 0x98a   : > { %v1512_v31 = vadd.f32 %v1510_v29, %v1500_v10  ;;  %v1511_v33 = vmul.f32 0.044715, %v1509_v28 }
 0x98c   : > { %v1514_v37 = vmul.f32 0.7978846, %v1512_v31  ;;  %v1513_v35 = vadd.f32 %v1511_v33, %v1503_v17 }
 0x98e   : > { %2165 = vtanh.f32 %v1514_v37  ;;  %v1515_v32 = vmul.f32 0.7978846, %v1513_v35 }
 0x990   : > { %2167 = vtanh.f32 %v1515_v32 }
 0x998   : > { %v2166_v38 = vpop.eup %2165 }
 0x999   : > { %v1518_v34 = vadd.f32 1.0, %v2166_v38 }
 0x99a   : > { %v2168_v40 = vpop.eup %2167 }
 0x99b   : > { %v1520_v42 = vmul.f32 0.5, %v1518_v34  ;;  %v1519_v46 = vadd.f32 1.0, %v2168_v40 }
 0x99d   : > { %v1521_v47 = vmul.f32 0.5, %v1519_v46  ;;  %v1522_v48 = vmul.f32 %v1520_v42, %v1500_v10 }
 0x99f   : > { %v1523_v49 = vmul.f32 %v1521_v47, %v1503_v17 }
 0x9a1   : > { %v1524_v51 = vpack.c.bf16 %v1523_v49, %v1522_v48 }
 0x9a3   : > { %1938 = vmatmul.mubr.msk.bf16.vlgmr.msra.gmra.mrb[20].mxu0 %vm604_vm0, %v1524_v51 }
 0xa76   : > { %v1585_v56 = vpop.f32.mrb[20].mxu0 }
 0xa77   : > { %v1586_v50 = vadd.f32 %v1811_v54, %v1585_v56  ;;  %v1939_v59 = vpop.f32.mrb[21].mxu0 }
 0xa78   : > { %v1588_v36 = vpop.f32.mrb[22].mxu0 }
 0xa79   : > { %v1592_v60 = vadd.f32 %v1586_v50, %v1436_v18  ;;  %v1589_v43 = vadd.f32 %v1811_v54, %v1588_v36  ;;  %v1940_v53 = vpop.f32.mrb[23].mxu0 }
 0xa7b   : > { %v1594_v30 = vadd.f32 %v1592_v60, %v3062_v55  ;;  %v1593_v0 = vadd.f32 %v1589_v43, %v1437_v20 }
 0xa7d   : > { %1596 = vst.msk [vmem:[%s591_s24] sm:$0xff] %vm604_vm0, %v1594_v30  ;;  %v1595_v62 = vadd.f32 %v1593_v0, %v3065_v58 }
 0xa7f   : > { %1597 = vst.msk [vmem:[%s591_s24 + $0x8] sm:$0xff] %vm604_vm0, %v1595_v62 }
 0xa80   : > { %2406 = shalt.err (!%p2403_p4)
}
 0xa81   : > { %s2407_s15 = scalar_lea.hbm %s3100_s18, 256  ;;  %s2411_s20 = scalar_lea.hbm %s3209_s27, 512 }
 0xa82   : > { %p2408_p12 = scmp.ne.s32.totalorder %s3100_s18, %s2407_s15  ;;  %p2412_p11 = scmp.lt.u32.totalorder %s3100_s18, %s3209_s27 }
 0xa83   : > { %p2413_p13 = scmp.lt.u32.totalorder %s2411_s20, %s2407_s15  ;;  %p2415_p6 = scmp.lt.u32.totalorder %s2407_s15, %s3100_s18 }
 0xa84   : > { %p2409_p7 = pnand %p2408_p12, %p3210_p9 }
 0xa85   : > { %p2414_p1 = por %p2413_p13, %p2412_p11 }
 0xa86   : > { %p2410_p8 = pneg %p2409_p7 }
 0xa87   : > { %p2416_p5 = por %p2415_p6, %p2414_p1 }
 0xa89   : > { %p2417_p10 = pnand %p2416_p5, %p2410_p8 }
 0xa8b   : > { %2420 = shalt.err (!%p2417_p10)
}
 0xa8c   : > { %s2492_s16 = smov 128   ;;  %s2493_s25 = smov 8  }
 0xa8d   : > { %1975 = dma.vmem_to_hbm [thread:$0]  (%p3210_p9), %s3102_s29, 256, %s3100_s18, %s3107_s22, %s2492_s16, %s2492_s16, %s2493_s25  }
 0xa8e PF: > { %s3211_s26 = sld [smem:[#allocation26_spill]]  ;;  %s3212_s14 = sld [smem:[#allocation23_spill]] }
 0xa8f   : > { %s3213_s21 = sld [smem:[#allocation30_spill]] }
 0xa94   : > { %p2022_p0 = scmp.ge.s32.totalorder %s3211_s26, 2  ;;  %s1627_s30 = sand.u32 1, %s3212_s14  }
 0xa95   : > { %p3214_p2 = scmp.ne.s32.totalorder %s3213_s21, 0  ;;  %s1628_s15 = scalar_lea.sflag [#allocation4], %s1627_s30 }
 0xa97   : > { %p2003_p3 = pnand %p2022_p0, %p3214_p2 }
 0xa99   : > { %2458 = dma.done.wait (!%p2003_p3), %s1628_s15, 256  }
 0xa9a   : > { %2460 = vsyncadd (!%p2003_p3), %s1628_s15, 4294967040  ;;  %s3215_s21 = sld [smem:[#allocation27_spill]]  ;;  %s3216_s18 = sld [smem:[#allocation24_spill]] }
 0xa9b   : > { %s3217_s19 = sld [smem:[#allocation25_spill]]  ;;  %s3218_s20 = sld [smem:[#allocation28_spill]] }
 0xaa0   : > { %p30_p4 = scmp.ge.s32.totalorder %s3215_s21, 4  }
 0xaa2   :  { %32 = sbr.rel (!%p30_p4) target bundleno = 12 (0xc), region = 148 }
 0xaa9   :  { %1633 = vsyncpa [#allocation3], 1 }
 0xaaa   :  { %1635 = vsyncpa [#allocation3 + $0x1], 1 }
 0xaab   :  { %1636 = vsyncpa [#allocation6], 1 }
 0xaac   :  { %1637 = vsyncpa [#allocation9], 1 }
 0xaad   :  { %1638 = vsyncpa [#allocation12], 1 }
 0xaae   :  { %1639 = vsyncpa [#allocation15], 1 }
 0xaaf   :  { %1640 = vsyncpa [#allocation4], 1 }
 0xab0   :  { %1642 = vsyncpa [#allocation4 + $0x1], 1 }

</bundles_post_ra>
